<compile_context>
chip_gen: v7x
topology: tpu7x:2x2x1
jax: 0.10.0
libtpu: 0.0.40
codegen_flags: <defaults>
</compile_context>

<pallas_src>
import functools

import jax
import jax.numpy as jnp
from jax.experimental import pallas as pl
from jax.experimental.pallas import tpu as pltpu


def _edgeconv_kernel(feats_ref, w1_ref, b1_ref, w2r_ref, out_ref, *, mxu_bf16):
    feats = feats_ref[...]                       # (TN, t, d)
    tn, t, d = feats.shape

    # ---- Linear(d -> hidden) + ReLU on the MXU (bf16 operands optional, f32 accum)
    x = feats.reshape(tn * t, d)                 # merge leading dims, lanes stay = d
    w1 = w1_ref[...]
    if mxu_bf16:
        x = x.astype(jnp.bfloat16)
        w1 = w1.astype(jnp.bfloat16)
    h = jnp.dot(x, w1, preferred_element_type=jnp.float32) + b1_ref[...]
    h = jnp.maximum(h, 0.0)                      # (TN*t, hidden) f32

    # ---- Linear(hidden -> 1) as a VPU multiply + lane reduce (no 1-lane MXU matmul)
    s = jnp.sum(h * w2r_ref[...], axis=-1, keepdims=True)        # (TN*t, 1)
    # Keep t on the sublane axis: (TN, t, 1) view — scores will broadcast
    # directly against feats (TN, t, d) without a lanes<->sublanes round trip.
    s = s.reshape(tn, t, 1)
    # NOTE: the Linear(hidden,1) bias is omitted on purpose — softmax over t is
    # shift-invariant, so adding a constant to every score is an exact no-op.

    # ---- softmax over the hyperedge axis t (sublane reduces on the XLU) ----
    m = jnp.max(s, axis=1, keepdims=True)        # (TN, 1, 1)
    e = jnp.exp(s - m)                           # (TN, t, 1)
    denom = jnp.sum(e, axis=1, keepdims=True)    # (TN, 1, 1)
    if mxu_bf16:
        scores = e * pl.reciprocal(denom, approx=True)   # EUP slot, fast path only
    else:
        scores = e / denom                               # exact path: true divide

    # ---- weighted pooling on the VPU: broadcast multiply + sublane reduce over t
    pooled = jnp.sum(scores * feats.astype(jnp.float32), axis=1)  # (TN, d) f32
    out_ref[...] = pooled.astype(out_ref.dtype)


def edge_conv(feats, w1, b1, w2, b2=None, *, block_n=512, mxu_bf16=True):
    """feats: (N, t, d) f32 or bf16; w1: (d, hidden); b1: (1, hidden); w2: (hidden, 1).

    b2 is accepted for API parity with the PyTorch module but never read: it
    cancels exactly in the softmax.  Returns (N, d) in feats.dtype.
    """
    del b2  # exact no-op under the softmax (shift invariance)
    N, t, d = feats.shape
    hidden = w1.shape[1]
    w1 = jnp.asarray(w1, jnp.float32)
    b1 = jnp.asarray(b1, jnp.float32).reshape(1, hidden)
    w2_row = jnp.asarray(w2, jnp.float32).reshape(1, hidden)   # row form for the VPU reduce

    # N-tile: keep the sublane-facing dim a multiple of 8 (out block is (tn, d))
    # and the double-buffered feats blocks + intermediates inside scoped VMEM on
    # every generation (v5e 16 MiB default, v7x 32 MiB scoped / 64 MiB physical).
    if N <= block_n:
        tn = N
    else:
        tn = max(8, (block_n // 8) * 8)
    grid = (pl.cdiv(N, tn),)

    itemsize = jnp.dtype(feats.dtype).itemsize
    cost = pl.CostEstimate(
        flops=2 * N * t * d * hidden + 2 * N * t * hidden + 2 * N * t * d + 5 * N * t,
        transcendentals=N * t,                                   # exp in the softmax
        bytes_accessed=(feats.size + N * d) * itemsize
        + (w1.size + b1.size + w2_row.size) * 4,
    )

    kernel = functools.partial(_edgeconv_kernel, mxu_bf16=mxu_bf16)
    out = pl.pallas_call(
        kernel,
        out_shape=jax.ShapeDtypeStruct((N, d), feats.dtype),
        grid=grid,
        in_specs=[
            pl.BlockSpec((tn, t, d), lambda i: (i, 0, 0)),       # feats tile over N
            pl.BlockSpec((d, hidden), lambda i: (0, 0)),         # w1 (resident)
            pl.BlockSpec((1, hidden), lambda i: (0, 0)),         # b1 (resident)
            pl.BlockSpec((1, hidden), lambda i: (0, 0)),         # w2 row (resident)
        ],
        out_specs=pl.BlockSpec((tn, d), lambda i: (i, 0)),
        compiler_params=pltpu.CompilerParams(
            dimension_semantics=("parallel",),                   # megacore over N
            vmem_limit_bytes=32 * 1024 * 1024,
        ),
        cost_estimate=cost,
    )(feats, w1, b1, w2_row)
    return out


def edge_conv_ref(feats, w1, b1, w2, b2):
    """Pure-JAX reference matching the PyTorch forward (f32, highest precision)."""
    hp = jax.lax.Precision.HIGHEST
    h = jnp.maximum(jnp.einsum("ntd,dh->nth", feats, w1, precision=hp) + b1, 0.0)
    s = jnp.einsum("nth,ho->nto", h, w2, precision=hp) + b2      # (N, t, 1)
    scores = jax.nn.softmax(s, axis=1)
    return jnp.sum(scores * feats, axis=1)


if __name__ == "__main__":
    # Small, module-consistent shapes: N vertices, t hyperedges, d features.
    N, t, d, hidden = 64, 8, 32, 32

    key = jax.random.PRNGKey(0)
    k_feats, k_w1, k_b1, k_w2, k_b2 = jax.random.split(key, 5)

    feats = jax.random.normal(k_feats, (N, t, d), dtype=jnp.float32)
    # Shapes follow nn.Linear(dim_ft, hidden) and nn.Linear(hidden, 1).
    w1 = jax.random.normal(k_w1, (d, hidden), dtype=jnp.float32) * 0.1
    b1 = jax.random.normal(k_b1, (1, hidden), dtype=jnp.float32) * 0.1
    w2 = jax.random.normal(k_w2, (hidden, 1), dtype=jnp.float32) * 0.1
    b2 = jax.random.normal(k_b2, (1, 1), dtype=jnp.float32) * 0.1

    ref = edge_conv_ref(feats, w1, b1, w2, b2)

    # Exact path (f32 on the MXU, true divide in the softmax).
    out_f32 = jax.block_until_ready(edge_conv(feats, w1, b1, w2, b2, mxu_bf16=False))
    assert out_f32.shape == (N, d)
    assert jnp.allclose(out_f32, ref, atol=1e-4, rtol=1e-4), "f32 path mismatch vs reference"

    # Same exact path with a small tile to force a multi-step grid (pipelined DMA).
    out_tiled = jax.block_until_ready(
        edge_conv(feats, w1, b1, w2, b2, block_n=32, mxu_bf16=False))
    assert jnp.allclose(out_tiled, ref, atol=1e-4, rtol=1e-4), "tiled path mismatch vs reference"

    # Fast path (bf16 operands on the MXU for the score MLP, f32 accumulate /
    # softmax / pooling, approx reciprocal): small bounded rounding difference.
    out_bf16 = jax.block_until_ready(edge_conv(feats, w1, b1, w2, b2, mxu_bf16=True))
    assert out_bf16.shape == (N, d)
    assert jnp.allclose(out_bf16, ref, atol=2e-2, rtol=2e-2), "bf16 path mismatch vs reference"

    # bf16 activations fed straight in (no wrapper-side cast): halves feats HBM traffic.
    out_bf16_in = jax.block_until_ready(
        edge_conv(feats.astype(jnp.bfloat16), w1, b1, w2, b2, mxu_bf16=True))
    assert out_bf16_in.dtype == jnp.bfloat16
    assert jnp.allclose(out_bf16_in.astype(jnp.float32), ref, atol=6e-2, rtol=6e-2), \
        "bf16-input path mismatch vs reference"

    print("KERNEL_OK")
</pallas_src>

<mosaic_0001>
module attributes {stable_mosaic.version = 11 : i64} {
  func.func @_edgeconv_kernel(%arg0: i32, %arg1: memref<64x8x32xf32, #tpu.memory_space<vmem>>, %arg2: memref<32x32xf32, #tpu.memory_space<vmem>>, %arg3: memref<1x32xf32, #tpu.memory_space<vmem>>, %arg4: memref<1x32xf32, #tpu.memory_space<vmem>>, %arg5: memref<64x32xf32, #tpu.memory_space<vmem>>) attributes {dimension_semantics = [#tpu.dimension_semantics<parallel>], iteration_bounds = array<i64: 1>, scalar_prefetch = 0 : i64, scratch_operands = 0 : i64, tpu.core_type = #tpu.core_type<tc>, window_params = [{transform_indices = @transform_0, window_bounds = array<i64: 64, 8, 32>}, {pipeline_mode = #tpu.pipeline_mode<synchronous>, transform_indices = @transform_1, window_bounds = array<i64: 32, 32>}, {pipeline_mode = #tpu.pipeline_mode<synchronous>, transform_indices = @transform_2, window_bounds = array<i64: 1, 32>}, {pipeline_mode = #tpu.pipeline_mode<synchronous>, transform_indices = @transform_3, window_bounds = array<i64: 1, 32>}, {transform_indices = @transform_4, window_bounds = array<i64: 64, 32>}]} {
    %c0 = arith.constant 0 : index
    %c0_0 = arith.constant 0 : index
    %c0_1 = arith.constant 0 : index
    %0 = vector.load %arg1[%c0, %c0_0, %c0_1] : memref<64x8x32xf32, #tpu.memory_space<vmem>>, vector<64x8x32xf32>
    %1 = vector.shape_cast %0 : vector<64x8x32xf32> to vector<512x32xf32>
    %c0_2 = arith.constant 0 : index
    %c0_3 = arith.constant 0 : index
    %2 = vector.load %arg2[%c0_2, %c0_3] : memref<32x32xf32, #tpu.memory_space<vmem>>, vector<32x32xf32>
    %cst = arith.constant dense<0.000000e+00> : vector<512x32xf32>
    %3 = tpu.matmul %1, %2, %cst {dimension_numbers = #tpu.dot_dimension_numbers<[1], [0], [0], [1], [0, 0, 1, 1], [], []>} : vector<512x32xf32>, vector<32x32xf32>, vector<512x32xf32> -> vector<512x32xf32>
    %c0_4 = arith.constant 0 : index
    %c0_5 = arith.constant 0 : index
    %4 = vector.load %arg3[%c0_4, %c0_5] : memref<1x32xf32, #tpu.memory_space<vmem>>, vector<1x32xf32>
    %5 = vector.broadcast %4 : vector<1x32xf32> to vector<512x32xf32>
    %6 = arith.addf %3, %5 : vector<512x32xf32>
    %cst_6 = arith.constant 0.000000e+00 : f32
    %7 = vector.broadcast %cst_6 : f32 to vector<512x32xf32>
    %8 = arith.maximumf %6, %7 : vector<512x32xf32>
    %c0_7 = arith.constant 0 : index
    %c0_8 = arith.constant 0 : index
    %9 = vector.load %arg4[%c0_7, %c0_8] : memref<1x32xf32, #tpu.memory_space<vmem>>, vector<1x32xf32>
    %10 = vector.broadcast %9 : vector<1x32xf32> to vector<512x32xf32>
    %11 = arith.mulf %8, %10 : vector<512x32xf32>
    %cst_9 = arith.constant dense<0.000000e+00> : vector<512xf32>
    %12 = vector.multi_reduction <add>, %11, %cst_9 [1] : vector<512x32xf32> to vector<512xf32>
    %13 = vector.shape_cast %12 : vector<512xf32> to vector<512x1xf32>
    %14 = vector.shape_cast %13 : vector<512x1xf32> to vector<64x8x1xf32>
    %cst_10 = arith.constant dense<0xFF800000> : vector<64x1xf32>
    %15 = vector.multi_reduction <maximumf>, %14, %cst_10 [1] : vector<64x8x1xf32> to vector<64x1xf32>
    %16 = vector.shape_cast %15 : vector<64x1xf32> to vector<64x1x1xf32>
    %17 = vector.broadcast %16 : vector<64x1x1xf32> to vector<64x8x1xf32>
    %18 = arith.subf %14, %17 : vector<64x8x1xf32>
    %19 = math.exp %18 : vector<64x8x1xf32>
    %cst_11 = arith.constant dense<0.000000e+00> : vector<64x1xf32>
    %20 = vector.multi_reduction <add>, %19, %cst_11 [1] : vector<64x8x1xf32> to vector<64x1xf32>
    %21 = vector.shape_cast %20 : vector<64x1xf32> to vector<64x1x1xf32>
    %22 = vector.broadcast %21 : vector<64x1x1xf32> to vector<64x8x1xf32>
    %23 = arith.divf %19, %22 : vector<64x8x1xf32>
    %24 = vector.broadcast %23 : vector<64x8x1xf32> to vector<64x8x32xf32>
    %25 = arith.mulf %24, %0 : vector<64x8x32xf32>
    %cst_12 = arith.constant dense<0.000000e+00> : vector<64x32xf32>
    %26 = vector.multi_reduction <add>, %25, %cst_12 [1] : vector<64x8x32xf32> to vector<64x32xf32>
    %c0_13 = arith.constant 0 : index
    %c0_14 = arith.constant 0 : index
    %27 = vector.load %arg5[%c0_13, %c0_14] : memref<64x32xf32, #tpu.memory_space<vmem>>, vector<64x32xf32>
    tpu.vector_store %arg5[%c0_13, %c0_14], %26 {strides = array<i32>} : memref<64x32xf32, #tpu.memory_space<vmem>>, vector<64x32xf32>,
    return
  }
  func.func @transform_0(%arg0: i32) -> (i32, i32, i32) {
    %c0_i32 = arith.constant 0 : i32
    %c0_i32_0 = arith.constant 0 : i32
    %c0_i32_1 = arith.constant 0 : i32
    return %arg0, %c0_i32, %c0_i32_0 : i32, i32, i32
  }
  func.func @transform_1(%arg0: i32) -> (i32, i32) {
    %c0_i32 = arith.constant 0 : i32
    %c0_i32_0 = arith.constant 0 : i32
    %c0_i32_1 = arith.constant 0 : i32
    return %c0_i32, %c0_i32_0 : i32, i32
  }
  func.func @transform_2(%arg0: i32) -> (i32, i32) {
    %c0_i32 = arith.constant 0 : i32
    %c0_i32_0 = arith.constant 0 : i32
    %c0_i32_1 = arith.constant 0 : i32
    return %c0_i32, %c0_i32_0 : i32, i32
  }
  func.func @transform_3(%arg0: i32) -> (i32, i32) {
    %c0_i32 = arith.constant 0 : i32
    %c0_i32_0 = arith.constant 0 : i32
    %c0_i32_1 = arith.constant 0 : i32
    return %c0_i32, %c0_i32_0 : i32, i32
  }
  func.func @transform_4(%arg0: i32) -> (i32, i32) {
    %c0_i32 = arith.constant 0 : i32
    %c0_i32_0 = arith.constant 0 : i32
    return %arg0, %c0_i32 : i32, i32
  }
}

</mosaic_0001>

<bundles_post_ra>
// kernel: tpu_custom_call.1
= control target key start
LH: loop header
LB: loop body
LE: loop exit
PB: predicated region body
PF: predicated region fallthrough
CT: control target
= control target key end

     0   :  { %vm92_vm0 = vcmask 261120   ;;  %vm2661_vm1 = vcmask 1041409   ;;  %vm2663_vm2 = vcmask 1042434   ;;  %vm2665_vm3 = vcmask 1043459   ;;  %s5131_s1 = inlined_call_operand.vmem [shape: f32[32,32], index: 1, kind: input, shape index: {}]   ;;  %s5132_s0 = inlined_call_operand.vmem [shape: f32[64,8,32], index: 0, kind: input, shape index: {}]   ;;  %s5133_s2 = inlined_call_operand.vmem [shape: f32[1,32], index: 2, kind: input, shape index: {}]   ;;  %s5134_s3 = inlined_call_operand.vmem [shape: f32[1,32], index: 3, kind: input, shape index: {}]   ;;  %s5135_s4 = inlined_call_operand.vmem [shape: f32[64,32], index: 4, kind: output, shape index: {}]  }
   0x1   :  { %v81_v0 = vld [vmem:[%s5131_s1] sm:$0xff]  ;;  %v82_v1 = vld [vmem:[%s5131_s1 + $0x8] sm:$0xff]  ;;  %v83_v2 = vld [vmem:[%s5131_s1 + $0x10] sm:$0xff]  ;;  %vm2667_vm4 = vcmask 1044484   ;;  %vm2669_vm5 = vcmask 1045509   ;;  %vm2671_vm6 = vcmask 1046534  }
   0x2   :  { %v2982_v3 = vpack.c.bf16 %v82_v1, %v81_v0  ;;  %v84_v4 = vld [vmem:[%s5131_s1 + $0x18] sm:$0xff]  ;;  %v17_v5 = vld [vmem:[%s5132_s0] sm:$0xff]  ;;  %v18_v8 = vld [vmem:[%s5132_s0 + $0x8] sm:$0xff]  ;;  %vm2673_vm7 = vcmask 1047559  }
   0x3   :  { %v49_v6 = vld [vmem:[%s5132_s0 + $0x100] sm:$0xff]  ;;  %v2986_v7 = vpack.c.bf16 %v84_v4, %v83_v2  ;;  %2886 = vmatprep.mubr.msk.f32.mxu0 %vm92_vm0, %v17_v5  ;;  %v50_v9 = vld [vmem:[%s5132_s0 + $0x108] sm:$0xff]  ;;  %v19_v10 = vld [vmem:[%s5132_s0 + $0x10] sm:$0xff] }
   0x4   :  { %2934 = vmatprep.mubr.msk.f32.mxu1 %vm92_vm0, %v49_v6  ;;  %2983 = vmatprep.subr.bf16.mxu0 %v2982_v3  ;;  %v51_v11 = vld [vmem:[%s5132_s0 + $0x110] sm:$0xff]  ;;  %v20_v12 = vld [vmem:[%s5132_s0 + $0x18] sm:$0xff]  ;;  %v21_v14 = vld [vmem:[%s5132_s0 + $0x20] sm:$0xff] }
   0x5   :  { %2990 = vmatprep.subr.bf16.mxu1 %v2982_v3  ;;  %2985 = vmatpush3.bf16.msra.mxu0 %v2982_v3  ;;  %v52_v13 = vld [vmem:[%s5132_s0 + $0x118] sm:$0xff]  ;;  %v53_v15 = vld [vmem:[%s5132_s0 + $0x120] sm:$0xff]  ;;  %v22_v16 = vld [vmem:[%s5132_s0 + $0x28] sm:$0xff] }
   0x6   :  { %2992 = vmatpush3.bf16.msra.mxu1 %v2982_v3  ;;  %2987 = vmatprep.subr.bf16.mxu0 %v2986_v7  ;;  %v54_v17 = vld [vmem:[%s5132_s0 + $0x128] sm:$0xff]  ;;  %v23_v18 = vld [vmem:[%s5132_s0 + $0x30] sm:$0xff]  ;;  %v24_v20 = vld [vmem:[%s5132_s0 + $0x38] sm:$0xff] }
   0x7   :  { %2991 = vmatprep.subr.bf16.mxu1 %v2986_v7  ;;  %v55_v19 = vld [vmem:[%s5132_s0 + $0x130] sm:$0xff]  ;;  %v56_v21 = vld [vmem:[%s5132_s0 + $0x138] sm:$0xff]  ;;  %v25_v22 = vld [vmem:[%s5132_s0 + $0x40] sm:$0xff] }
   0x8   :  { %v57_v23 = vld [vmem:[%s5132_s0 + $0x140] sm:$0xff]  ;;  %v26_v24 = vld [vmem:[%s5132_s0 + $0x48] sm:$0xff]  ;;  %v27_v26 = vld [vmem:[%s5132_s0 + $0x50] sm:$0xff] }
   0x9   :  { %2989 = vmatpush3.bf16.msra.mxu0 %v2986_v7  ;;  %v58_v25 = vld [vmem:[%s5132_s0 + $0x148] sm:$0xff]  ;;  %v59_v27 = vld [vmem:[%s5132_s0 + $0x150] sm:$0xff]  ;;  %v28_v28 = vld [vmem:[%s5132_s0 + $0x58] sm:$0xff] }
   0xa   :  { %2993 = vmatpush3.bf16.msra.mxu1 %v2986_v7  ;;  %v60_v29 = vld [vmem:[%s5132_s0 + $0x158] sm:$0xff]  ;;  %v29_v30 = vld [vmem:[%s5132_s0 + $0x60] sm:$0xff]  ;;  %v30_v32 = vld [vmem:[%s5132_s0 + $0x68] sm:$0xff] }
   0xb   :  { %v61_v31 = vld [vmem:[%s5132_s0 + $0x160] sm:$0xff]  ;;  %v62_v33 = vld [vmem:[%s5132_s0 + $0x168] sm:$0xff]  ;;  %v31_v34 = vld [vmem:[%s5132_s0 + $0x70] sm:$0xff] }
   0xc   :  { %2887 = vmatmul.mubr.msk.f32.vlgmr.msra.gmra.mrb[0].mxu0 %vm92_vm0, %v18_v8  ;;  %v63_v35 = vld [vmem:[%s5132_s0 + $0x170] sm:$0xff]  ;;  %v32_v36 = vld [vmem:[%s5132_s0 + $0x78] sm:$0xff]  ;;  %v33_v38 = vld [vmem:[%s5132_s0 + $0x80] sm:$0xff] }
   0xd   :  { %2935 = vmatmul.mubr.msk.f32.vlgmr.msra.gmra.mrb[0].mxu1 %vm92_vm0, %v50_v9  ;;  %2889 = vmatprep.mubr.msk.f32.mxu0 %vm92_vm0, %v19_v10  ;;  %v64_v37 = vld [vmem:[%s5132_s0 + $0x178] sm:$0xff]  ;;  %v65_v39 = vld [vmem:[%s5132_s0 + $0x180] sm:$0xff]  ;;  %v34_v40 = vld [vmem:[%s5132_s0 + $0x88] sm:$0xff] }
   0xe   :  { %2937 = vmatprep.mubr.msk.f32.mxu1 %vm92_vm0, %v51_v11  ;;  %v66_v41 = vld [vmem:[%s5132_s0 + $0x188] sm:$0xff]  ;;  %v35_v42 = vld [vmem:[%s5132_s0 + $0x90] sm:$0xff]  ;;  %v36_v44 = vld [vmem:[%s5132_s0 + $0x98] sm:$0xff] }
   0xf   :  { %v67_v43 = vld [vmem:[%s5132_s0 + $0x190] sm:$0xff]  ;;  %v68_v45 = vld [vmem:[%s5132_s0 + $0x198] sm:$0xff]  ;;  %v37_v46 = vld [vmem:[%s5132_s0 + $0xa0] sm:$0xff] }
  0x10   :  { %2890 = vmatmul.mubr.msk.f32.gmra.mrb[2].mxu0 %vm92_vm0, %v20_v12  ;;  %v69_v47 = vld [vmem:[%s5132_s0 + $0x1a0] sm:$0xff]  ;;  %v38_v48 = vld [vmem:[%s5132_s0 + $0xa8] sm:$0xff]  ;;  %v39_v50 = vld [vmem:[%s5132_s0 + $0xb0] sm:$0xff] }
  0x11   :  { %2938 = vmatmul.mubr.msk.f32.gmra.mrb[2].mxu1 %vm92_vm0, %v52_v13  ;;  %2892 = vmatprep.mubr.msk.f32.mxu0 %vm92_vm0, %v21_v14  ;;  %v70_v49 = vld [vmem:[%s5132_s0 + $0x1a8] sm:$0xff]  ;;  %v71_v51 = vld [vmem:[%s5132_s0 + $0x1b0] sm:$0xff]  ;;  %v40_v52 = vld [vmem:[%s5132_s0 + $0xb8] sm:$0xff] }
  0x12   :  { %2940 = vmatprep.mubr.msk.f32.mxu1 %vm92_vm0, %v53_v15  ;;  %v72_v53 = vld [vmem:[%s5132_s0 + $0x1b8] sm:$0xff]  ;;  %v41_v54 = vld [vmem:[%s5132_s0 + $0xc0] sm:$0xff]  ;;  %v42_v56 = vld [vmem:[%s5132_s0 + $0xc8] sm:$0xff] }
  0x13   :  { %v73_v55 = vld [vmem:[%s5132_s0 + $0x1c0] sm:$0xff]  ;;  %v74_v57 = vld [vmem:[%s5132_s0 + $0x1c8] sm:$0xff]  ;;  %v43_v58 = vld [vmem:[%s5132_s0 + $0xd0] sm:$0xff] }
  0x14   :  { %2893 = vmatmul.mubr.msk.f32.gmra.mrb[4].mxu0 %vm92_vm0, %v22_v16  ;;  %v75_v59 = vld [vmem:[%s5132_s0 + $0x1d0] sm:$0xff]  ;;  %v44_v60 = vld [vmem:[%s5132_s0 + $0xd8] sm:$0xff]  ;;  %v45_v62 = vld [vmem:[%s5132_s0 + $0xe0] sm:$0xff] }
  0x15   :  { %2941 = vmatmul.mubr.msk.f32.gmra.mrb[4].mxu1 %vm92_vm0, %v54_v17  ;;  %2895 = vmatprep.mubr.msk.f32.mxu0 %vm92_vm0, %v23_v18  ;;  %v76_v61 = vld [vmem:[%s5132_s0 + $0x1d8] sm:$0xff]  ;;  %v77_v63 = vld [vmem:[%s5132_s0 + $0x1e0] sm:$0xff]  ;;  %v46_v0 = vld [vmem:[%s5132_s0 + $0xe8] sm:$0xff] }
  0x16   :  { %2943 = vmatprep.mubr.msk.f32.mxu1 %vm92_vm0, %v55_v19  ;;  %v78_v1 = vld [vmem:[%s5132_s0 + $0x1e8] sm:$0xff]  ;;  %v47_v2 = vld [vmem:[%s5132_s0 + $0xf0] sm:$0xff]  ;;  %v48_v4 = vld [vmem:[%s5132_s0 + $0xf8] sm:$0xff] }
  0x17   :  { %v79_v3 = vld [vmem:[%s5132_s0 + $0x1f0] sm:$0xff]  ;;  %v80_v5 = vld [vmem:[%s5132_s0 + $0x1f8] sm:$0xff]  ;;  %v3610_v6 = vld [vmem:[%s5133_s2] ss:$0 sm:$0xff] }
  0x18   :  { %2896 = vmatmul.mubr.msk.f32.gmra.mrb[6].mxu0 %vm92_vm0, %v24_v20  ;;  %v3619_v15 = vld [vmem:[%s5134_s3] ss:$0 sm:$0xff] }
  0x19   :  { %2944 = vmatmul.mubr.msk.f32.gmra.mrb[6].mxu1 %vm92_vm0, %v56_v21  ;;  %2898 = vmatprep.mubr.msk.f32.mxu0 %vm92_vm0, %v25_v22 }
  0x1a   :  { %2946 = vmatprep.mubr.msk.f32.mxu1 %vm92_vm0, %v57_v23 }
  0x1c   :  { %2899 = vmatmul.mubr.msk.f32.gmra.mrb[8].mxu0 %vm92_vm0, %v26_v24 }
  0x1d   :  { %2947 = vmatmul.mubr.msk.f32.gmra.mrb[8].mxu1 %vm92_vm0, %v58_v25  ;;  %2901 = vmatprep.mubr.msk.f32.mxu0 %vm92_vm0, %v27_v26 }
  0x1e   :  { %2949 = vmatprep.mubr.msk.f32.mxu1 %vm92_vm0, %v59_v27 }
  0x20   :  { %2902 = vmatmul.mubr.msk.f32.gmra.mrb[10].mxu0 %vm92_vm0, %v28_v28 }
  0x21   :  { %2950 = vmatmul.mubr.msk.f32.gmra.mrb[10].mxu1 %vm92_vm0, %v60_v29  ;;  %2904 = vmatprep.mubr.msk.f32.mxu0 %vm92_vm0, %v29_v30 }
  0x22   :  { %2952 = vmatprep.mubr.msk.f32.mxu1 %vm92_vm0, %v61_v31 }
  0x24   :  { %2905 = vmatmul.mubr.msk.f32.gmra.mrb[12].mxu0 %vm92_vm0, %v30_v32 }
  0x25   :  { %2953 = vmatmul.mubr.msk.f32.gmra.mrb[12].mxu1 %vm92_vm0, %v62_v33  ;;  %2907 = vmatprep.mubr.msk.f32.mxu0 %vm92_vm0, %v31_v34 }
  0x26   :  { %2955 = vmatprep.mubr.msk.f32.mxu1 %vm92_vm0, %v63_v35 }
  0x28   :  { %2908 = vmatmul.mubr.msk.f32.gmra.mrb[14].mxu0 %vm92_vm0, %v32_v36 }
  0x29   :  { %2956 = vmatmul.mubr.msk.f32.gmra.mrb[14].mxu1 %vm92_vm0, %v64_v37  ;;  %2910 = vmatprep.mubr.msk.f32.mxu0 %vm92_vm0, %v33_v38 }
  0x2a   :  { %2958 = vmatprep.mubr.msk.f32.mxu1 %vm92_vm0, %v65_v39 }
  0x2c   :  { %2911 = vmatmul.mubr.msk.f32.gmra.mrb[16].mxu0 %vm92_vm0, %v34_v40 }
  0x2d   :  { %2959 = vmatmul.mubr.msk.f32.gmra.mrb[16].mxu1 %vm92_vm0, %v66_v41  ;;  %2913 = vmatprep.mubr.msk.f32.mxu0 %vm92_vm0, %v35_v42 }
  0x2e   :  { %2961 = vmatprep.mubr.msk.f32.mxu1 %vm92_vm0, %v67_v43 }
  0x30   :  { %2914 = vmatmul.mubr.msk.f32.gmra.mrb[18].mxu0 %vm92_vm0, %v36_v44 }
  0x31   :  { %2962 = vmatmul.mubr.msk.f32.gmra.mrb[18].mxu1 %vm92_vm0, %v68_v45  ;;  %2916 = vmatprep.mubr.msk.f32.mxu0 %vm92_vm0, %v37_v46 }
  0x32   :  { %2964 = vmatprep.mubr.msk.f32.mxu1 %vm92_vm0, %v69_v47 }
  0x34   :  { %2917 = vmatmul.mubr.msk.f32.gmra.mrb[20].mxu0 %vm92_vm0, %v38_v48 }
  0x35   :  { %2965 = vmatmul.mubr.msk.f32.gmra.mrb[20].mxu1 %vm92_vm0, %v70_v49  ;;  %2919 = vmatprep.mubr.msk.f32.mxu0 %vm92_vm0, %v39_v50 }
  0x36   :  { %2967 = vmatprep.mubr.msk.f32.mxu1 %vm92_vm0, %v71_v51 }
  0x38   :  { %2920 = vmatmul.mubr.msk.f32.gmra.mrb[22].mxu0 %vm92_vm0, %v40_v52 }
  0x39   :  { %2968 = vmatmul.mubr.msk.f32.gmra.mrb[22].mxu1 %vm92_vm0, %v72_v53  ;;  %2922 = vmatprep.mubr.msk.f32.mxu0 %vm92_vm0, %v41_v54 }
  0x3a   :  { %2970 = vmatprep.mubr.msk.f32.mxu1 %vm92_vm0, %v73_v55 }
  0x3c   :  { %2923 = vmatmul.mubr.msk.f32.gmra.mrb[24].mxu0 %vm92_vm0, %v42_v56 }
  0x3d   :  { %2971 = vmatmul.mubr.msk.f32.gmra.mrb[24].mxu1 %vm92_vm0, %v74_v57  ;;  %2925 = vmatprep.mubr.msk.f32.mxu0 %vm92_vm0, %v43_v58 }
  0x3e   :  { %2973 = vmatprep.mubr.msk.f32.mxu1 %vm92_vm0, %v75_v59 }
  0x40   :  { %2926 = vmatmul.mubr.msk.f32.gmra.mrb[26].mxu0 %vm92_vm0, %v44_v60 }
  0x41   :  { %2974 = vmatmul.mubr.msk.f32.gmra.mrb[26].mxu1 %vm92_vm0, %v76_v61  ;;  %2928 = vmatprep.mubr.msk.f32.mxu0 %vm92_vm0, %v45_v62 }
  0x42   :  { %2976 = vmatprep.mubr.msk.f32.mxu1 %vm92_vm0, %v77_v63 }
  0x44   :  { %2929 = vmatmul.mubr.msk.f32.gmra.mrb[28].mxu0 %vm92_vm0, %v46_v0 }
  0x45   :  { %2977 = vmatmul.mubr.msk.f32.gmra.mrb[28].mxu1 %vm92_vm0, %v78_v1  ;;  %2931 = vmatprep.mubr.msk.f32.mxu0 %vm92_vm0, %v47_v2 }
  0x46   :  { %2979 = vmatprep.mubr.msk.f32.mxu1 %vm92_vm0, %v79_v3 }
  0x48   :  { %2932 = vmatmul.mubr.msk.f32.gmra.mrb[30].mxu0 %vm92_vm0, %v48_v4 }
  0x49   :  { %2980 = vmatmul.mubr.msk.f32.gmra.mrb[30].mxu1 %vm92_vm0, %v80_v5 }
  0xdf   :  { %v2888_v7 = vpop.f32.mrb[0].mxu0 }
  0xe0   :  { %v2936_v8 = vpop.f32.mrb[0].mxu1  ;;  %v357_v9 = vadd.f32 %v2888_v7, %v3610_v6  ;;  %v351_v11 = vpop.f32.mrb[1].mxu0 }
  0xe1   :  { %v517_v10 = vadd.f32 %v2936_v8, %v3610_v6  ;;  %v511_v12 = vpop.f32.mrb[1].mxu1  ;;  %v352_v13 = vadd.f32 %v3610_v6, %v351_v11 }
  0xe2   :  { %v512_v14 = vadd.f32 %v3610_v6, %v511_v12  ;;  %v671_v16 = vmax.f32 %v357_v9, 0.0 }
  0xe3   :  { %v703_v17 = vmax.f32 %v517_v10, 0.0  ;;  %v670_v18 = vmax.f32 %v352_v13, 0.0  ;;  %v2891_v19 = vpop.f32.mrb[2].mxu0 }
  0xe4   :  { %v2939_v20 = vpop.f32.mrb[2].mxu1  ;;  %v361_v21 = vpop.f32.mrb[3].mxu0  ;;  %v742_v24 = vmul.f32 %v3619_v15, %v671_v16  ;;  %v702_v25 = vmax.f32 %v512_v14, 0.0  ;;  %v367_v26 = vadd.f32 %v2891_v19, %v3610_v6 }
  0xe5   :  { %v774_v22 = vmul.f32 %v3619_v15, %v703_v17  ;;  %v521_v23 = vpop.f32.mrb[3].mxu1  ;;  %v741_v29 = vmul.f32 %v3619_v15, %v670_v18  ;;  %v527_v34 = vadd.f32 %v2939_v20, %v3610_v6  ;;  %v362_v43 = vadd.f32 %v3610_v6, %v361_v21 }
  0xe6   :  { %v808_v28 = vsel %vm92_vm0, %v742_v24, 0.0  ;;  %v673_v35 = vmax.f32 %v367_v26, 0.0  ;;  %v773_v37 = vmul.f32 %v3619_v15, %v702_v25  ;;  %v522_v45 = vadd.f32 %v3610_v6, %v521_v23 }
  0xe7   :  { %v904_v27 = vsel %vm92_vm0, %v774_v22, 0.0  ;;  %809 = vadd.xlane.f32.xlu0 %v808_v28  ;;  %v2894_v30 = vpop.f32.mrb[4].mxu0  ;;  %v805_v36 = vsel %vm92_vm0, %v741_v29, 0.0  ;;  %v705_v44 = vmax.f32 %v527_v34, 0.0  ;;  %v672_v60 = vmax.f32 %v362_v43, 0.0 }
  0xe8   :  { %905 = vadd.xlane.f32.xlu1 %v904_v27  ;;  %v2942_v31 = vpop.f32.mrb[4].mxu1  ;;  %v371_v32 = vpop.f32.mrb[5].mxu0  ;;  %v901_v47 = vsel %vm92_vm0, %v773_v37, 0.0  ;;  %v744_v48 = vmul.f32 %v3619_v15, %v673_v35  ;;  %v377_v49 = vadd.f32 %v2894_v30, %v3610_v6  ;;  %v704_v61 = vmax.f32 %v522_v45, 0.0 }
  0xe9   :  { %v531_v33 = vpop.f32.mrb[5].mxu1  ;;  %v372_v50 = vadd.f32 %v3610_v6, %v371_v32  ;;  %v537_v51 = vadd.f32 %v2942_v31, %v3610_v6  ;;  %v776_v63 = vmul.f32 %v3619_v15, %v705_v44  ;;  %v743_v20 = vmul.f32 %v3619_v15, %v672_v60 }
  0xea   :  { %v532_v54 = vadd.f32 %v3610_v6, %v531_v33  ;;  %v814_v3 = vsel %vm92_vm0, %v744_v48, 0.0  ;;  %v675_v4 = vmax.f32 %v377_v49, 0.0  ;;  %v775_v24 = vmul.f32 %v3619_v15, %v704_v61 }
  0xeb   :  { %v2897_v38 = vpop.f32.mrb[6].mxu0  ;;  %806 = vadd.xlane.f32.xlu0 %v805_v36  ;;  %v674_v5 = vmax.f32 %v372_v50, 0.0  ;;  %v707_v7 = vmax.f32 %v537_v51, 0.0  ;;  %v910_v23 = vsel %vm92_vm0, %v776_v63, 0.0 }
  0xec   :  { %v2945_v39 = vpop.f32.mrb[6].mxu1  ;;  %v381_v40 = vpop.f32.mrb[7].mxu0  ;;  %v387_v62 = vadd.f32 %v2897_v38, %v3610_v6  ;;  %v706_v11 = vmax.f32 %v532_v54, 0.0  ;;  %v746_v27 = vmul.f32 %v3619_v15, %v675_v4 }
  0xed   :  { %v547_v41 = vadd.f32 %v2945_v39, %v3610_v6  ;;  %v541_v42 = vpop.f32.mrb[7].mxu1  ;;  %v382_v8 = vadd.f32 %v3610_v6, %v381_v40  ;;  %v778_v28 = vmul.f32 %v3619_v15, %v707_v7  ;;  %v745_v34 = vmul.f32 %v3619_v15, %v674_v5 }
  0xee   :  { %v677_v18 = vmax.f32 %v387_v62, 0.0  ;;  %v542_v19 = vadd.f32 %v3610_v6, %v541_v42  ;;  %v777_v36 = vmul.f32 %v3619_v15, %v706_v11  ;;  %v811_v40 = vsel %vm92_vm0, %v743_v20, 0.0 }
  0xef   :  { %v709_v46 = vmax.f32 %v547_v41, 0.0  ;;  %v2900_v52 = vpop.f32.mrb[8].mxu0  ;;  %902 = vadd.xlane.f32.xlu0 %v901_v47  ;;  %v676_v25 = vmax.f32 %v382_v8, 0.0  ;;  %v907_v42 = vsel %vm92_vm0, %v775_v24, 0.0  ;;  %v820_v44 = vsel %vm92_vm0, %v746_v27, 0.0 }
  0xf0   :  { %v2948_v53 = vpop.f32.mrb[8].mxu1  ;;  %v397_v55 = vadd.f32 %v2900_v52, %v3610_v6  ;;  %v391_v56 = vpop.f32.mrb[9].mxu0  ;;  %v708_v37 = vmax.f32 %v542_v19, 0.0  ;;  %v748_v38 = vmul.f32 %v3619_v15, %v677_v18  ;;  %v916_v45 = vsel %vm92_vm0, %v778_v28, 0.0 }
  0xf1   :  { %v557_v57 = vadd.f32 %v2948_v53, %v3610_v6  ;;  %v551_v58 = vpop.f32.mrb[9].mxu1  ;;  %v3642_v59 = vmul.f32 %v3619_v15, %v709_v46  ;;  %v392_v1 = vadd.f32 %v3610_v6, %v391_v56  ;;  %v747_v46 = vmul.f32 %v3619_v15, %v676_v25 }
  0xf2   :  { %v679_v0 = vmax.f32 %v397_v55, 0.0  ;;  %v552_v39 = vadd.f32 %v3610_v6, %v551_v58  ;;  %v3683_v50 = vsel %vm92_vm0, %v745_v34, 0.0  ;;  %v3686_v51 = vsel %vm92_vm0, %v777_v36, 0.0 }
  0xf3   :  { %v711_v2 = vmax.f32 %v557_v57, 0.0  ;;  %815 = vadd.xlane.f32.xlu0 %v814_v3  ;;  %v2903_v9 = vpop.f32.mrb[10].mxu0  ;;  %v678_v21 = vmax.f32 %v392_v1, 0.0  ;;  %v3690_v55 = vsel %vm92_vm0, %v748_v38, 0.0  ;;  %v779_v57 = vmul.f32 %v3619_v15, %v708_v37 }
  0xf4   :  { %v2951_v10 = vpop.f32.mrb[10].mxu1  ;;  %v750_v12 = vmul.f32 %v3619_v15, %v679_v0  ;;  %v407_v13 = vadd.f32 %v2903_v9, %v3610_v6  ;;  %v401_v16 = vpop.f32.mrb[11].mxu0  ;;  %v710_v60 = vmax.f32 %v552_v39, 0.0  ;;  %v3699_v1 = vsel %vm92_vm0, %v747_v46, 0.0 }
  0xf5   :  { %v782_v14 = vmul.f32 %v3619_v15, %v711_v2  ;;  %v3652_v17 = vpop.f32.mrb[11].mxu1  ;;  %v567_v26 = vadd.f32 %v2951_v10, %v3610_v6  ;;  %v749_v41 = vmul.f32 %v3619_v15, %v678_v21  ;;  %v402_v61 = vadd.f32 %v3610_v6, %v401_v16 }
  0xf6   :  { %v832_v22 = vsel %vm92_vm0, %v750_v12, 0.0  ;;  %v681_v31 = vmax.f32 %v407_v13, 0.0  ;;  %v562_v13 = vadd.f32 %v3610_v6, %v3652_v17  ;;  %v3719_v21 = vsel %vm92_vm0, %v779_v57, 0.0 }
  0xf7   :  { %833 = vadd.xlane.f32.xlu1 %v832_v22  ;;  %911 = vadd.xlane.f32.xlu0 %v910_v23  ;;  %v2906_v29 = vpop.f32.mrb[12].mxu0  ;;  %v928_v32 = vsel %vm92_vm0, %v782_v14, 0.0  ;;  %v713_v43 = vmax.f32 %v567_v26, 0.0  ;;  %v829_v62 = vsel %vm92_vm0, %v749_v41, 0.0  ;;  %v680_v19 = vmax.f32 %v402_v61, 0.0 }
  0xf8   :  { %v3662_v30 = vpop.f32.mrb[12].mxu1  ;;  %v3665_v33 = vpop.f32.mrb[13].mxu0  ;;  %v752_v49 = vmul.f32 %v3619_v15, %v681_v31  ;;  %v417_v17 = vadd.f32 %v2906_v29, %v3610_v6  ;;  %v3724_v25 = vmul.f32 %v3619_v15, %v710_v60  ;;  %v712_v38 = vmax.f32 %v562_v13, 0.0 }
  0xf9   :  { %v3668_v35 = vpop.f32.mrb[13].mxu1  ;;  %v784_v0 = vmul.f32 %v3619_v15, %v713_v43  ;;  %v751_v41 = vmul.f32 %v3619_v15, %v680_v19 }
  0xfa   :  { %v838_v7 = vsel %vm92_vm0, %v752_v49, 0.0  ;;  %v683_v46 = vmax.f32 %v417_v17, 0.0 }
  0xfb   :  { %929 = vadd.xlane.f32.xlu1 %v928_v32  ;;  %812 = vadd.xlane.f32.xlu0 %v811_v40  ;;  %v3679_v47 = vpop.f32.mrb[14].mxu0  ;;  %v934_v23 = vsel %vm92_vm0, %v784_v0, 0.0  ;;  %v835_v0 = vsel %vm92_vm0, %v751_v41, 0.0 }
  0xfc   :  { %v2957_v48 = vpop.f32.mrb[14].mxu1  ;;  %v421_v52 = vpop.f32.mrb[15].mxu0 }
  0xfd   :  { %v587_v53 = vadd.f32 %v2957_v48, %v3610_v6  ;;  %v581_v54 = vpop.f32.mrb[15].mxu1  ;;  %v422_v56 = vadd.f32 %v3610_v6, %v421_v52  ;;  %v3744_v48 = vadd.f32 %v3610_v6, %v3665_v33 }
  0xfe   :  { %v582_v58 = vadd.f32 %v3610_v6, %v581_v54 }
  0xff   :  { %v717_v63 = vmax.f32 %v587_v53, 0.0  ;;  %830 = vadd.xlane.f32.xlu1 %v829_v62  ;;  %908 = vadd.xlane.f32.xlu0 %v907_v42  ;;  %v684_v2 = vmax.f32 %v422_v56, 0.0  ;;  %v2912_v3 = vpop.f32.mrb[16].mxu0  ;;  %v577_v42 = vadd.f32 %v3662_v30, %v3610_v6 }
 0x100   :  { %v716_v4 = vmax.f32 %v582_v58, 0.0  ;;  %v2960_v5 = vpop.f32.mrb[16].mxu1  ;;  %v437_v8 = vadd.f32 %v2912_v3, %v3610_v6  ;;  %v3703_v9 = vpop.f32.mrb[17].mxu0 }
 0x101   :  { %v597_v10 = vadd.f32 %v2960_v5, %v3610_v6  ;;  %v591_v11 = vpop.f32.mrb[17].mxu1  ;;  %v3707_v12 = vmul.f32 %v3619_v15, %v717_v63  ;;  %v3713_v16 = vmul.f32 %v3619_v15, %v684_v2  ;;  %v783_v2 = vmul.f32 %v3619_v15, %v712_v38 }
 0x102   :  { %v592_v14 = vadd.f32 %v3610_v6, %v591_v11  ;;  %v3716_v18 = vmul.f32 %v3619_v15, %v716_v4  ;;  %v687_v20 = vmax.f32 %v437_v8, 0.0  ;;  %v715_v5 = vmax.f32 %v577_v42, 0.0 }
 0x103   :  { %v719_v22 = vmax.f32 %v597_v10, 0.0  ;;  %839 = vadd.xlane.f32.xlu1 %v838_v7  ;;  %821 = vadd.xlane.f32.xlu0 %v820_v44  ;;  %v2915_v26 = vpop.f32.mrb[18].mxu0  ;;  %v754_v7 = vmul.f32 %v3619_v15, %v683_v46 }
 0x104   :  { %v718_v24 = vmax.f32 %v592_v14, 0.0  ;;  %v2963_v27 = vpop.f32.mrb[18].mxu1  ;;  %v447_v28 = vadd.f32 %v2915_v26, %v3610_v6  ;;  %v441_v31 = vpop.f32.mrb[19].mxu0  ;;  %v3729_v36 = vmul.f32 %v3619_v15, %v687_v20 }
 0x105   :  { %v607_v32 = vadd.f32 %v2963_v27, %v3610_v6  ;;  %v601_v34 = vpop.f32.mrb[19].mxu1  ;;  %v3732_v37 = vmul.f32 %v3619_v15, %v719_v22  ;;  %v442_v29 = vadd.f32 %v3610_v6, %v441_v31  ;;  %v931_v31 = vsel %vm92_vm0, %v783_v2, 0.0 }
 0x106   :  { %v602_v39 = vadd.f32 %v3610_v6, %v601_v34  ;;  %v3737_v40 = vmul.f32 %v3619_v15, %v718_v24  ;;  %v689_v43 = vmax.f32 %v447_v28, 0.0  ;;  %v3784_v28 = vadd.f32 %v3610_v6, %v3668_v35 }
 0x107   :  { %v721_v44 = vmax.f32 %v607_v32, 0.0  ;;  %935 = vadd.xlane.f32.xlu1 %v934_v23  ;;  %917 = vadd.xlane.f32.xlu0 %v916_v45  ;;  %v688_v49 = vmax.f32 %v442_v29, 0.0  ;;  %v2918_v52 = vpop.f32.mrb[20].mxu0  ;;  %v844_v38 = vsel %vm92_vm0, %v754_v7, 0.0  ;;  %v786_v29 = vmul.f32 %v3619_v15, %v715_v5 }
 0x108   :  { %v720_v53 = vmax.f32 %v602_v39, 0.0  ;;  %v2966_v54 = vpop.f32.mrb[20].mxu1  ;;  %v457_v56 = vadd.f32 %v2918_v52, %v3610_v6  ;;  %v451_v57 = vpop.f32.mrb[21].mxu0  ;;  %v3749_v30 = vmul.f32 %v3619_v15, %v689_v43  ;;  %v432_v2 = vadd.f32 %v3610_v6, %v3703_v9 }
 0x109   :  { %v617_v58 = vadd.f32 %v2966_v54, %v3610_v6  ;;  %v611_v60 = vpop.f32.mrb[21].mxu1  ;;  %v3752_v45 = vmul.f32 %v3619_v15, %v721_v44  ;;  %v452_v61 = vadd.f32 %v3610_v6, %v451_v57  ;;  %v3757_v62 = vmul.f32 %v3619_v15, %v688_v49 }
 0x10a   :  { %v612_v33 = vadd.f32 %v3610_v6, %v611_v60  ;;  %v3760_v63 = vmul.f32 %v3619_v15, %v720_v53  ;;  %v691_v3 = vmax.f32 %v457_v56, 0.0  ;;  %v427_v60 = vadd.f32 %v3679_v47, %v3610_v6 }
 0x10b   :  { %v723_v4 = vmax.f32 %v617_v58, 0.0  ;;  %836 = vadd.xlane.f32.xlu1 %v835_v0  ;;  %818 = vadd.xlane.f32.xlu0 %v3683_v50  ;;  %v690_v8 = vmax.f32 %v452_v61, 0.0  ;;  %v2921_v10 = vpop.f32.mrb[22].mxu0  ;;  %v682_v58 = vmax.f32 %v3744_v48, 0.0  ;;  %v940_v0 = vsel %vm92_vm0, %v786_v29, 0.0 }
 0x10c   :  { %v722_v11 = vmax.f32 %v612_v33, 0.0  ;;  %v2969_v13 = vpop.f32.mrb[22].mxu1  ;;  %v467_v14 = vadd.f32 %v2921_v10, %v3610_v6  ;;  %v461_v19 = vpop.f32.mrb[23].mxu0  ;;  %v3769_v23 = vmul.f32 %v3619_v15, %v691_v3 }
 0x10d   :  { %v627_v20 = vadd.f32 %v2969_v13, %v3610_v6  ;;  %v621_v22 = vpop.f32.mrb[23].mxu1  ;;  %v3772_v17 = vmul.f32 %v3619_v15, %v723_v4  ;;  %v462_v50 = vadd.f32 %v3610_v6, %v461_v19  ;;  %v3777_v26 = vmul.f32 %v3619_v15, %v690_v8 }
 0x10e   :  { %v622_v24 = vadd.f32 %v3610_v6, %v621_v22  ;;  %v3780_v27 = vmul.f32 %v3619_v15, %v722_v11  ;;  %v693_v32 = vmax.f32 %v467_v14, 0.0  ;;  %v753_v22 = vmul.f32 %v3619_v15, %v682_v58 }
 0x10f   :  { %v725_v34 = vmax.f32 %v627_v20, 0.0  ;;  %932 = vadd.xlane.f32.xlu1 %v931_v31  ;;  %914 = vadd.xlane.f32.xlu0 %v3686_v51  ;;  %v692_v39 = vmax.f32 %v462_v50, 0.0  ;;  %v2924_v41 = vpop.f32.mrb[24].mxu0  ;;  %v714_v20 = vmax.f32 %v3784_v28, 0.0  ;;  %v685_v31 = vmax.f32 %v427_v60, 0.0 }
 0x110   :  { %v724_v42 = vmax.f32 %v622_v24, 0.0  ;;  %v2972_v43 = vpop.f32.mrb[24].mxu1  ;;  %v477_v44 = vadd.f32 %v2924_v41, %v3610_v6  ;;  %v471_v46 = vpop.f32.mrb[25].mxu0  ;;  %v3793_v52 = vmul.f32 %v3619_v15, %v693_v32  ;;  %v686_v32 = vmax.f32 %v432_v2, 0.0 }
 0x111   :  { %v637_v35 = vadd.f32 %v2972_v43, %v3610_v6  ;;  %v631_v49 = vpop.f32.mrb[25].mxu1  ;;  %v3796_v53 = vmul.f32 %v3619_v15, %v725_v34  ;;  %v472_v51 = vadd.f32 %v3610_v6, %v471_v46  ;;  %v3801_v56 = vmul.f32 %v3619_v15, %v692_v39 }
 0x112   :  { %v632_v54 = vadd.f32 %v3610_v6, %v631_v49  ;;  %v3804_v57 = vmul.f32 %v3619_v15, %v724_v42  ;;  %v695_v61 = vmax.f32 %v477_v44, 0.0  ;;  %v785_v58 = vmul.f32 %v3619_v15, %v714_v20 }
 0x113   :  { %v727_v33 = vmax.f32 %v637_v35, 0.0  ;;  %845 = vadd.xlane.f32.xlu1 %v844_v38  ;;  %827 = vadd.xlane.f32.xlu0 %v3690_v55  ;;  %v694_v3 = vmax.f32 %v472_v51, 0.0  ;;  %v2927_v5 = vpop.f32.mrb[26].mxu0 }
 0x114   :  { %v726_v4 = vmax.f32 %v632_v54, 0.0  ;;  %v2975_v7 = vpop.f32.mrb[26].mxu1  ;;  %v3814_v8 = vmul.f32 %v3619_v15, %v695_v61  ;;  %v487_v48 = vadd.f32 %v2927_v5, %v3610_v6  ;;  %v481_v47 = vpop.f32.mrb[27].mxu0  ;;  %v841_v54 = vsel %vm92_vm0, %v753_v22, 0.0 }
 0x115   :  { %v3818_v10 = vmul.f32 %v3619_v15, %v727_v33  ;;  %v647_v55 = vadd.f32 %v2975_v7, %v3610_v6  ;;  %v641_v11 = vpop.f32.mrb[27].mxu1  ;;  %v482_v13 = vadd.f32 %v3610_v6, %v481_v47  ;;  %v3824_v14 = vmul.f32 %v3619_v15, %v694_v3 }
 0x116   :  { %v642_v9 = vadd.f32 %v3610_v6, %v641_v11  ;;  %v3827_v19 = vmul.f32 %v3619_v15, %v726_v4  ;;  %v697_v50 = vmax.f32 %v487_v48, 0.0  ;;  %v756_v33 = vmul.f32 %v3619_v15, %v685_v31 }
 0x117   :  { %v729_v24 = vmax.f32 %v647_v55, 0.0  ;;  %941 = vadd.xlane.f32.xlu1 %v940_v0  ;;  %824 = vadd.xlane.f32.xlu0 %v3699_v1  ;;  %v696_v34 = vmax.f32 %v482_v13, 0.0  ;;  %v2930_v29 = vpop.f32.mrb[28].mxu0  ;;  %v757_v0 = vmul.f32 %v3619_v15, %v686_v32 }
 0x118   :  { %v728_v38 = vmax.f32 %v642_v9, 0.0  ;;  %v2978_v39 = vpop.f32.mrb[28].mxu1  ;;  %v3833_v41 = vmul.f32 %v3619_v15, %v697_v50  ;;  %v497_v28 = vadd.f32 %v2930_v29, %v3610_v6  ;;  %v491_v43 = vpop.f32.mrb[29].mxu0  ;;  %v937_v50 = vsel %vm92_vm0, %v785_v58, 0.0 }
 0x119   :  { %v3836_v42 = vmul.f32 %v3619_v15, %v729_v24  ;;  %v657_v44 = vadd.f32 %v2978_v39, %v3610_v6  ;;  %v651_v46 = vpop.f32.mrb[29].mxu1  ;;  %v492_v1 = vadd.f32 %v3610_v6, %v491_v43  ;;  %v3842_v35 = vmul.f32 %v3619_v15, %v696_v34 }
 0x11a   :  { %v652_v49 = vadd.f32 %v3610_v6, %v651_v46  ;;  %v3846_v51 = vmul.f32 %v3619_v15, %v728_v38  ;;  %v699_v60 = vmax.f32 %v497_v28, 0.0  ;;  %v925_v24 = vsel %vm92_vm0, %v3724_v25, 0.0 }
 0x11b   :  { %v731_v61 = vmax.f32 %v657_v44, 0.0  ;;  %842 = vadd.xlane.f32.xlu1 %v841_v54  ;;  %920 = vadd.xlane.f32.xlu0 %v3719_v21  ;;  %v698_v2 = vmax.f32 %v492_v1, 0.0  ;;  %v2933_v4 = vpop.f32.mrb[30].mxu0  ;;  %v850_v29 = vsel %vm92_vm0, %v756_v33, 0.0  ;;  %v853_v39 = vsel %vm92_vm0, %v757_v0, 0.0 }
 0x11c   :  { %v730_v3 = vmax.f32 %v652_v49, 0.0  ;;  %v2981_v5 = vpop.f32.mrb[30].mxu1  ;;  %v3854_v7 = vmul.f32 %v3619_v15, %v699_v60  ;;  %v507_v47 = vadd.f32 %v2933_v4, %v3610_v6  ;;  %v501_v55 = vpop.f32.mrb[31].mxu0  ;;  %v949_v44 = vsel %vm92_vm0, %v3737_v40, 0.0 }
 0x11d   :  { %v3857_v48 = vmul.f32 %v3619_v15, %v731_v61  ;;  %v667_v11 = vadd.f32 %v2981_v5, %v3610_v6  ;;  %v661_v21 = vpop.f32.mrb[31].mxu1  ;;  %v502_v13 = vadd.f32 %v3610_v6, %v501_v55  ;;  %v3863_v9 = vmul.f32 %v3619_v15, %v698_v2 }
 0x11e   :  { %v3866_v20 = vmul.f32 %v3619_v15, %v730_v3  ;;  %v662_v22 = vadd.f32 %v3610_v6, %v661_v21  ;;  %v701_v31 = vmax.f32 %v507_v47, 0.0  ;;  %v847_v46 = vsel %vm92_vm0, %v3713_v16, 0.0 }
 0x11f   :  { %v733_v32 = vmax.f32 %v667_v11, 0.0  ;;  %938 = vadd.xlane.f32.xlu1 %v937_v50  ;;  %926 = vadd.xlane.f32.xlu0 %v925_v24  ;;  %v700_v34 = vmax.f32 %v502_v13, 0.0  ;;  %v862_v1 = vsel %vm92_vm0, %v3749_v30, 0.0  ;;  %v943_v49 = vsel %vm92_vm0, %v3716_v18, 0.0 }
 0x120   :  { %v732_v38 = vmax.f32 %v662_v22, 0.0  ;;  %v3875_v28 = vmul.f32 %v3619_v15, %v701_v31  ;;  %v856_v54 = vsel %vm92_vm0, %v3729_v36, 0.0  ;;  %v952_v16 = vsel %vm92_vm0, %v3732_v37, 0.0 }
 0x121   :  { %v3878_v6 = vmul.f32 %v3619_v15, %v733_v32  ;;  %v3881_v43 = vmul.f32 %v3619_v15, %v700_v34  ;;  %v859_v40 = vsel %vm92_vm0, %v3757_v62, 0.0  ;;  %v880_v18 = vsel %vm92_vm0, %v3814_v8, 0.0 }
 0x122   :  { %v3884_v25 = vmul.f32 %v3619_v15, %v732_v38  ;;  %v958_v15 = vsel %vm92_vm0, %v3752_v45, 0.0  ;;  %v955_v30 = vsel %vm92_vm0, %v3760_v63, 0.0  ;;  %v976_v36 = vsel %vm92_vm0, %v3818_v10, 0.0 }
 0x123   :  { %851 = vadd.xlane.f32.xlu1 %v850_v29  ;;  %854 = vadd.xlane.f32.xlu0 %v853_v39  ;;  %v868_v45 = vsel %vm92_vm0, %v3769_v23, 0.0  ;;  %v946_v37 = vsel %vm92_vm0, %v3707_v12, 0.0  ;;  %v964_v62 = vsel %vm92_vm0, %v3772_v17, 0.0  ;;  %v886_v63 = vsel %vm92_vm0, %v3833_v41, 0.0 }
 0x124   :  { %v865_v8 = vsel %vm92_vm0, %v3777_v26, 0.0  ;;  %v982_v23 = vsel %vm92_vm0, %v3836_v42, 0.0  ;;  %v961_v10 = vsel %vm92_vm0, %v3780_v27, 0.0  ;;  %v883_v12 = vsel %vm92_vm0, %v3842_v35, 0.0 }
 0x125   :  { %v874_v17 = vsel %vm92_vm0, %v3793_v52, 0.0  ;;  %v979_v26 = vsel %vm92_vm0, %v3846_v51, 0.0  ;;  %v871_v41 = vsel %vm92_vm0, %v3801_v56, 0.0  ;;  %v892_v27 = vsel %vm92_vm0, %v3854_v7, 0.0 }
 0x126   :  { %v967_v42 = vsel %vm92_vm0, %v3804_v57, 0.0  ;;  %v988_v52 = vsel %vm92_vm0, %v3857_v48, 0.0  ;;  %v877_v35 = vsel %vm92_vm0, %v3824_v14, 0.0  ;;  %v889_v56 = vsel %vm92_vm0, %v3863_v9, 0.0 }
 0x127   :  { %848 = vadd.xlane.f32.xlu1 %v847_v46  ;;  %950 = vadd.xlane.f32.xlu0 %v949_v44  ;;  %v973_v51 = vsel %vm92_vm0, %v3827_v19, 0.0  ;;  %v985_v57 = vsel %vm92_vm0, %v3866_v20, 0.0  ;;  %v922_v58 = vsel %vm92_vm0, %v3642_v59, 0.0  ;;  %v898_v14 = vsel %vm92_vm0, %v3875_v28, 0.0 }
 0x128   :  { %v970_v60 = vsel %vm92_vm0, %v3796_v53, 0.0  ;;  %v895_v19 = vsel %vm92_vm0, %v3881_v43, 0.0  ;;  %v991_v61 = vsel %vm92_vm0, %v3884_v25, 0.0  ;;  %v994_v59 = vsel %vm92_vm0, %v3878_v6, 0.0 }
 0x12b   :  { %944 = vadd.xlane.f32.xlu1 %v943_v49  ;;  %863 = vadd.xlane.f32.xlu0 %v862_v1 }
 0x12f   :  { %857 = vadd.xlane.f32.xlu1 %v856_v54  ;;  %959 = vadd.xlane.f32.xlu0 %v958_v15 }
 0x133   :  { %953 = vadd.xlane.f32.xlu1 %v952_v16  ;;  %860 = vadd.xlane.f32.xlu0 %v859_v40 }
 0x137   :  { %881 = vadd.xlane.f32.xlu1 %v880_v18  ;;  %956 = vadd.xlane.f32.xlu0 %v955_v30 }
 0x13b   :  { %977 = vadd.xlane.f32.xlu1 %v976_v36  ;;  %869 = vadd.xlane.f32.xlu0 %v868_v45 }
 0x13f   :  { %947 = vadd.xlane.f32.xlu1 %v946_v37  ;;  %965 = vadd.xlane.f32.xlu0 %v964_v62 }
 0x143   :  { %887 = vadd.xlane.f32.xlu1 %v886_v63  ;;  %866 = vadd.xlane.f32.xlu0 %v865_v8 }
 0x147   :  { %983 = vadd.xlane.f32.xlu1 %v982_v23  ;;  %962 = vadd.xlane.f32.xlu0 %v961_v10 }
 0x14b   :  { %884 = vadd.xlane.f32.xlu1 %v883_v12  ;;  %875 = vadd.xlane.f32.xlu0 %v874_v17 }
 0x14f   :  { %980 = vadd.xlane.f32.xlu1 %v979_v26  ;;  %872 = vadd.xlane.f32.xlu0 %v871_v41 }
 0x153   :  { %893 = vadd.xlane.f32.xlu1 %v892_v27  ;;  %968 = vadd.xlane.f32.xlu0 %v967_v42 }
 0x157   :  { %989 = vadd.xlane.f32.xlu1 %v988_v52  ;;  %878 = vadd.xlane.f32.xlu0 %v877_v35 }
 0x15b   :  { %890 = vadd.xlane.f32.xlu1 %v889_v56  ;;  %974 = vadd.xlane.f32.xlu0 %v973_v51 }
 0x15f   :  { %986 = vadd.xlane.f32.xlu1 %v985_v57  ;;  %923 = vadd.xlane.f32.xlu0 %v922_v58 }
 0x163   :  { %899 = vadd.xlane.f32.xlu1 %v898_v14  ;;  %971 = vadd.xlane.f32.xlu0 %v970_v60 }
 0x167   :  { %896 = vadd.xlane.f32.xlu1 %v895_v19 }
 0x16b   :  { %992 = vadd.xlane.f32.xlu1 %v991_v61 }
 0x16f   :  { %995 = vadd.xlane.f32.xlu1 %v994_v59 }
 0x174   :  { %v810_v0 = vpop.xlane.xlu0 %809 }
 0x175   :  { %v906_v33 = vpop.xlane.xlu1 %905  ;;  %v1003_v3 = vrot.slane %v810_v0, 4 }
 0x176   :  { %v1195_v2 = vrot.slane %v906_v33, 4 }
 0x177   :  { %v1004_v53 = vmax.f32 %v810_v0, %v1003_v3 }
 0x178   :  { %v1196_v4 = vmax.f32 %v906_v33, %v1195_v2  ;;  %v807_v5 = vpop.xlane.xlu0 %806 }
 0x179   :  { %v1005_v48 = vrot.slane %v1004_v53, 2  ;;  %v997_v47 = vrot.slane %v807_v5, 4 }
 0x17a   :  { %v1197_v7 = vrot.slane %v1196_v4, 2 }
 0x17b   :  { %v1006_v11 = vmax.f32 %v1004_v53, %v1005_v48  ;;  %v998_v21 = vmax.f32 %v807_v5, %v997_v47 }
 0x17c   :  { %v1198_v55 = vmax.f32 %v1196_v4, %v1197_v7  ;;  %v903_v13 = vpop.xlane.xlu0 %902 }
 0x17d   :  { %v1007_v20 = vrot.slane %v1006_v11, 1  ;;  %v999_v22 = vrot.slane %v998_v21, 2  ;;  %v1189_v50 = vrot.slane %v903_v13, 4 }
 0x17e   :  { %v1199_v9 = vrot.slane %v1198_v55, 1 }
 0x17f   :  { %v1008_v31 = vmax.f32 %v1006_v11, %v1007_v20  ;;  %v1000_v32 = vmax.f32 %v998_v21, %v999_v22  ;;  %v1190_v34 = vmax.f32 %v903_v13, %v1189_v50 }
 0x180   :  { %v1200_v24 = vmax.f32 %v1198_v55, %v1199_v9  ;;  %v3956_v38 = vpop.xlane.xlu0 %815 }
 0x181   :  { %v1382_v39 = vsub.f32 %v810_v0, %v1008_v31  ;;  %v1001_v28 = vrot.slane %v1000_v32, 1  ;;  %v1191_v6 = vrot.slane %v1190_v34, 2  ;;  %v1015_v43 = vrot.slane %v3956_v38, 4 }
 0x182   :  { %v1414_v29 = vsub.f32 %v906_v33, %v1200_v24 }
 0x183   :  { %v1447_v44 = vmul.f32 1.442695, %v1382_v39  ;;  %v1002_v46 = vmax.f32 %v1000_v32, %v1001_v28  ;;  %v1192_v1 = vmax.f32 %v1190_v34, %v1191_v6  ;;  %v1016_v49 = vmax.f32 %v3956_v38, %v1015_v43 }
 0x184   :  { %v1511_v25 = vmul.f32 1.442695, %v1414_v29  ;;  %v3960_v15 = vpop.xlane.xlu1 %833  ;;  %v912_v54 = vpop.xlane.xlu0 %911 }
 0x185   :  { %v1381_v16 = vsub.f32 %v807_v5, %v1002_v46  ;;  %v1193_v40 = vrot.slane %v1192_v1, 1  ;;  %v1051_v18 = vrot.slane %v3960_v15, 4  ;;  %v1017_v30 = vrot.slane %v1016_v49, 2 }
 0x186   :  { %2994 = vpow2.f32 %v1511_v25  ;;  %v1207_v36 = vrot.slane %v912_v54, 4 }
 0x187   :  { %2996 = vpow2.f32 %v1447_v44  ;;  %v1445_v45 = vmul.f32 1.442695, %v1381_v16  ;;  %v1194_v37 = vmax.f32 %v1192_v1, %v1193_v40  ;;  %v1052_v62 = vmax.f32 %v3960_v15, %v1051_v18 }
 0x188   :  { %v1018_v63 = vmax.f32 %v1016_v49, %v1017_v30  ;;  %v1208_v8 = vmax.f32 %v912_v54, %v1207_v36  ;;  %v3964_v23 = vpop.xlane.xlu1 %929  ;;  %v3966_v10 = vpop.xlane.xlu0 %812 }
 0x189   :  { %v1413_v12 = vsub.f32 %v903_v13, %v1194_v37  ;;  %v1243_v17 = vrot.slane %v3964_v23, 4  ;;  %2998 = vpow2.f32 %v1445_v45  ;;  %v1053_v26 = vrot.slane %v1052_v62, 2 }
 0x18a   :  { %v1209_v41 = vrot.slane %v1208_v8, 2  ;;  %v1009_v27 = vrot.slane %v3966_v10, 4  ;;  %v1019_v52 = vrot.slane %v1018_v63, 1 }
 0x18b   :  { %v1509_v42 = vmul.f32 1.442695, %v1413_v12  ;;  %v1244_v35 = vmax.f32 %v3964_v23, %v1243_v17  ;;  %v1054_v57 = vmax.f32 %v1052_v62, %v1053_v26 }
 0x18c   :  { %v1210_v56 = vmax.f32 %v1208_v8, %v1209_v41  ;;  %v1010_v51 = vmax.f32 %v3966_v10, %v1009_v27  ;;  %v1020_v19 = vmax.f32 %v1018_v63, %v1019_v52  ;;  %v3977_v2 = vpop.xlane.xlu0 %908  ;;  %v3981_v48 = vpop.xlane.xlu1 %830 }
 0x18d   :  { %3000 = vpow2.f32 %v1509_v42  ;;  %v1245_v14 = vrot.slane %v1244_v35, 2  ;;  %v1055_v53 = vrot.slane %v1054_v57, 1  ;;  %v1201_v11 = vrot.slane %v3977_v2, 4 }
 0x18e   :  { %v1211_v58 = vrot.slane %v1210_v56, 1  ;;  %v1011_v61 = vrot.slane %v1010_v51, 2  ;;  %v1384_v47 = vsub.f32 %v3956_v38, %v1020_v19  ;;  %v1045_v22 = vrot.slane %v3981_v48, 4 }
 0x18f   :  { %v1246_v7 = vmax.f32 %v1244_v35, %v1245_v14  ;;  %v1056_v24 = vmax.f32 %v1054_v57, %v1055_v53  ;;  %v1202_v39 = vmax.f32 %v3977_v2, %v1201_v11 }
 0x190   :  { %v3972_v60 = vpop.eup %2994  ;;  %v1212_v0 = vmax.f32 %v1210_v56, %v1211_v58  ;;  %v1012_v55 = vmax.f32 %v1010_v51, %v1011_v61  ;;  %v1451_v38 = vmul.f32 1.442695, %v1384_v47  ;;  %v1046_v25 = vmax.f32 %v3981_v48, %v1045_v22  ;;  %v3998_v62 = vpop.xlane.xlu0 %821 }
 0x191   :  { %v3974_v59 = vpop.eup %2996  ;;  %v1771_v33 = vrot.slane %v3972_v60, 4  ;;  %v1247_v31 = vrot.slane %v1246_v7, 1  ;;  %v1203_v44 = vrot.slane %v1202_v39, 2  ;;  %v1390_v49 = vsub.f32 %v3960_v15, %v1056_v24  ;;  %v4002_v41 = vpop.xlane.xlu1 %839 }
 0x192   :  { %v1579_v3 = vrot.slane %v3974_v59, 4  ;;  %v1416_v5 = vsub.f32 %v912_v54, %v1212_v0  ;;  %v1013_v29 = vrot.slane %v1012_v55, 1  ;;  %v1047_v45 = vrot.slane %v1046_v25, 2 }
 0x193   :  { %v1772_v4 = vadd.f32 %v3972_v60, %v1771_v33  ;;  %v3985_v21 = vpop.eup %2998  ;;  %v1248_v54 = vmax.f32 %v1246_v7, %v1247_v31  ;;  %v1204_v18 = vmax.f32 %v1202_v39, %v1203_v44  ;;  %v1463_v8 = vmul.f32 1.442695, %v1390_v49 }
 0x194   :  { %v1580_v9 = vadd.f32 %v3974_v59, %v1579_v3  ;;  %v1515_v20 = vmul.f32 1.442695, %v1416_v5  ;;  %v1573_v34 = vrot.slane %v3985_v21, 4  ;;  %v1014_v40 = vmax.f32 %v1012_v55, %v1013_v29 }
 0x195   :  { %v1773_v13 = vrot.slane %v1772_v4, 2  ;;  %v1205_v37 = vrot.slane %v1204_v18, 1  ;;  %v1422_v12 = vsub.f32 %v3964_v23, %v1248_v54  ;;  %v1027_v35 = vrot.slane %v3998_v62, 4 }
 0x196   :  { %3002 = vpow2.f32 %v1515_v20  ;;  %v1581_v6 = vrot.slane %v1580_v9, 2  ;;  %v1574_v16 = vadd.f32 %v3985_v21, %v1573_v34  ;;  %v1383_v15 = vsub.f32 %v3966_v10, %v1014_v40  ;;  %v3250_v20 = vld [vmem:[%s5132_s0 + $0x108] sm:$0xff] }
 0x197   :  { %v1774_v50 = vadd.f32 %v1773_v13, %v1772_v4  ;;  %v3989_v32 = vpop.eup %3000  ;;  %3004 = vpow2.f32 %v1451_v38  ;;  %v1206_v26 = vmax.f32 %v1204_v18, %v1205_v37  ;;  %v1048_v51 = vmax.f32 %v1046_v25, %v1047_v45 }
 0x198   :  { %v1765_v43 = vrot.slane %v3989_v32, 4  ;;  %v1582_v30 = vadd.f32 %v1581_v6, %v1580_v9  ;;  %v1575_v17 = vrot.slane %v1574_v16, 2  ;;  %v1527_v23 = vmul.f32 1.442695, %v1422_v12 }
 0x199   :  { %v1775_v28 = vrot.slane %v1774_v50, 1  ;;  %v1415_v57 = vsub.f32 %v3977_v2, %v1206_v26  ;;  %v1063_v14 = vrot.slane %v4002_v41, 4  ;;  %v1449_v61 = vmul.f32 1.442695, %v1383_v15 }
 0x19a   :  { %v1766_v1 = vadd.f32 %v3989_v32, %v1765_v43  ;;  %v1583_v42 = vrot.slane %v1582_v30, 1  ;;  %v1576_v10 = vadd.f32 %v1575_v17, %v1574_v16  ;;  %v1028_v3 = vmax.f32 %v3998_v62, %v1027_v35 }
 0x19b   :  { %v1776_v46 = vadd.f32 %v1775_v28, %v1774_v50  ;;  %v1513_v33 = vmul.f32 1.442695, %v1415_v57  ;;  %v1049_v5 = vrot.slane %v1048_v51, 1  ;;  %v1064_v7 = vmax.f32 %v4002_v41, %v1063_v14 }
 0x19c   :  { %v1767_v36 = vrot.slane %v1766_v1, 2  ;;  %v1584_v0 = vadd.f32 %v1583_v42, %v1582_v30  ;;  %v1577_v55 = vrot.slane %v1576_v10, 1  ;;  %v1029_v9 = vrot.slane %v1028_v3, 2 }
 0x19d   :  { %3006 = vrcp.f32 %v1776_v46  ;;  %v1050_v24 = vmax.f32 %v1048_v51, %v1049_v5  ;;  %v1065_v31 = vrot.slane %v1064_v7, 2 }
 0x19e   :  { %v1768_v63 = vadd.f32 %v1767_v36, %v1766_v1  ;;  %3008 = vpow2.f32 %v1463_v8  ;;  %v1578_v38 = vadd.f32 %v1577_v55, %v1576_v10  ;;  %v1030_v6 = vmax.f32 %v1028_v3, %v1029_v9 }
 0x19f   :  { %v1389_v43 = vsub.f32 %v3981_v48, %v1050_v24  ;;  %v1066_v46 = vmax.f32 %v1064_v7, %v1065_v31  ;;  %v3251_v48 = vld [vmem:[%s5132_s0 + $0x100] sm:$0xff] }
 0x1a0   :  { %v4004_v27 = vpop.eup %3002  ;;  %v1769_v52 = vrot.slane %v1768_v63, 1  ;;  %v1031_v18 = vrot.slane %v1030_v6, 1 }
 0x1a1   :  { %v1783_v56 = vrot.slane %v4004_v27, 4  ;;  %v4012_v4 = vpop.eup %3004  ;;  %v1461_v45 = vmul.f32 1.442695, %v1389_v43  ;;  %v1067_v12 = vrot.slane %v1066_v46, 1 }
 0x1a2   :  { %v1770_v58 = vadd.f32 %v1769_v52, %v1768_v63  ;;  %v1591_v13 = vrot.slane %v4012_v4, 4  ;;  %v1032_v35 = vmax.f32 %v1030_v6, %v1031_v18 }
 0x1a3   :  { %v1784_v19 = vadd.f32 %v4004_v27, %v1783_v56  ;;  %v4041_v56 = vpop.xlane.xlu1 %935  ;;  %v1068_v10 = vmax.f32 %v1066_v46, %v1067_v12 }
 0x1a4   :  { %3010 = vrcp.f32 %v1770_v58  ;;  %v1592_v28 = vadd.f32 %v4012_v4, %v1591_v13 }
 0x1a5   :  { %v1785_v53 = vrot.slane %v1784_v19, 2  ;;  %3012 = vpow2.f32 %v1513_v33 }
 0x1a6   :  { %3014 = vpow2.f32 %v1527_v23  ;;  %v1593_v16 = vrot.slane %v1592_v28, 2 }
 0x1a7   :  { %v3007_v2 = vpop.eup %3006  ;;  %v1786_v11 = vadd.f32 %v1785_v53, %v1784_v19  ;;  %3016 = vpow2.f32 %v1449_v61 }
 0x1a8   :  { %v2024_v47 = vmul.f32 %v3007_v2, %v3972_v60  ;;  %3018 = vrcp.f32 %v1584_v0  ;;  %v4021_v60 = vpop.eup %3008  ;;  %v1594_v42 = vadd.f32 %v1593_v16, %v1592_v28  ;;  %v1255_v0 = vrot.slane %v4041_v56, 4  ;;  %v3254_v16 = vld [vmem:[%s5132_s0] sm:$0xff] }
 0x1a9   :  { %v1787_v50 = vrot.slane %v1786_v11, 1  ;;  %v1627_v40 = vrot.slane %v4021_v60, 4  ;;  %v1386_v2 = vsub.f32 %v3998_v62, %v1032_v35 }
 0x1aa   :  { %v2118_v22 = vmul.f32 %v3250_v20, %v2024_v47  ;;  %v1595_v53 = vrot.slane %v1594_v42, 1  ;;  %v1256_v31 = vmax.f32 %v4041_v56, %v1255_v0 }
 0x1ab   :  { %v1788_v29 = vadd.f32 %v1787_v50, %v1786_v11  ;;  %v1628_v52 = vadd.f32 %v4021_v60, %v1627_v40 }
 0x1ac   :  { %v2380_v34 = vsel %vm92_vm0, %v2118_v22, 0.0  ;;  %v1392_v22 = vsub.f32 %v4002_v41, %v1068_v10  ;;  %v1596_v28 = vadd.f32 %v1595_v53, %v1594_v42 }
 0x1ad   :  { %v2381_v39 = vrot.slane %v2380_v34, 4  ;;  %3020 = vrcp.f32 %v1788_v29  ;;  %v1629_v5 = vrot.slane %v1628_v52, 2  ;;  %v1455_v29 = vmul.f32 1.442695, %v1386_v2 }
 0x1ae   :  { %v3011_v25 = vpop.eup %3010  ;;  %3022 = vrcp.f32 %v1578_v38 }
 0x1af   :  { %v2382_v44 = vadd.f32 %v2381_v39, %v2380_v34  ;;  %v4025_v1 = vpop.eup %3012  ;;  %v2022_v49 = vmul.f32 %v3011_v25, %v3989_v32  ;;  %3024 = vpow2.f32 %v1461_v45  ;;  %v1630_v38 = vadd.f32 %v1629_v5, %v1628_v52  ;;  %v4069_v45 = vpop.xlane.xlu0 %917 }
 0x1b0   :  { %v4028_v54 = vpop.eup %3014  ;;  %v1777_v37 = vrot.slane %v4025_v1, 4  ;;  %v1219_v42 = vrot.slane %v4069_v45, 4 }
 0x1b1   :  { %v4031_v30 = vpop.eup %3016  ;;  %v2117_v36 = vmul.f32 %v3251_v48, %v2022_v49  ;;  %v2383_v8 = vrot.slane %v2382_v44, 2  ;;  %v1819_v17 = vrot.slane %v4028_v54, 4 }
 0x1b2   :  { %v3019_v63 = vpop.eup %3018  ;;  %v1778_v15 = vadd.f32 %v4025_v1, %v1777_v37  ;;  %v1585_v57 = vrot.slane %v4031_v30, 4  ;;  %v1631_v37 = vrot.slane %v1630_v38, 1 }
 0x1b3   :  { %v2373_v32 = vsel %vm92_vm0, %v2117_v36, 0.0  ;;  %v1960_v51 = vmul.f32 %v3019_v63, %v3974_v59  ;;  %v2384_v23 = vadd.f32 %v2383_v8, %v2382_v44  ;;  %v1820_v61 = vadd.f32 %v4028_v54, %v1819_v17  ;;  %v3252_v59 = vld [vmem:[%s5132_s0 + $0x8] sm:$0xff]  ;;  %v4078_v0 = vpop.xlane.xlu0 %818 }
 0x1b4   :  { %v2374_v26 = vrot.slane %v2373_v32, 4  ;;  %v1779_v58 = vrot.slane %v1778_v15, 2  ;;  %v1586_v11 = vadd.f32 %v4031_v30, %v1585_v57  ;;  %v1467_v44 = vmul.f32 1.442695, %v1392_v22 }
 0x1b5   :  { %v2086_v47 = vmul.f32 %v3252_v59, %v1960_v51  ;;  %v2385_v9 = vrot.slane %v2384_v23, 1  ;;  %v1821_v50 = vrot.slane %v1820_v61, 2  ;;  %v1257_v36 = vrot.slane %v1256_v31, 2 }
 0x1b6   :  { %v2375_v14 = vadd.f32 %v2374_v26, %v2373_v32  ;;  %v1780_v33 = vadd.f32 %v1779_v58, %v1778_v15  ;;  %v1587_v43 = vrot.slane %v1586_v11, 2  ;;  %v1632_v35 = vadd.f32 %v1631_v37, %v1630_v38 }
 0x1b7   :  { %v3021_v19 = vpop.eup %3020  ;;  %v2156_v39 = vsel %vm92_vm0, %v2086_v47, 0.0  ;;  %v2386_v25 = vadd.f32 %v2385_v9, %v2384_v23  ;;  %v1258_v32 = vmax.f32 %v1256_v31, %v1257_v36 }
 0x1b8   :  { %v2376_v3 = vrot.slane %v2375_v14, 2  ;;  %v3023_v7 = vpop.eup %3022  ;;  %v2028_v55 = vmul.f32 %v3021_v19, %v4004_v27  ;;  %v1781_v13 = vrot.slane %v1780_v33, 1  ;;  %v3253_v27 = vld [vmem:[%s5132_s0 + $0x118] sm:$0xff]  ;;  %v2157_v49 = vrot.slane %v2156_v39, 4 }
 0x1b9   :  { %v1958_v62 = vmul.f32 %v3023_v7, %v3985_v21  ;;  %v4060_v46 = vpop.eup %3024  ;;  %v1822_v21 = vadd.f32 %v1821_v50, %v1820_v61  ;;  %v1588_v63 = vadd.f32 %v1587_v43, %v1586_v11  ;;  %v1259_v52 = vrot.slane %v1258_v32, 1  ;;  %v3255_v11 = vld [vmem:[%s5132_s0 + $0x110] sm:$0xff] }
 0x1ba   :  { %v2377_v20 = vadd.f32 %v2376_v3, %v2375_v14  ;;  %v1782_v24 = vadd.f32 %v1781_v13, %v1780_v33  ;;  %v2120_v6 = vmul.f32 %v3253_v27, %v2028_v55  ;;  %v1621_v8 = vrot.slane %v4060_v46, 4  ;;  %v4076_v33 = vpop.xlane.xlu1 %836  ;;  %v4097_v27 = vpop.xlane.xlu0 %914 }
 0x1bb   :  { %v2085_v40 = vmul.f32 %v3254_v16, %v1958_v62  ;;  %v1823_v12 = vrot.slane %v1822_v21, 1  ;;  %v2158_v17 = vadd.f32 %v2157_v49, %v2156_v39  ;;  %v1589_v51 = vrot.slane %v1588_v63, 1 }
 0x1bc   :  { %v2378_v34 = vrot.slane %v2377_v20, 1  ;;  %3026 = vrcp.f32 %v1782_v24  ;;  %v2394_v48 = vsel %vm92_vm0, %v2120_v6, 0.0  ;;  %v1622_v57 = vadd.f32 %v4060_v46, %v1621_v8 }
 0x1bd   :  { %3028 = vpow2.f32 %v1455_v29  ;;  %v2149_v15 = vsel %vm92_vm0, %v2085_v40, 0.0  ;;  %v2395_v26 = vrot.slane %v2394_v48, 4  ;;  %v1824_v23 = vadd.f32 %v1823_v12, %v1822_v21  ;;  %v3256_v12 = vld [vmem:[%s5132_s0 + $0x18] sm:$0xff] }
 0x1be   :  { %v2379_v41 = vadd.f32 %v2378_v34, %v2377_v20  ;;  %3030 = vrcp.f32 %v1596_v28  ;;  %v2150_v58 = vrot.slane %v2149_v15, 4  ;;  %v2159_v10 = vrot.slane %v2158_v17, 2  ;;  %v4095_v28 = vpop.xlane.xlu1 %932 }
 0x1bf   :  { %3032 = vpow2.f32 %v1467_v44  ;;  %v2396_v19 = vadd.f32 %v2395_v26, %v2394_v48  ;;  %v1220_v61 = vmax.f32 %v4069_v45, %v1219_v42  ;;  %v1260_v53 = vmax.f32 %v1258_v32, %v1259_v52 }
 0x1c0   :  { %v4066_v18 = vsel %vm2661_vm1, %v2386_v25, %v2379_v41  ;;  %3034 = vrcp.f32 %v1632_v35  ;;  %v1590_v2 = vadd.f32 %v1589_v51, %v1588_v63  ;;  %v1623_v7 = vrot.slane %v1622_v57, 2 }
 0x1c1   :  { %v1221_v59 = vrot.slane %v1220_v61, 2  ;;  %v2151_v55 = vadd.f32 %v2150_v58, %v2149_v15  ;;  %3036 = vrcp.f32 %v1824_v23  ;;  %v4088_v20 = vadd.f32 %v2159_v10, %v2158_v17 }
 0x1c2   :  { %v1057_v50 = vrot.slane %v4076_v33, 4  ;;  %v1424_v62 = vsub.f32 %v4041_v56, %v1260_v53  ;;  %v1021_v34 = vrot.slane %v4078_v0, 4  ;;  %3038 = vrcp.f32 %v1590_v2 }
 0x1c3   :  { %v1222_v22 = vmax.f32 %v1220_v61, %v1221_v59  ;;  %v1624_v38 = vadd.f32 %v1623_v7, %v1622_v57  ;;  %v2152_v6 = vrot.slane %v2151_v55, 2  ;;  %v2161_v44 = vrot.slane %v4088_v20, 1 }
 0x1c4   :  { %v1058_v41 = vmax.f32 %v4076_v33, %v1057_v50  ;;  %v1022_v49 = vmax.f32 %v4078_v0, %v1021_v34  ;;  %v1531_v48 = vmul.f32 1.442695, %v1424_v62  ;;  %v1213_v36 = vrot.slane %v4097_v27, 4  ;;  %v4118_v50 = vpop.xlane.xlu0 %827 }
 0x1c5   :  { %v1223_v39 = vrot.slane %v1222_v22, 1  ;;  %v1625_v17 = vrot.slane %v1624_v38, 1  ;;  %v1249_v57 = vrot.slane %v4095_v28, 4  ;;  %v2153_v53 = vadd.f32 %v2152_v6, %v2151_v55 }
 0x1c6   :  { %v3027_v14 = vpop.eup %3026  ;;  %v1059_v63 = vrot.slane %v1058_v41, 2  ;;  %v1023_v8 = vrot.slane %v1022_v49, 2  ;;  %v1214_v26 = vmax.f32 %v4097_v27, %v1213_v36  ;;  %3040 = vpow2.f32 %v1531_v48 }
 0x1c7   :  { %v2026_v3 = vmul.f32 %v3027_v14, %v4025_v1  ;;  %v4081_v5 = vpop.eup %3028  ;;  %v2397_v1 = vrot.slane %v2396_v19, 2  ;;  %v1224_v21 = vmax.f32 %v1222_v22, %v1223_v39  ;;  %v1626_v2 = vadd.f32 %v1625_v17, %v1624_v38  ;;  %v3258_v17 = vld [vmem:[%s5132_s0 + $0x10] sm:$0xff] }
 0x1c8   :  { %v3031_v47 = vpop.eup %3030  ;;  %v1603_v31 = vrot.slane %v4081_v5, 4  ;;  %v1024_v51 = vmax.f32 %v1022_v49, %v1023_v8  ;;  %v1215_v10 = vrot.slane %v1214_v26, 2  ;;  %v1060_v61 = vmax.f32 %v1058_v41, %v1059_v63 }
 0x1c9   :  { %v2119_v13 = vmul.f32 %v3255_v11, %v2026_v3  ;;  %v4086_v9 = vpop.eup %3032  ;;  %v1964_v43 = vmul.f32 %v3031_v47, %v4012_v4  ;;  %v2398_v16 = vadd.f32 %v2397_v1, %v2396_v19  ;;  %v1418_v4 = vsub.f32 %v4069_v45, %v1224_v21  ;;  %v4113_v45 = vpop.xlane.xlu1 %845 }
 0x1ca   :  { %v1639_v25 = vrot.slane %v4086_v9, 4  ;;  %v1604_v40 = vadd.f32 %v4081_v5, %v1603_v31  ;;  %v3035_v42 = vpop.eup %3034  ;;  %v1025_v3 = vrot.slane %v1024_v51, 1  ;;  %v1216_v7 = vmax.f32 %v1214_v26, %v1215_v10 }
 0x1cb   :  { %v2387_v24 = vsel %vm92_vm0, %v2119_v13, 0.0  ;;  %v2088_v32 = vmul.f32 %v3256_v12, %v1964_v43  ;;  %v1519_v35 = vmul.f32 1.442695, %v1418_v4  ;;  %v3037_v58 = vpop.eup %3036  ;;  %v2399_v23 = vrot.slane %v2398_v16, 1 }
 0x1cc   :  { %v2388_v29 = vrot.slane %v2387_v24, 4  ;;  %v1640_v15 = vadd.f32 %v4086_v9, %v1639_v25  ;;  %v1605_v14 = vrot.slane %v1604_v40, 2  ;;  %v1075_v59 = vrot.slane %v4113_v45, 4  ;;  %v3039_v47 = vpop.eup %3038 }
 0x1cd   :  { %3042 = vpow2.f32 %v1519_v35  ;;  %v1976_v11 = vmul.f32 %v3035_v42, %v4021_v60  ;;  %v1026_v1 = vmax.f32 %v1024_v51, %v1025_v3  ;;  %v1250_v22 = vmax.f32 %v4095_v28, %v1249_v57  ;;  %v4148_v42 = vpop.xlane.xlu1 %941 }
 0x1ce   :  { %v2389_v56 = vadd.f32 %v2388_v29, %v2387_v24  ;;  %v2170_v24 = vsel %vm92_vm0, %v2088_v32, 0.0  ;;  %v1641_v31 = vrot.slane %v1640_v15, 2  ;;  %v1606_v62 = vadd.f32 %v1605_v14, %v1604_v40  ;;  %v3259_v14 = vld [vmem:[%s5132_s0 + $0x148] sm:$0xff] }
 0x1cf   :  { %v1217_v34 = vrot.slane %v1216_v7, 1  ;;  %v2400_v29 = vadd.f32 %v2399_v23, %v2398_v16  ;;  %v1061_v38 = vrot.slane %v1060_v61, 1  ;;  %v1385_v39 = vsub.f32 %v4078_v0, %v1026_v1 }
 0x1d0   :  { %v2390_v37 = vrot.slane %v2389_v56, 2  ;;  %v1962_v60 = vmul.f32 %v3039_v47, %v4031_v30  ;;  %3044 = vrcp.f32 %v1626_v2  ;;  %v1076_v6 = vmax.f32 %v4113_v45, %v1075_v59  ;;  %v4134_v36 = vpop.eup %3040 }
 0x1d1   :  { %v1039_v43 = vrot.slane %v4118_v50, 4  ;;  %v1453_v25 = vmul.f32 1.442695, %v1385_v39  ;;  %v1251_v41 = vrot.slane %v1250_v22, 2  ;;  %v1218_v21 = vmax.f32 %v1216_v7, %v1217_v34 }
 0x1d2   :  { %v2391_v52 = vadd.f32 %v2390_v37, %v2389_v56  ;;  %v2171_v49 = vrot.slane %v2170_v24, 4  ;;  %v1642_v16 = vadd.f32 %v1641_v31, %v1640_v15  ;;  %v1607_v40 = vrot.slane %v1606_v62, 1  ;;  %v4170_v31 = vpop.xlane.xlu1 %842 }
 0x1d3   :  { %v1062_v30 = vmax.f32 %v1060_v61, %v1061_v38  ;;  %3046 = vpow2.f32 %v1453_v25  ;;  %v1417_v48 = vsub.f32 %v4097_v27, %v1218_v21  ;;  %v2154_v37 = vrot.slane %v2153_v53, 1 }
 0x1d4   :  { %v2392_v19 = vrot.slane %v2391_v52, 1  ;;  %v2040_v4 = vmul.f32 %v3037_v58, %v4028_v54  ;;  %v1077_v63 = vrot.slane %v1076_v6, 2  ;;  %v1040_v8 = vmax.f32 %v4118_v50, %v1039_v43 }
 0x1d5   :  { %v4143_v32 = vadd.f32 %v2161_v44, %v4088_v20  ;;  %v2087_v27 = vmul.f32 %v3258_v17, %v1962_v60  ;;  %v1252_v15 = vmax.f32 %v1250_v22, %v1251_v41  ;;  %v1517_v26 = vmul.f32 1.442695, %v1417_v48 }
 0x1d6   :  { %v2393_v13 = vadd.f32 %v2392_v19, %v2391_v52  ;;  %v4150_v54 = vadd.f32 %v2171_v49, %v2170_v24  ;;  %v1643_v52 = vrot.slane %v1642_v16, 1  ;;  %v1608_v35 = vadd.f32 %v1607_v40, %v1606_v62 }
 0x1d7   :  { %v4138_v12 = vpop.eup %3042  ;;  %v1831_v20 = vrot.slane %v4134_v36, 4  ;;  %v1391_v44 = vsub.f32 %v4076_v33, %v1062_v30  ;;  %v1041_v58 = vrot.slane %v1040_v8, 2  ;;  %v4158_v23 = vadd.f32 %v2154_v37, %v2153_v53 }
 0x1d8   :  { %v2697_v55 = vsel %vm2663_vm2, %v2393_v13, %v4066_v18  ;;  %v3257_v18 = vld [vmem:[%s5132_s0 + $0x48] sm:$0xff]  ;;  %v1795_v51 = vrot.slane %v4138_v12, 4  ;;  %v2126_v10 = vmul.f32 %v3259_v14, %v2040_v4  ;;  %v1078_v61 = vmax.f32 %v1076_v6, %v1077_v63 }
 0x1d9   :  { %v4128_v56 = vsel %vm2665_vm3, %v2400_v29, %v2697_v55  ;;  %v2094_v0 = vmul.f32 %v3257_v18, %v1976_v11  ;;  %v2163_v3 = vsel %vm92_vm0, %v2087_v27, 0.0  ;;  %v1253_v2 = vrot.slane %v1252_v15, 1  ;;  %v4166_v11 = vpop.xlane.xlu0 %824 }
 0x1da   :  { %v1796_v19 = vadd.f32 %v4138_v12, %v1795_v51  ;;  %3048 = vpow2.f32 %v1517_v26  ;;  %v1042_v7 = vmax.f32 %v1040_v8, %v1041_v58  ;;  %v3045_v59 = vpop.eup %3044  ;;  %v1644_v33 = vadd.f32 %v1643_v52, %v1642_v16 }
 0x1db   :  { %v4154_v57 = vsel %vm92_vm0, %v2094_v0, 0.0  ;;  %3050 = vrcp.f32 %v1608_v35  ;;  %v2173_v13 = vrot.slane %v4150_v54, 2  ;;  %v1832_v1 = vadd.f32 %v4134_v36, %v1831_v20 }
 0x1dc   :  { %v2213_v47 = vrot.slane %v4154_v57, 4  ;;  %v1797_v53 = vrot.slane %v1796_v19, 2  ;;  %v1465_v22 = vmul.f32 1.442695, %v1391_v44  ;;  %v1043_v24 = vrot.slane %v1042_v7, 1 }
 0x1dd   :  { %v4173_v62 = vsel %vm92_vm0, %v2126_v10, 0.0  ;;  %v2164_v34 = vrot.slane %v2163_v3, 4  ;;  %v1079_v55 = vrot.slane %v1078_v61, 1  ;;  %v4175_v38 = vpop.eup %3046  ;;  %v1974_v39 = vmul.f32 %v3045_v59, %v4060_v46 }
 0x1de   :  { %v1798_v29 = vadd.f32 %v1797_v53, %v1796_v19  ;;  %v1254_v60 = vmax.f32 %v1252_v15, %v1253_v2  ;;  %v1044_v6 = vmax.f32 %v1042_v7, %v1043_v24  ;;  %v1033_v43 = vrot.slane %v4166_v11, 4 }
 0x1df   :  { %3052 = vrcp.f32 %v1644_v33  ;;  %v1597_v41 = vrot.slane %v4175_v38, 4  ;;  %v1069_v21 = vrot.slane %v4170_v31, 4  ;;  %v1833_v49 = vrot.slane %v1832_v1, 2 }
 0x1e0   :  { %v1799_v25 = vrot.slane %v1798_v29, 1  ;;  %3054 = vpow2.f32 %v1465_v22  ;;  %v1388_v16 = vsub.f32 %v4118_v50, %v1044_v6  ;;  %v1034_v40 = vmax.f32 %v4166_v11, %v1033_v43  ;;  %v3260_v50 = vld [vmem:[%s5132_s0 + $0x40] sm:$0xff] }
 0x1e1   :  { %v1598_v0 = vadd.f32 %v4175_v38, %v1597_v41  ;;  %v1080_v46 = vmax.f32 %v1078_v61, %v1079_v55  ;;  %v1070_v30 = vmax.f32 %v4170_v31, %v1069_v21  ;;  %v1423_v48 = vsub.f32 %v4095_v28, %v1254_v60  ;;  %v3261_v41 = vld [vmem:[%s5132_s0 + $0x28] sm:$0xff] }
 0x1e2   :  { %v1800_v18 = vadd.f32 %v1799_v25, %v1798_v29  ;;  %v1459_v37 = vmul.f32 1.442695, %v1388_v16  ;;  %v1267_v4 = vrot.slane %v4148_v42, 4  ;;  %v1035_v63 = vrot.slane %v1034_v40, 2 }
 0x1e3   :  { %v2165_v8 = vadd.f32 %v2164_v34, %v2163_v3  ;;  %v1599_v17 = vrot.slane %v1598_v0, 2  ;;  %v1071_v27 = vrot.slane %v1070_v30, 2  ;;  %v2093_v26 = vmul.f32 %v3260_v50, %v1974_v39 }
 0x1e4   :  { %3056 = vrcp.f32 %v1800_v18  ;;  %v4187_v15 = vpop.eup %3048  ;;  %v1834_v52 = vadd.f32 %v1833_v49, %v1832_v1  ;;  %v1036_v35 = vmax.f32 %v1034_v40, %v1035_v63  ;;  %v1394_v44 = vsub.f32 %v4113_v45, %v1080_v46 }
 0x1e5   :  { %3058 = vpow2.f32 %v1459_v37  ;;  %v3051_v51 = vpop.eup %3050  ;;  %v1600_v28 = vadd.f32 %v1599_v17, %v1598_v0  ;;  %v1789_v20 = vrot.slane %v4187_v15, 4  ;;  %v1072_v58 = vmax.f32 %v1070_v30, %v1071_v27  ;;  %v3262_v27 = vld [vmem:[%s5132_s0 + $0x128] sm:$0xff] }
 0x1e6   :  { %v2214_v14 = vadd.f32 %v2213_v47, %v4154_v57  ;;  %v1529_v10 = vmul.f32 1.442695, %v1423_v48  ;;  %v1268_v19 = vmax.f32 %v4148_v42, %v1267_v4  ;;  %v1037_v61 = vrot.slane %v1036_v35, 1 }
 0x1e7   :  { %v2437_v3 = vrot.slane %v4173_v62, 4  ;;  %v2166_v2 = vrot.slane %v2165_v8, 2  ;;  %v1601_v7 = vrot.slane %v1600_v28, 1  ;;  %v1790_v59 = vadd.f32 %v4187_v15, %v1789_v20 }
 0x1e8   :  { %v2205_v33 = vsel %vm92_vm0, %v2093_v26, 0.0  ;;  %v1968_v53 = vmul.f32 %v3051_v51, %v4081_v5  ;;  %v1835_v1 = vrot.slane %v1834_v52, 1  ;;  %v1038_v22 = vmax.f32 %v1036_v35, %v1037_v61 }
 0x1e9   :  { %v3053_v45 = vpop.eup %3052  ;;  %v1602_v24 = vadd.f32 %v1601_v7, %v1600_v28  ;;  %v1791_v34 = vrot.slane %v1790_v59, 2  ;;  %v1471_v57 = vmul.f32 1.442695, %v1394_v44  ;;  %v1073_v47 = vrot.slane %v1072_v58, 1  ;;  %v4231_v7 = vpop.xlane.xlu0 %920 }
 0x1ea   :  { %v4200_v29 = vpop.eup %3054  ;;  %v2174_v55 = vadd.f32 %v2173_v13, %v4150_v54  ;;  %3060 = vpow2.f32 %v1529_v10  ;;  %v1269_v39 = vrot.slane %v1268_v19, 2  ;;  %v1387_v60 = vsub.f32 %v4166_v11, %v1038_v22 }
 0x1eb   :  { %v2215_v6 = vrot.slane %v2214_v14, 2  ;;  %v2438_v5 = vadd.f32 %v2437_v3, %v4173_v62  ;;  %v2206_v43 = vrot.slane %v2205_v33, 4  ;;  %v1792_v25 = vadd.f32 %v1791_v34, %v1790_v59 }
 0x1ec   :  { %v2090_v21 = vmul.f32 %v3261_v41, %v1968_v53  ;;  %v1836_v49 = vadd.f32 %v1835_v1, %v1834_v52  ;;  %3062 = vrcp.f32 %v1602_v24  ;;  %v1457_v16 = vmul.f32 1.442695, %v1387_v60  ;;  %v3263_v53 = vld [vmem:[%s5132_s0 + $0x58] sm:$0xff] }
 0x1ed   :  { %v2167_v18 = vadd.f32 %v2166_v2, %v2165_v8  ;;  %v1793_v54 = vrot.slane %v1792_v25, 1  ;;  %3064 = vpow2.f32 %v1471_v57  ;;  %v1074_v13 = vmax.f32 %v1072_v58, %v1073_v47 }
 0x1ee   :  { %v3057_v40 = vpop.eup %3056  ;;  %v1633_v62 = vrot.slane %v4200_v29, 4  ;;  %v1270_v46 = vmax.f32 %v1268_v19, %v1269_v39  ;;  %3066 = vpow2.f32 %v1457_v16  ;;  %v2216_v30 = vadd.f32 %v2215_v6, %v2214_v14 }
 0x1ef   :  { %v4210_v0 = vpop.eup %3058  ;;  %v2032_v11 = vmul.f32 %v3057_v40, %v4138_v12  ;;  %v2439_v48 = vrot.slane %v2438_v5, 2  ;;  %v1794_v37 = vadd.f32 %v1793_v54, %v1792_v25  ;;  %v2175_v63 = vrot.slane %v2174_v55, 1 }
 0x1f0   :  { %v1615_v4 = vrot.slane %v4210_v0, 4  ;;  %v2207_v17 = vadd.f32 %v2206_v43, %v2205_v33  ;;  %v2184_v8 = vsel %vm92_vm0, %v2090_v21, 0.0  ;;  %3068 = vrcp.f32 %v1836_v49 }
 0x1f1   :  { %v2122_v50 = vmul.f32 %v3262_v27, %v2032_v11  ;;  %3070 = vrcp.f32 %v1794_v37  ;;  %v1393_v26 = vsub.f32 %v4170_v31, %v1074_v13  ;;  %v2168_v52 = vrot.slane %v2167_v18, 1  ;;  %v3264_v37 = vld [vmem:[%s5132_s0 + $0x20] sm:$0xff] }
 0x1f2   :  { %v1616_v12 = vadd.f32 %v4210_v0, %v1615_v4  ;;  %v1980_v35 = vmul.f32 %v3053_v45, %v4086_v9  ;;  %v1634_v51 = vadd.f32 %v4200_v29, %v1633_v62  ;;  %v1271_v28 = vrot.slane %v1270_v46, 1  ;;  %v3265_v27 = vld [vmem:[%s5132_s0 + $0x120] sm:$0xff] }
 0x1f3   :  { %v2217_v20 = vrot.slane %v2216_v30, 1  ;;  %v4223_v44 = vadd.f32 %v2439_v48, %v2438_v5  ;;  %v2662_v10 = vsel %vm2661_vm1, %v4143_v32, %v4158_v23  ;;  %v2208_v19 = vrot.slane %v2207_v17, 2 }
 0x1f4   :  { %v1617_v58 = vrot.slane %v1616_v12, 2  ;;  %v4225_v14 = vpop.eup %3060  ;;  %v2185_v61 = vrot.slane %v2184_v8, 4  ;;  %v2176_v3 = vadd.f32 %v2175_v63, %v2174_v55  ;;  %v2408_v31 = vsel %vm92_vm0, %v2122_v50, 0.0 }
 0x1f5   :  { %v1469_v9 = vmul.f32 1.442695, %v1393_v26  ;;  %v2169_v33 = vadd.f32 %v2168_v52, %v2167_v18  ;;  %v2096_v1 = vmul.f32 %v3263_v53, %v1980_v35  ;;  %v1635_v22 = vrot.slane %v1634_v51, 2  ;;  %v4266_v35 = vpop.xlane.xlu0 %926 }
 0x1f6   :  { %v1618_v2 = vadd.f32 %v1617_v58, %v1616_v12  ;;  %v3063_v59 = vpop.eup %3062  ;;  %v1272_v45 = vmax.f32 %v1270_v46, %v1271_v28  ;;  %v4238_v32 = vadd.f32 %v2217_v20, %v2216_v30  ;;  %v2441_v23 = vrot.slane %v4223_v44, 1 }
 0x1f7   :  { %v4236_v24 = vpop.eup %3064  ;;  %v1825_v34 = vrot.slane %v4225_v14, 4  ;;  %v2209_v55 = vadd.f32 %v2208_v19, %v2207_v17  ;;  %v2186_v39 = vadd.f32 %v2185_v61, %v2184_v8  ;;  %v2409_v60 = vrot.slane %v2408_v31, 4 }
 0x1f8   :  { %v1619_v57 = vrot.slane %v1618_v2, 1  ;;  %v4242_v47 = vpop.eup %3066  ;;  %v1225_v6 = vrot.slane %v4231_v7, 4  ;;  %v1966_v5 = vmul.f32 %v3063_v59, %v4175_v38  ;;  %3072 = vpow2.f32 %v1469_v9 }
 0x1f9   :  { %v1609_v25 = vrot.slane %v4242_v47, 4  ;;  %v2664_v21 = vsel %vm2663_vm2, %v2169_v33, %v2662_v10  ;;  %v2226_v49 = vsel %vm92_vm0, %v2096_v1, 0.0  ;;  %v1636_v16 = vadd.f32 %v1635_v22, %v1634_v51  ;;  %v3266_v10 = vld [vmem:[%s5132_s0 + $0x158] sm:$0xff] }
 0x1fa   :  { %v1620_v43 = vadd.f32 %v1619_v57, %v1618_v2  ;;  %v3069_v41 = vpop.eup %3068  ;;  %v1426_v40 = vsub.f32 %v4148_v42, %v1272_v45  ;;  %v1826_v54 = vadd.f32 %v4225_v14, %v1825_v34  ;;  %v1651_v13 = vrot.slane %v4236_v24, 4  ;;  %v4275_v2 = vpop.xlane.xlu1 %938 }
 0x1fb   :  { %v3071_v18 = vpop.eup %3070  ;;  %v1610_v38 = vadd.f32 %v4242_v47, %v1609_v25  ;;  %v2210_v11 = vrot.slane %v2209_v55, 1  ;;  %v2187_v62 = vrot.slane %v2186_v39, 2  ;;  %v2410_v46 = vadd.f32 %v2409_v60, %v2408_v31 }
 0x1fc   :  { %3074 = vrcp.f32 %v1620_v43  ;;  %v2030_v30 = vmul.f32 %v3071_v18, %v4187_v15  ;;  %v2044_v48 = vmul.f32 %v3069_v41, %v4134_v36  ;;  %v2089_v42 = vmul.f32 %v3264_v37, %v1966_v5 }
 0x1fd   :  { %v1611_v4 = vrot.slane %v1610_v38, 2  ;;  %v1226_v63 = vmax.f32 %v4231_v7, %v1225_v6  ;;  %v2227_v17 = vrot.slane %v2226_v49, 4  ;;  %v4260_v8 = vsel %vm2665_vm3, %v2176_v3, %v2664_v21 }
 0x1fe   :  { %v2121_v50 = vmul.f32 %v3265_v27, %v2030_v30  ;;  %v1535_v15 = vmul.f32 1.442695, %v1426_v40  ;;  %v1637_v12 = vrot.slane %v1636_v16, 1  ;;  %v1827_v36 = vrot.slane %v1826_v54, 2 }
 0x1ff   :  { %v1652_v26 = vadd.f32 %v4236_v24, %v1651_v13  ;;  %v1612_v52 = vadd.f32 %v1611_v4, %v1610_v38  ;;  %v4268_v51 = vadd.f32 %v2210_v11, %v2209_v55  ;;  %v2188_v28 = vadd.f32 %v2187_v62, %v2186_v39  ;;  %v4287_v13 = vpop.xlane.xlu1 %851 }
 0x200   :  { %v2411_v20 = vrot.slane %v2410_v46, 2  ;;  %v2401_v58 = vsel %vm92_vm0, %v2121_v50, 0.0  ;;  %v2128_v19 = vmul.f32 %v3266_v10, %v2044_v48  ;;  %v2177_v61 = vsel %vm92_vm0, %v2089_v42, 0.0  ;;  %v4301_v10 = vpop.xlane.xlu0 %854 }
 0x201   :  { %v2402_v3 = vrot.slane %v2401_v58, 4  ;;  %v1227_v31 = vrot.slane %v1226_v63, 2  ;;  %v4277_v9 = vadd.f32 %v2227_v17, %v2226_v49  ;;  %3076 = vpow2.f32 %v1535_v15 }
 0x202   :  { %v1613_v59 = vrot.slane %v1612_v52, 1  ;;  %v1237_v33 = vrot.slane %v4266_v35, 4  ;;  %v4280_v53 = vpop.eup %3072  ;;  %v1638_v1 = vadd.f32 %v1637_v12, %v1636_v16  ;;  %v1828_v22 = vadd.f32 %v1827_v36, %v1826_v54 }
 0x203   :  { %v2403_v45 = vadd.f32 %v2402_v3, %v2401_v58  ;;  %v1653_v34 = vrot.slane %v1652_v26, 2  ;;  %v2189_v57 = vrot.slane %v2188_v28, 1  ;;  %v2412_v55 = vadd.f32 %v2411_v20, %v2410_v46  ;;  %v3267_v46 = vld [vmem:[%s5132_s0 + $0x38] sm:$0xff] }
 0x204   :  { %v2178_v39 = vrot.slane %v2177_v61, 4  ;;  %v1614_v60 = vadd.f32 %v1613_v59, %v1612_v52  ;;  %v2450_v5 = vsel %vm92_vm0, %v2128_v19, 0.0  ;;  %v1228_v25 = vmax.f32 %v1226_v63, %v1227_v31  ;;  %v4307_v31 = vpop.xlane.xlu1 %848 }
 0x205   :  { %v2404_v43 = vrot.slane %v2403_v45, 2  ;;  %v1261_v41 = vrot.slane %v4275_v2, 4  ;;  %v1645_v49 = vrot.slane %v4280_v53, 4  ;;  %v1238_v16 = vmax.f32 %v4266_v35, %v1237_v33 }
 0x206   :  { %v3075_v6 = vpop.eup %3074  ;;  %3078 = vrcp.f32 %v1614_v60  ;;  %v1829_v40 = vrot.slane %v1828_v22, 1  ;;  %v1654_v54 = vadd.f32 %v1653_v34, %v1652_v26  ;;  %v2229_v38 = vrot.slane %v4277_v9, 2 }
 0x207   :  { %v1972_v21 = vmul.f32 %v3075_v6, %v4210_v0  ;;  %3080 = vrcp.f32 %v1638_v1  ;;  %v2405_v18 = vadd.f32 %v2404_v43, %v2403_v45  ;;  %v2413_v11 = vrot.slane %v2412_v55, 1 }
 0x208   :  { %v2179_v62 = vadd.f32 %v2178_v39, %v2177_v61  ;;  %v2451_v30 = vrot.slane %v2450_v5, 4  ;;  %v1229_v37 = vrot.slane %v1228_v25, 1  ;;  %v1646_v4 = vadd.f32 %v4280_v53, %v1645_v49 }
 0x209   :  { %v2092_v0 = vmul.f32 %v3267_v46, %v1972_v21  ;;  %v2406_v48 = vrot.slane %v2405_v18, 1  ;;  %v1262_v63 = vmax.f32 %v4275_v2, %v1261_v41  ;;  %v1239_v17 = vrot.slane %v1238_v16, 2 }
 0x20a   :  { %v4296_v27 = vadd.f32 %v2189_v57, %v2188_v28  ;;  %v1830_v50 = vadd.f32 %v1829_v40, %v1828_v22  ;;  %v1655_v12 = vrot.slane %v1654_v54, 1  ;;  %v2414_v26 = vadd.f32 %v2413_v11, %v2412_v55 }
 0x20b   :  { %v2198_v42 = vsel %vm92_vm0, %v2092_v0, 0.0  ;;  %v2407_v15 = vadd.f32 %v2406_v48, %v2405_v18  ;;  %v4298_v36 = vpop.eup %3076  ;;  %v2180_v52 = vrot.slane %v2179_v62, 2  ;;  %v1240_v20 = vmax.f32 %v1238_v16, %v1239_v17 }
 0x20c   :  { %v1087_v58 = vrot.slane %v4287_v13, 4  ;;  %v4303_v19 = vadd.f32 %v2451_v30, %v2450_v5  ;;  %v2199_v3 = vrot.slane %v2198_v42, 4  ;;  %v1230_v28 = vmax.f32 %v1228_v25, %v1229_v37 }
 0x20d   :  { %v2699_v61 = vsel %vm2667_vm4, %v2407_v15, %v4128_v56  ;;  %v1647_v59 = vrot.slane %v1646_v4, 2  ;;  %v1263_v1 = vrot.slane %v1262_v63, 2  ;;  %v1241_v22 = vrot.slane %v1240_v20, 1 }
 0x20e   :  { %v4310_v33 = vsel %vm2669_vm5, %v2414_v26, %v2699_v61  ;;  %3082 = vrcp.f32 %v1830_v50  ;;  %v1843_v45 = vrot.slane %v4298_v36, 4  ;;  %v1088_v34 = vmax.f32 %v4287_v13, %v1087_v58 }
 0x20f   :  { %v1093_v57 = vrot.slane %v4301_v10, 4  ;;  %v2181_v39 = vadd.f32 %v2180_v52, %v2179_v62  ;;  %v1656_v56 = vadd.f32 %v1655_v12, %v1654_v54  ;;  %v1242_v60 = vmax.f32 %v1240_v20, %v1241_v22  ;;  %v3268_v54 = vld [vmem:[%s5132_s0 + $0x30] sm:$0xff] }
 0x210   :  { %v3079_v55 = vpop.eup %3078  ;;  %v1081_v6 = vrot.slane %v4307_v31, 4  ;;  %v2200_v43 = vadd.f32 %v2199_v3, %v2198_v42  ;;  %v1419_v41 = vsub.f32 %v4231_v7, %v1230_v28  ;;  %v1089_v21 = vrot.slane %v1088_v34, 2 }
 0x211   :  { %v3081_v5 = vpop.eup %3080  ;;  %v1970_v25 = vmul.f32 %v3079_v55, %v4242_v47  ;;  %v1648_v49 = vadd.f32 %v1647_v59, %v1646_v4  ;;  %v1264_v16 = vmax.f32 %v1262_v63, %v1263_v1  ;;  %v1421_v40 = vsub.f32 %v4266_v35, %v1242_v60  ;;  %v4327_v63 = vpop.xlane.xlu0 %950 }
 0x212   :  { %v1082_v18 = vmax.f32 %v4307_v31, %v1081_v6  ;;  %v1844_v11 = vadd.f32 %v4298_v36, %v1843_v45  ;;  %v1090_v46 = vmax.f32 %v1088_v34, %v1089_v21  ;;  %v1094_v0 = vmax.f32 %v4301_v10, %v1093_v57 }
 0x213   :  { %v2091_v62 = vmul.f32 %v3268_v54, %v1970_v25  ;;  %v1978_v47 = vmul.f32 %v3081_v5, %v4200_v29  ;;  %v2182_v7 = vrot.slane %v2181_v39, 1  ;;  %v1525_v30 = vmul.f32 1.442695, %v1421_v40  ;;  %v3269_v29 = vld [vmem:[%s5132_s0 + $0x50] sm:$0xff] }
 0x214   :  { %v1083_v48 = vrot.slane %v1082_v18, 2  ;;  %v2201_v37 = vrot.slane %v2200_v43, 2  ;;  %v1521_v42 = vmul.f32 1.442695, %v1419_v41  ;;  %v1091_v4 = vrot.slane %v1090_v46, 1 }
 0x215   :  { %v2191_v35 = vsel %vm92_vm0, %v2091_v62, 0.0  ;;  %v1649_v50 = vrot.slane %v1648_v49, 1  ;;  %v1265_v15 = vrot.slane %v1264_v16, 1  ;;  %3084 = vpow2.f32 %v1525_v30  ;;  %v4342_v40 = vpop.xlane.xlu0 %863 }
 0x216   :  { %v2192_v17 = vrot.slane %v2191_v35, 4  ;;  %3086 = vrcp.f32 %v1656_v56  ;;  %v1092_v12 = vmax.f32 %v1090_v46, %v1091_v4  ;;  %v1095_v26 = vrot.slane %v1094_v0, 2 }
 0x217   :  { %v1084_v52 = vmax.f32 %v1082_v18, %v1083_v48  ;;  %v2095_v20 = vmul.f32 %v3269_v29, %v1978_v47  ;;  %v2183_v58 = vadd.f32 %v2182_v7, %v2181_v39  ;;  %v1285_v3 = vrot.slane %v4327_v63, 4  ;;  %v4335_v39 = vpop.xlane.xlu1 %944 }
 0x218   :  { %v2193_v61 = vadd.f32 %v2192_v17, %v2191_v35  ;;  %v3083_v28 = vpop.eup %3082  ;;  %v2202_v59 = vadd.f32 %v2201_v37, %v2200_v43  ;;  %3088 = vpow2.f32 %v1521_v42  ;;  %v1396_v1 = vsub.f32 %v4287_v13, %v1092_v12 }
 0x219   :  { %v1085_v22 = vrot.slane %v1084_v52, 1  ;;  %v1650_v34 = vadd.f32 %v1649_v50, %v1648_v49  ;;  %v1266_v57 = vmax.f32 %v1264_v16, %v1265_v15  ;;  %v1286_v55 = vmax.f32 %v4327_v63, %v1285_v3 }
 0x21a   :  { %v2194_v45 = vrot.slane %v2193_v61, 2  ;;  %v1845_v56 = vrot.slane %v1844_v11, 2  ;;  %v1475_v60 = vmul.f32 1.442695, %v1396_v1  ;;  %v1096_v6 = vmax.f32 %v1094_v0, %v1095_v26 }
 0x21b   :  { %v1086_v5 = vmax.f32 %v1084_v52, %v1085_v22  ;;  %v2219_v25 = vsel %vm92_vm0, %v2095_v20, 0.0  ;;  %v2668_v43 = vsel %vm2667_vm4, %v2183_v58, %v4260_v8  ;;  %v2042_v41 = vmul.f32 %v3083_v28, %v4225_v14 }
 0x21c   :  { %v2195_v13 = vadd.f32 %v2194_v45, %v2193_v61  ;;  %v2203_v21 = vrot.slane %v2202_v59, 1  ;;  %3090 = vpow2.f32 %v1475_v60  ;;  %v1287_v16 = vrot.slane %v1286_v55, 2 }
 0x21d   :  { %v1395_v49 = vsub.f32 %v4307_v31, %v1086_v5  ;;  %3092 = vrcp.f32 %v1650_v34  ;;  %v1425_v54 = vsub.f32 %v4275_v2, %v1266_v57  ;;  %v1273_v62 = vrot.slane %v4335_v39, 4 }
 0x21e   :  { %v2196_v18 = vrot.slane %v2195_v13, 1  ;;  %v2220_v46 = vrot.slane %v2219_v25, 4  ;;  %v1846_v0 = vadd.f32 %v1845_v56, %v1844_v11  ;;  %v1097_v47 = vrot.slane %v1096_v6, 1 }
 0x21f   :  { %v1473_v8 = vmul.f32 1.442695, %v1395_v49  ;;  %v4346_v7 = vpop.eup %3084  ;;  %v2670_v14 = vsel %vm2669_vm5, %v4296_v27, %v2668_v43  ;;  %v1274_v31 = vmax.f32 %v4335_v39, %v1273_v62  ;;  %v1111_v48 = vrot.slane %v4342_v40, 4  ;;  %v3270_v27 = vld [vmem:[%s5132_s0 + $0x150] sm:$0xff] }
 0x220   :  { %v2197_v30 = vadd.f32 %v2196_v18, %v2195_v13  ;;  %v3087_v37 = vpop.eup %3086  ;;  %v2204_v35 = vadd.f32 %v2203_v21, %v2202_v59  ;;  %v1813_v2 = vrot.slane %v4346_v7, 4  ;;  %v1288_v42 = vmax.f32 %v1286_v55, %v1287_v16  ;;  %v3271_v13 = vld [vmem:[%s5132_s0 + $0x68] sm:$0xff] }
 0x221   :  { %3094 = vpow2.f32 %v1473_v8  ;;  %v4356_v11 = vadd.f32 %v2229_v38, %v4277_v9  ;;  %v2127_v4 = vmul.f32 %v3270_v27, %v2042_v41  ;;  %v1533_v50 = vmul.f32 1.442695, %v1425_v54 }
 0x222   :  { %v2672_v17 = vsel %vm2671_vm6, %v2197_v30, %v2670_v14  ;;  %v4362_v15 = vpop.eup %3088  ;;  %v1814_v26 = vadd.f32 %v4346_v7, %v1813_v2  ;;  %v1098_v52 = vmax.f32 %v1096_v6, %v1097_v47  ;;  %v1275_v29 = vrot.slane %v1274_v31, 2 }
 0x223   :  { %v2674_v12 = vsel %vm2673_vm7, %v2204_v35, %v2672_v17  ;;  %v4369_v9 = vadd.f32 %v2441_v23, %v4223_v44  ;;  %v4374_v38 = vsel %vm2661_vm1, %v4238_v32, %v4268_v51  ;;  %v2453_v20 = vrot.slane %v4303_v19, 2  ;;  %v4382_v44 = vpop.xlane.xlu1 %857 }
 0x224   :  { %2732 = vst.msk [vmem:[%s5135_s4] sm:$0xff] %vm92_vm0, %v2674_v12  ;;  %v1112_v58 = vmax.f32 %v4342_v40, %v1111_v48  ;;  %v2221_v61 = vadd.f32 %v2220_v46, %v2219_v25  ;;  %v1847_v3 = vrot.slane %v1846_v0, 1  ;;  %v1815_v28 = vrot.slane %v1814_v26, 2 }
 0x225   :  { %v1289_v59 = vrot.slane %v1288_v42, 1  ;;  %v2443_v23 = vsel %vm92_vm0, %v2127_v4, 0.0  ;;  %v1984_v32 = vmul.f32 %v3087_v37, %v4236_v24  ;;  %v1801_v51 = vrot.slane %v4362_v15, 4 }
 0x226   :  { %3096 = vpow2.f32 %v1533_v50  ;;  %v4387_v1 = vpop.eup %3090  ;;  %v2231_v22 = vrot.slane %v4356_v11, 1  ;;  %v1816_v45 = vadd.f32 %v1815_v28, %v1814_v26  ;;  %v1397_v34 = vsub.f32 %v4301_v10, %v1098_v52 }
 0x227   :  { %v1276_v57 = vmax.f32 %v1274_v31, %v1275_v29  ;;  %v3093_v55 = vpop.eup %3092  ;;  %v4392_v56 = vadd.f32 %v2453_v20, %v4303_v19  ;;  %v1663_v60 = vrot.slane %v4387_v1, 4  ;;  %v1113_v6 = vrot.slane %v1112_v58, 2  ;;  %v4414_v52 = vpop.xlane.xlu1 %953 }
 0x228   :  { %v1099_v24 = vrot.slane %v4382_v44, 4  ;;  %v2222_v5 = vrot.slane %v2221_v61, 2  ;;  %v2444_v25 = vrot.slane %v2443_v23, 4  ;;  %v1817_v43 = vrot.slane %v1816_v45, 1 }
 0x229   :  { %v1290_v41 = vmax.f32 %v1288_v42, %v1289_v59  ;;  %v2098_v21 = vmul.f32 %v3271_v13, %v1984_v32  ;;  %v1848_v10 = vadd.f32 %v1847_v3, %v1846_v0  ;;  %v1802_v49 = vadd.f32 %v4362_v15, %v1801_v51  ;;  %v3272_v42 = vld [vmem:[%s5132_s0 + $0x60] sm:$0xff]  ;;  %v4417_v32 = vpop.xlane.xlu0 %959 }
 0x22a   :  { %v1664_v19 = vadd.f32 %v4387_v1, %v1663_v60  ;;  %v1982_v18 = vmul.f32 %v3093_v55, %v4280_v53  ;;  %v1818_v54 = vadd.f32 %v1817_v43, %v1816_v45  ;;  %v1477_v62 = vmul.f32 1.442695, %v1397_v34 }
 0x22b   :  { %v4401_v16 = vpop.eup %3094  ;;  %v1277_v46 = vrot.slane %v1276_v57, 1  ;;  %v1114_v14 = vmax.f32 %v1112_v58, %v1113_v6  ;;  %v1100_v30 = vmax.f32 %v4382_v44, %v1099_v24  ;;  %v2223_v31 = vadd.f32 %v2222_v5, %v2221_v61 }
 0x22c   :  { %v1665_v47 = vrot.slane %v1664_v19, 2  ;;  %v1657_v8 = vrot.slane %v4401_v16, 4  ;;  %v2445_v48 = vadd.f32 %v2444_v25, %v2443_v23  ;;  %3098 = vrcp.f32 %v1818_v54 }
 0x22d   :  { %v1429_v0 = vsub.f32 %v4327_v63, %v1290_v41  ;;  %3100 = vrcp.f32 %v1848_v10  ;;  %v1803_v37 = vrot.slane %v1802_v49, 2  ;;  %v2240_v53 = vsel %vm92_vm0, %v2098_v21, 0.0 }
 0x22e   :  { %v1666_v35 = vadd.f32 %v1665_v47, %v1664_v19  ;;  %v1658_v2 = vadd.f32 %v4401_v16, %v1657_v8  ;;  %v2097_v27 = vmul.f32 %v3272_v42, %v1982_v18  ;;  %3102 = vpow2.f32 %v1477_v62  ;;  %v4431_v8 = vpop.xlane.xlu0 %860 }
 0x22f   :  { %v1278_v4 = vmax.f32 %v1276_v57, %v1277_v46  ;;  %v1115_v26 = vrot.slane %v1114_v14, 1  ;;  %v1101_v63 = vrot.slane %v1100_v30, 2  ;;  %v2455_v29 = vrot.slane %v4392_v56, 1 }
 0x230   :  { %v4412_v17 = vpop.eup %3096  ;;  %v1667_v50 = vrot.slane %v1666_v35, 1  ;;  %v1659_v12 = vrot.slane %v1658_v2, 2  ;;  %v2224_v20 = vrot.slane %v2223_v31, 1  ;;  %v2446_v58 = vrot.slane %v2445_v48, 2 }
 0x231   :  { %v1541_v61 = vmul.f32 1.442695, %v1429_v0  ;;  %v2241_v3 = vrot.slane %v2240_v53, 4  ;;  %v1804_v28 = vadd.f32 %v1803_v37, %v1802_v49  ;;  %v2233_v51 = vsel %vm92_vm0, %v2097_v27, 0.0 }
 0x232   :  { %v1668_v59 = vadd.f32 %v1667_v50, %v1666_v35  ;;  %v1660_v23 = vadd.f32 %v1659_v12, %v1658_v2  ;;  %v1837_v45 = vrot.slane %v4412_v17, 4  ;;  %v1427_v34 = vsub.f32 %v4335_v39, %v1278_v4 }
 0x233   :  { %v1291_v57 = vrot.slane %v4414_v52, 4  ;;  %v1116_v60 = vmax.f32 %v1114_v14, %v1115_v26  ;;  %v1102_v6 = vmax.f32 %v1100_v30, %v1101_v63  ;;  %v2225_v24 = vadd.f32 %v2224_v20, %v2223_v31 }
 0x234   :  { %3104 = vrcp.f32 %v1668_v59  ;;  %v1661_v55 = vrot.slane %v1660_v23, 1  ;;  %v2447_v5 = vadd.f32 %v2446_v58, %v2445_v48  ;;  %v1303_v25 = vrot.slane %v4417_v32, 4 }
 0x235   :  { %3106 = vpow2.f32 %v1541_v61  ;;  %v2232_v43 = vadd.f32 %v2231_v22, %v4356_v11  ;;  %v2242_v41 = vadd.f32 %v2241_v3, %v2240_v53  ;;  %v2234_v13 = vrot.slane %v2233_v51, 4 }
 0x236   :  { %v1662_v21 = vadd.f32 %v1661_v55, %v1660_v23  ;;  %v3099_v10 = vpop.eup %3098  ;;  %v1805_v39 = vrot.slane %v1804_v28, 1  ;;  %v1838_v49 = vadd.f32 %v4412_v17, %v1837_v45  ;;  %v1537_v19 = vmul.f32 1.442695, %v1427_v34  ;;  %v3274_v23 = vld [vmem:[%s5132_s0 + $0x168] sm:$0xff]  ;;  %v3275_v55 = vld [vmem:[%s5132_s0 + $0x78] sm:$0xff] }
 0x237   :  { %v1292_v18 = vmax.f32 %v4414_v52, %v1291_v57  ;;  %v3101_v54 = vpop.eup %3100  ;;  %v2038_v62 = vmul.f32 %v3099_v10, %v4346_v7  ;;  %v1400_v46 = vsub.f32 %v4342_v40, %v1116_v60  ;;  %v1103_v47 = vrot.slane %v1102_v6, 1  ;;  %v3273_v40 = vld [vmem:[%s5132_s0 + $0x140] sm:$0xff] }
 0x238   :  { %3108 = vrcp.f32 %v1662_v21  ;;  %v4433_v11 = vpop.eup %3102  ;;  %v4436_v22 = vadd.f32 %v2455_v29, %v4392_v56  ;;  %v2676_v14 = vsel %vm2663_vm2, %v2225_v24, %v4374_v38  ;;  %v2448_v30 = vrot.slane %v2447_v5, 1 }
 0x239   :  { %v1304_v31 = vmax.f32 %v4417_v32, %v1303_v25  ;;  %v2243_v48 = vrot.slane %v2242_v41, 2  ;;  %v2235_v0 = vadd.f32 %v2234_v13, %v2233_v51  ;;  %v2125_v7 = vmul.f32 %v3273_v40, %v2038_v62 }
 0x23a   :  { %v1293_v37 = vrot.slane %v1292_v18, 2  ;;  %v2048_v35 = vmul.f32 %v3101_v54, %v4298_v36  ;;  %v1806_v2 = vadd.f32 %v1805_v39, %v1804_v28  ;;  %3110 = vpow2.f32 %v1537_v19  ;;  %v4472_v54 = vpop.xlane.xlu1 %881 }
 0x23b   :  { %v1105_v56 = vrot.slane %v4431_v8, 4  ;;  %v1839_v53 = vrot.slane %v1838_v49, 2  ;;  %v2429_v38 = vsel %vm92_vm0, %v2125_v7, 0.0  ;;  %v1483_v42 = vmul.f32 1.442695, %v1400_v46 }
 0x23c   :  { %v1104_v27 = vmax.f32 %v1102_v6, %v1103_v47  ;;  %v4448_v4 = vsel %vm2665_vm3, %v2232_v43, %v2676_v14  ;;  %v2430_v50 = vrot.slane %v2429_v38, 4  ;;  %v1669_v12 = vrot.slane %v4433_v11, 4  ;;  %v3276_v14 = vld [vmem:[%s5132_s0 + $0x70] sm:$0xff] }
 0x23d   :  { %v1305_v26 = vrot.slane %v1304_v31, 2  ;;  %v2449_v29 = vadd.f32 %v2448_v30, %v2447_v5  ;;  %v4451_v20 = vadd.f32 %v2243_v48, %v2242_v41  ;;  %v2236_v36 = vrot.slane %v2235_v0, 2 }
 0x23e   :  { %v3105_v63 = vpop.eup %3104  ;;  %v1294_v58 = vmax.f32 %v1292_v18, %v1293_v37  ;;  %3112 = vrcp.f32 %v1806_v2  ;;  %v2431_v3 = vadd.f32 %v2430_v50, %v2429_v38  ;;  %v1106_v59 = vmax.f32 %v4431_v8, %v1105_v56 }
 0x23f   :  { %v4453_v61 = vpop.eup %3106  ;;  %v1988_v28 = vmul.f32 %v3105_v63, %v4387_v1  ;;  %v2130_v51 = vmul.f32 %v3274_v23, %v2048_v35  ;;  %v1840_v45 = vadd.f32 %v1839_v53, %v1838_v49  ;;  %3114 = vpow2.f32 %v1483_v42 }
 0x240   :  { %v1398_v34 = vsub.f32 %v4382_v44, %v1104_v27  ;;  %v2432_v57 = vrot.slane %v2431_v3, 2  ;;  %v1670_v6 = vadd.f32 %v4433_v11, %v1669_v12  ;;  %v1306_v1 = vmax.f32 %v1304_v31, %v1305_v26 }
 0x241   :  { %v2100_v60 = vmul.f32 %v3275_v55, %v1988_v28  ;;  %v2245_v5 = vrot.slane %v4451_v20, 1  ;;  %v2237_v25 = vadd.f32 %v2236_v36, %v2235_v0  ;;  %v1861_v43 = vrot.slane %v4453_v61, 4 }
 0x242   :  { %v3109_v24 = vpop.eup %3108  ;;  %v1295_v41 = vrot.slane %v1294_v58, 1  ;;  %v2433_v13 = vadd.f32 %v2432_v57, %v2431_v3  ;;  %v1107_v10 = vrot.slane %v1106_v59, 2  ;;  %v4470_v39 = vsel %vm92_vm0, %v2130_v51, 0.0 }
 0x243   :  { %v2254_v21 = vsel %vm92_vm0, %v2100_v60, 0.0  ;;  %v1986_v44 = vmul.f32 %v3109_v24, %v4401_v16  ;;  %v1841_v49 = vrot.slane %v1840_v45, 1  ;;  %v1479_v18 = vmul.f32 1.442695, %v1398_v34 }
 0x244   :  { %v2255_v19 = vrot.slane %v2254_v21, 4  ;;  %v4474_v62 = vpop.eup %3110  ;;  %v2434_v46 = vrot.slane %v2433_v13, 1  ;;  %v1671_v47 = vrot.slane %v1670_v6, 2  ;;  %v1307_v31 = vrot.slane %v1306_v1, 1 }
 0x245   :  { %v2099_v30 = vmul.f32 %v3276_v14, %v1986_v44  ;;  %v2238_v16 = vrot.slane %v2237_v25, 1  ;;  %v1862_v0 = vadd.f32 %v4453_v61, %v1861_v43  ;;  %v1296_v40 = vmax.f32 %v1294_v58, %v1295_v41 }
 0x246   :  { %v2256_v48 = vadd.f32 %v2255_v19, %v2254_v21  ;;  %v2435_v7 = vadd.f32 %v2434_v46, %v2433_v13  ;;  %v1108_v35 = vmax.f32 %v1106_v59, %v1107_v10  ;;  %v1147_v2 = vrot.slane %v4472_v54, 4  ;;  %v4505_v10 = vpop.xlane.xlu1 %977 }
 0x247   :  { %v2247_v37 = vsel %vm92_vm0, %v2099_v30, 0.0  ;;  %v1849_v38 = vrot.slane %v4474_v62, 4  ;;  %3116 = vpow2.f32 %v1479_v18  ;;  %v1842_v27 = vadd.f32 %v1841_v49, %v1840_v45 }
 0x248   :  { %v2257_v56 = vrot.slane %v2256_v48, 2  ;;  %v2248_v53 = vrot.slane %v2247_v37, 4  ;;  %v3113_v42 = vpop.eup %3112  ;;  %v2703_v50 = vsel %vm2661_vm1, %v4369_v9, %v2435_v7  ;;  %v1672_v12 = vadd.f32 %v1671_v47, %v1670_v6 }
 0x249   :  { %v1308_v26 = vmax.f32 %v1306_v1, %v1307_v31  ;;  %v4485_v63 = vpop.eup %3114  ;;  %v2704_v36 = vsel %vm2663_vm2, %v2449_v29, %v2703_v50  ;;  %v1863_v3 = vrot.slane %v1862_v0, 2  ;;  %v1430_v28 = vsub.f32 %v4414_v52, %v1296_v40  ;;  %v4498_v1 = vpop.xlane.xlu0 %956 }
 0x24a   :  { %v2249_v58 = vadd.f32 %v2248_v53, %v2247_v37  ;;  %v4491_v59 = vsel %vm2665_vm3, %v4436_v22, %v2704_v36  ;;  %v2258_v23 = vadd.f32 %v2257_v56, %v2256_v48  ;;  %v1109_v51 = vrot.slane %v1108_v35, 1  ;;  %v3277_v53 = vld [vmem:[%s5132_s0 + $0x130] sm:$0xff] }
 0x24b   :  { %v1148_v45 = vmax.f32 %v4472_v54, %v1147_v2  ;;  %v2246_v9 = vadd.f32 %v2245_v5, %v4451_v20  ;;  %v2239_v34 = vadd.f32 %v2238_v16, %v2237_v25  ;;  %v1850_v55 = vadd.f32 %v4474_v62, %v1849_v38 }
 0x24c   :  { %v2250_v57 = vrot.slane %v2249_v58, 2  ;;  %v1673_v60 = vrot.slane %v1672_v12, 1  ;;  %v1687_v29 = vrot.slane %v4485_v63, 4  ;;  %v1432_v6 = vsub.f32 %v4417_v32, %v1308_v26 }
 0x24d   :  { %v1110_v52 = vmax.f32 %v1108_v35, %v1109_v51  ;;  %v2034_v22 = vmul.f32 %v3113_v42, %v4362_v15  ;;  %3118 = vrcp.f32 %v1842_v27  ;;  %v1543_v43 = vmul.f32 1.442695, %v1430_v28 }
 0x24e   :  { %v2251_v24 = vadd.f32 %v2250_v57, %v2249_v58  ;;  %v2259_v41 = vrot.slane %v2258_v23, 1  ;;  %v1864_v13 = vadd.f32 %v1863_v3, %v1862_v0  ;;  %v1149_v5 = vrot.slane %v1148_v45, 2  ;;  %v4529_v57 = vpop.xlane.xlu0 %869 }
 0x24f   :  { %v1399_v20 = vsub.f32 %v4431_v8, %v1110_v52  ;;  %v2678_v25 = vsel %vm2667_vm4, %v2239_v34, %v4448_v4  ;;  %v1851_v44 = vrot.slane %v1850_v55, 2  ;;  %v1297_v32 = vrot.slane %v4498_v1, 4 }
 0x250   :  { %v2252_v21 = vrot.slane %v2251_v24, 1  ;;  %v1674_v49 = vadd.f32 %v1673_v60, %v1672_v12  ;;  %v1688_v15 = vadd.f32 %v4485_v63, %v1687_v29  ;;  %v1547_v19 = vmul.f32 1.442695, %v1432_v6  ;;  %v4534_v6 = vpop.xlane.xlu1 %947 }
 0x251   :  { %v1481_v18 = vmul.f32 1.442695, %v1399_v20  ;;  %v4508_v46 = vpop.eup %3116  ;;  %3120 = vpow2.f32 %v1543_v43  ;;  %v1150_v8 = vmax.f32 %v1148_v45, %v1149_v5  ;;  %v1298_v14 = vmax.f32 %v4498_v1, %v1297_v32 }
 0x252   :  { %v2253_v47 = vadd.f32 %v2252_v21, %v2251_v24  ;;  %v2260_v30 = vadd.f32 %v2259_v41, %v2258_v23  ;;  %v2679_v4 = vsel %vm2669_vm5, %v2246_v9, %v2678_v25  ;;  %v1865_v31 = vrot.slane %v1864_v13, 1 }
 0x253   :  { %v1339_v16 = vrot.slane %v4505_v10, 4  ;;  %v1852_v0 = vadd.f32 %v1851_v44, %v1850_v55  ;;  %3122 = vpow2.f32 %v1481_v18  ;;  %v1151_v40 = vrot.slane %v1150_v8, 1 }
 0x254   :  { %v2680_v48 = vsel %vm2671_vm6, %v2253_v47, %v2679_v4  ;;  %v1689_v37 = vrot.slane %v1688_v15, 2  ;;  %v1675_v35 = vrot.slane %v4508_v46, 4  ;;  %3124 = vpow2.f32 %v1547_v19 }
 0x255   :  { %v2681_v7 = vsel %vm2673_vm7, %v2260_v30, %v2680_v48  ;;  %3126 = vrcp.f32 %v1674_v49  ;;  %v1152_v2 = vmax.f32 %v1150_v8, %v1151_v40  ;;  %v1299_v56 = vrot.slane %v1298_v14, 2  ;;  %v4547_v8 = vpop.xlane.xlu0 %965 }
 0x256   :  { %2733 = vst.msk [vmem:[%s5135_s4 + $0x8] sm:$0xff] %vm92_vm0, %v2681_v7  ;;  %v2123_v38 = vmul.f32 %v3277_v53, %v2034_v22  ;;  %v1340_v42 = vmax.f32 %v4505_v10, %v1339_v16  ;;  %v2465_v50 = vrot.slane %v4470_v39, 4  ;;  %v1866_v12 = vadd.f32 %v1865_v31, %v1864_v13  ;;  %v4551_v31 = vpop.xlane.xlu1 %887 }
 0x257   :  { %v3119_v27 = vpop.eup %3118  ;;  %v1853_v26 = vrot.slane %v1852_v0, 1  ;;  %v1690_v36 = vadd.f32 %v1689_v37, %v1688_v15  ;;  %v1676_v58 = vadd.f32 %v4508_v46, %v1675_v35  ;;  %v1300_v3 = vmax.f32 %v1298_v14, %v1299_v56 }
 0x258   :  { %v1341_v28 = vrot.slane %v1340_v42, 2  ;;  %v1406_v23 = vsub.f32 %v4472_v54, %v1152_v2  ;;  %v2415_v51 = vsel %vm92_vm0, %v2123_v38, 0.0  ;;  %v2046_v45 = vmul.f32 %v3119_v27, %v4412_v17 }
 0x259   :  { %v1301_v9 = vrot.slane %v1300_v3, 1  ;;  %v2466_v60 = vadd.f32 %v2465_v50, %v4470_v39  ;;  %3128 = vrcp.f32 %v1866_v12  ;;  %v1854_v29 = vadd.f32 %v1853_v26, %v1852_v0  ;;  %v3278_v39 = vld [vmem:[%s5132_s0 + $0x160] sm:$0xff] }
 0x25a   :  { %v1342_v34 = vmax.f32 %v1340_v42, %v1341_v28  ;;  %v1691_v52 = vrot.slane %v1690_v36, 1  ;;  %v1677_v22 = vrot.slane %v1676_v58, 2  ;;  %v2416_v41 = vrot.slane %v2415_v51, 4  ;;  %v3279_v12 = vld [vmem:[%s5132_s0 + $0x80] sm:$0xff] }
 0x25b   :  { %v4531_v55 = vpop.eup %3120  ;;  %v1302_v24 = vmax.f32 %v1300_v3, %v1301_v9  ;;  %v1495_v17 = vmul.f32 1.442695, %v1406_v23  ;;  %v1123_v13 = vrot.slane %v4529_v57, 4  ;;  %v2129_v5 = vmul.f32 %v3278_v39, %v2046_v45 }
 0x25c   :  { %v1343_v54 = vrot.slane %v1342_v34, 1  ;;  %v1867_v25 = vrot.slane %v4531_v55, 4  ;;  %v2467_v32 = vrot.slane %v2466_v60, 2  ;;  %3130 = vrcp.f32 %v1854_v29 }
 0x25d   :  { %v4536_v43 = vpop.eup %3122  ;;  %v1431_v21 = vsub.f32 %v4498_v1, %v1302_v24  ;;  %v1692_v15 = vadd.f32 %v1691_v52, %v1690_v36  ;;  %v1678_v19 = vadd.f32 %v1677_v22, %v1676_v58  ;;  %v2417_v14 = vadd.f32 %v2416_v41, %v2415_v51  ;;  %v4571_v41 = vpop.xlane.xlu0 %866 }
 0x25e   :  { %v4539_v20 = vpop.eup %3124  ;;  %v1344_v49 = vmax.f32 %v1342_v34, %v1343_v54  ;;  %v1681_v18 = vrot.slane %v4536_v43, 4  ;;  %3132 = vpow2.f32 %v1495_v17  ;;  %v1124_v4 = vmax.f32 %v4529_v57, %v1123_v13 }
 0x25f   :  { %v3127_v44 = vpop.eup %3126  ;;  %v1545_v47 = vmul.f32 1.442695, %v1431_v21  ;;  %v1879_v30 = vrot.slane %v4539_v20, 4  ;;  %v2457_v1 = vsel %vm92_vm0, %v2129_v5, 0.0  ;;  %v1868_v48 = vadd.f32 %v4531_v55, %v1867_v25 }
 0x260   :  { %v1990_v16 = vmul.f32 %v3127_v44, %v4433_v11  ;;  %v1438_v0 = vsub.f32 %v4505_v10, %v1344_v49  ;;  %v1125_v40 = vrot.slane %v1124_v4, 2  ;;  %v1279_v7 = vrot.slane %v4534_v6, 4 }
 0x261   :  { %3134 = vpow2.f32 %v1545_v47  ;;  %v1315_v37 = vrot.slane %v4547_v8, 4  ;;  %v1679_v35 = vrot.slane %v1678_v19, 1  ;;  %v1682_v2 = vadd.f32 %v4536_v43, %v1681_v18 }
 0x262   :  { %3136 = vrcp.f32 %v1692_v15  ;;  %v1159_v56 = vrot.slane %v4551_v31, 4  ;;  %v1880_v38 = vadd.f32 %v4539_v20, %v1879_v30  ;;  %v1126_v11 = vmax.f32 %v1124_v4, %v1125_v40 }
 0x263   :  { %v3129_v53 = vpop.eup %3128  ;;  %v1280_v42 = vmax.f32 %v4534_v6, %v1279_v7  ;;  %v1316_v27 = vmax.f32 %v4547_v8, %v1315_v37  ;;  %v2418_v10 = vrot.slane %v2417_v14, 2  ;;  %v2458_v50 = vrot.slane %v2457_v1, 4 }
 0x264   :  { %v2101_v26 = vmul.f32 %v3279_v12, %v1990_v16  ;;  %v1869_v36 = vrot.slane %v1868_v48, 2  ;;  %v1559_v58 = vmul.f32 1.442695, %v1438_v0  ;;  %v1127_v3 = vrot.slane %v1126_v11, 1 }
 0x265   :  { %v1281_v28 = vrot.slane %v1280_v42, 2  ;;  %v1317_v23 = vrot.slane %v1316_v27, 2  ;;  %v4567_v51 = vadd.f32 %v2467_v32, %v2466_v60  ;;  %v1680_v45 = vadd.f32 %v1679_v35, %v1678_v19  ;;  %v3280_v19 = vld [vmem:[%s5132_s0 + $0x180] sm:$0xff] }
 0x266   :  { %v1683_v9 = vrot.slane %v1682_v2, 2  ;;  %v1160_v34 = vmax.f32 %v4551_v31, %v1159_v56  ;;  %v3131_v29 = vpop.eup %3130  ;;  %v2054_v52 = vmul.f32 %v3129_v53, %v4453_v61  ;;  %v1881_v22 = vrot.slane %v1880_v38, 2 }
 0x267   :  { %v1128_v24 = vmax.f32 %v1126_v11, %v1127_v3  ;;  %v1282_v54 = vmax.f32 %v1280_v42, %v1281_v28  ;;  %v2419_v17 = vadd.f32 %v2418_v10, %v2417_v14  ;;  %v2459_v13 = vadd.f32 %v2458_v50, %v2457_v1 }
 0x268   :  { %v2261_v39 = vsel %vm92_vm0, %v2101_v26, 0.0  ;;  %v1870_v5 = vadd.f32 %v1869_v36, %v1868_v48  ;;  %v4574_v25 = vpop.eup %3132  ;;  %3138 = vpow2.f32 %v1559_v58  ;;  %v1318_v44 = vmax.f32 %v1316_v27, %v1317_v23 }
 0x269   :  { %v1402_v60 = vsub.f32 %v4529_v57, %v1128_v24  ;;  %v1283_v21 = vrot.slane %v1282_v54, 1  ;;  %3140 = vrcp.f32 %v1680_v45  ;;  %v1684_v61 = vadd.f32 %v1683_v9, %v1682_v2 }
 0x26a   :  { %v1161_v49 = vrot.slane %v1160_v34, 2  ;;  %v1117_v15 = vrot.slane %v4571_v41, 4  ;;  %v2133_v18 = vmul.f32 %v3280_v19, %v2054_v52  ;;  %v2050_v47 = vmul.f32 %v3131_v29, %v4474_v62 }
 0x26b   :  { %v4577_v32 = vpop.eup %3134  ;;  %v1882_v14 = vadd.f32 %v1881_v22, %v1880_v38  ;;  %v1284_v30 = vmax.f32 %v1282_v54, %v1283_v21  ;;  %v2420_v57 = vrot.slane %v2419_v17, 1  ;;  %v1723_v1 = vrot.slane %v4574_v25, 4  ;;  %v3281_v38 = vld [vmem:[%s5132_s0 + $0x170] sm:$0xff]  ;;  %v3282_v21 = vld [vmem:[%s5132_s0 + $0x98] sm:$0xff] }
 0x26c   :  { %v3137_v4 = vpop.eup %3136  ;;  %v1487_v16 = vmul.f32 1.442695, %v1402_v60  ;;  %v1118_v48 = vmax.f32 %v4571_v41, %v1117_v15  ;;  %v2460_v0 = vrot.slane %v2459_v13, 2  ;;  %v1871_v40 = vrot.slane %v1870_v5, 1  ;;  %v4599_v60 = vpop.xlane.xlu1 %983 }
 0x26d   :  { %v1873_v7 = vrot.slane %v4577_v32, 4  ;;  %v1319_v37 = vrot.slane %v1318_v44, 1  ;;  %v2262_v35 = vrot.slane %v2261_v39, 4  ;;  %v1685_v2 = vrot.slane %v1684_v61, 1 }
 0x26e   :  { %v1428_v56 = vsub.f32 %v4534_v6, %v1284_v30  ;;  %v1162_v53 = vmax.f32 %v1160_v34, %v1161_v49  ;;  %v2485_v62 = vsel %vm92_vm0, %v2133_v18, 0.0  ;;  %v2131_v11 = vmul.f32 %v3281_v38, %v2050_v47 }
 0x26f   :  { %v1883_v42 = vrot.slane %v1882_v14, 1  ;;  %v1119_v27 = vrot.slane %v1118_v48, 2  ;;  %v1996_v10 = vmul.f32 %v3137_v4, %v4485_v63  ;;  %v1724_v50 = vadd.f32 %v4574_v25, %v1723_v1 }
 0x270   :  { %3142 = vpow2.f32 %v1487_v16  ;;  %v1539_v12 = vmul.f32 1.442695, %v1428_v56  ;;  %v1872_v26 = vadd.f32 %v1871_v40, %v1870_v5  ;;  %v1874_v36 = vadd.f32 %v4577_v32, %v1873_v7 }
 0x271   :  { %v1320_v6 = vmax.f32 %v1318_v44, %v1319_v37  ;;  %v1120_v58 = vmax.f32 %v1118_v48, %v1119_v27  ;;  %v2469_v3 = vrot.slane %v4567_v51, 1  ;;  %v1686_v28 = vadd.f32 %v1685_v2, %v1684_v61  ;;  %v4629_v27 = vpop.xlane.xlu0 %962 }
 0x272   :  { %3144 = vpow2.f32 %v1539_v12  ;;  %v1163_v23 = vrot.slane %v1162_v53, 1  ;;  %v4596_v45 = vpop.eup %3138  ;;  %v2421_v9 = vadd.f32 %v2420_v57, %v2419_v17  ;;  %v2461_v34 = vadd.f32 %v2460_v0, %v2459_v13 }
 0x273   :  { %v2263_v29 = vadd.f32 %v2262_v35, %v2261_v39  ;;  %v2486_v63 = vrot.slane %v2485_v62, 4  ;;  %v3141_v52 = vpop.eup %3140  ;;  %v2471_v22 = vsel %vm92_vm0, %v2131_v11, 0.0  ;;  %v1884_v24 = vadd.f32 %v1883_v42, %v1882_v14 }
 0x274   :  { %v1725_v54 = vrot.slane %v1724_v50, 2  ;;  %v1121_v5 = vrot.slane %v1120_v58, 1  ;;  %v2104_v44 = vmul.f32 %v3282_v21, %v1996_v10  ;;  %3146 = vrcp.f32 %v1872_v26 }
 0x275   :  { %v1875_v61 = vrot.slane %v1874_v36, 2  ;;  %v1434_v17 = vsub.f32 %v4547_v8, %v1320_v6  ;;  %3148 = vrcp.f32 %v1686_v28  ;;  %v1915_v13 = vrot.slane %v4596_v45, 4 }
 0x276   :  { %v1164_v39 = vmax.f32 %v1162_v53, %v1163_v23  ;;  %v1122_v49 = vmax.f32 %v1120_v58, %v1121_v5  ;;  %v4607_v15 = vadd.f32 %v2469_v3, %v4567_v51  ;;  %v2462_v19 = vrot.slane %v2461_v34, 1 }
 0x277   :  { %v2487_v18 = vadd.f32 %v2486_v63, %v2485_v62  ;;  %v1351_v47 = vrot.slane %v4599_v60, 4  ;;  %v2472_v14 = vrot.slane %v2471_v22, 4  ;;  %v1992_v30 = vmul.f32 %v3141_v52, %v4508_v46  ;;  %v3283_v62 = vld [vmem:[%s5132_s0 + $0x88] sm:$0xff] }
 0x278   :  { %v1726_v4 = vadd.f32 %v1725_v54, %v1724_v50  ;;  %v1401_v57 = vsub.f32 %v4571_v41, %v1122_v49  ;;  %v2282_v8 = vsel %vm92_vm0, %v2104_v44, 0.0  ;;  %3150 = vrcp.f32 %v1884_v24 }
 0x279   :  { %v1876_v1 = vadd.f32 %v1875_v61, %v1874_v36  ;;  %v1551_v16 = vmul.f32 1.442695, %v1434_v17  ;;  %v4617_v51 = vsel %vm2671_vm6, %v2421_v9, %v4310_v33  ;;  %v2264_v0 = vrot.slane %v2263_v29, 2 }
 0x27a   :  { %v4613_v48 = vpop.eup %3142  ;;  %v1916_v40 = vadd.f32 %v4596_v45, %v1915_v13  ;;  %v1408_v7 = vsub.f32 %v4551_v31, %v1164_v39  ;;  %v2463_v46 = vadd.f32 %v2462_v19, %v2461_v34  ;;  %v2488_v37 = vrot.slane %v2487_v18, 2 }
 0x27b   :  { %v1485_v35 = vmul.f32 1.442695, %v1401_v57  ;;  %v1352_v41 = vmax.f32 %v4599_v60, %v1351_v47  ;;  %v2473_v56 = vadd.f32 %v2472_v14, %v2471_v22  ;;  %v2283_v53 = vrot.slane %v2282_v8, 4 }
 0x27c   :  { %v4622_v2 = vpop.eup %3144  ;;  %v2102_v33 = vmul.f32 %v3283_v62, %v1992_v30  ;;  %v1727_v38 = vrot.slane %v1726_v4, 1  ;;  %v1877_v11 = vrot.slane %v1876_v1, 1  ;;  %v1699_v42 = vrot.slane %v4613_v48, 4 }
 0x27d   :  { %v1855_v31 = vrot.slane %v4622_v2, 4  ;;  %3152 = vpow2.f32 %v1551_v16  ;;  %v2265_v10 = vadd.f32 %v2264_v0, %v2263_v29  ;;  %v2706_v50 = vsel %vm2667_vm4, %v2463_v46, %v4491_v59  ;;  %v3285_v16 = vld [vmem:[%s5132_s0 + $0x90] sm:$0xff] }
 0x27e   :  { %v1917_v12 = vrot.slane %v1916_v40, 2  ;;  %v1499_v26 = vmul.f32 1.442695, %v1408_v7  ;;  %v3147_v36 = vpop.eup %3146  ;;  %v2489_v6 = vadd.f32 %v2488_v37, %v2487_v18  ;;  %3154 = vpow2.f32 %v1485_v35  ;;  %v4640_v18 = vpop.xlane.xlu0 %875 }
 0x27f   :  { %v1856_v58 = vadd.f32 %v4622_v2, %v1855_v31  ;;  %v1353_v3 = vrot.slane %v1352_v41, 2  ;;  %v3149_v28 = vpop.eup %3148  ;;  %v2474_v23 = vrot.slane %v2473_v56, 2  ;;  %v2284_v9 = vadd.f32 %v2283_v53, %v2282_v8 }
 0x280   :  { %v1728_v34 = vadd.f32 %v1727_v38, %v1726_v4  ;;  %v1309_v63 = vrot.slane %v4629_v27, 4  ;;  %v2268_v52 = vsel %vm92_vm0, %v2102_v33, 0.0  ;;  %v1878_v29 = vadd.f32 %v1877_v11, %v1876_v1  ;;  %v3286_v38 = vld [vmem:[%s5132_s0 + $0x198] sm:$0xff] }
 0x281   :  { %v1700_v22 = vadd.f32 %v4613_v48, %v1699_v42  ;;  %v1857_v59 = vrot.slane %v1856_v58, 2  ;;  %v2266_v24 = vrot.slane %v2265_v10, 1  ;;  %v2056_v54 = vmul.f32 %v3147_v36, %v4531_v55 }
 0x282   :  { %v1918_v5 = vadd.f32 %v1917_v12, %v1916_v40  ;;  %3156 = vpow2.f32 %v1499_v26  ;;  %v3151_v21 = vpop.eup %3150  ;;  %v2490_v44 = vrot.slane %v2489_v6, 1  ;;  %v1994_v61 = vmul.f32 %v3149_v28, %v4536_v43  ;;  %v3284_v43 = vld [vmem:[%s5132_s0 + $0x188] sm:$0xff] }
 0x283   :  { %v1858_v17 = vadd.f32 %v1857_v59, %v1856_v58  ;;  %v1354_v13 = vmax.f32 %v1352_v41, %v1353_v3  ;;  %v2475_v39 = vadd.f32 %v2474_v23, %v2473_v56  ;;  %v2269_v49 = vrot.slane %v2268_v52, 4  ;;  %v4656_v41 = vpop.xlane.xlu1 %884 }
 0x284   :  { %3158 = vrcp.f32 %v1728_v34  ;;  %v1310_v19 = vmax.f32 %v4629_v27, %v1309_v63  ;;  %v2285_v47 = vrot.slane %v2284_v9, 2  ;;  %v1701_v14 = vrot.slane %v1700_v22, 2 }
 0x285   :  { %3160 = vrcp.f32 %v1878_v29  ;;  %v1859_v30 = vrot.slane %v1858_v17, 1  ;;  %v2707_v55 = vsel %vm2669_vm5, %v4607_v15, %v2706_v50  ;;  %v2060_v4 = vmul.f32 %v3151_v21, %v4539_v20 }
 0x286   :  { %v2134_v57 = vmul.f32 %v3284_v43, %v2056_v54  ;;  %v1919_v8 = vrot.slane %v1918_v5, 1  ;;  %v2103_v0 = vmul.f32 %v3285_v16, %v1994_v61  ;;  %v1355_v7 = vrot.slane %v1354_v13, 1 }
 0x287   :  { %v4648_v1 = vpop.eup %3152  ;;  %v1860_v40 = vadd.f32 %v1859_v30, %v1858_v17  ;;  %v1135_v46 = vrot.slane %v4640_v18, 4  ;;  %v4654_v15 = vadd.f32 %v2266_v24, %v2265_v10  ;;  %v2476_v20 = vrot.slane %v2475_v39, 1 }
 0x288   :  { %v2270_v37 = vadd.f32 %v2269_v49, %v2268_v52  ;;  %v1311_v35 = vrot.slane %v1310_v19, 2  ;;  %v4658_v56 = vpop.eup %3154  ;;  %v4660_v53 = vadd.f32 %v2490_v44, %v2489_v6  ;;  %v2286_v62 = vadd.f32 %v2285_v47, %v2284_v9 }
 0x289   :  { %v1702_v33 = vadd.f32 %v1701_v14, %v1700_v22  ;;  %3162 = vrcp.f32 %v1860_v40  ;;  %v2136_v11 = vmul.f32 %v3286_v38, %v2060_v4  ;;  %v2492_v42 = vsel %vm92_vm0, %v2134_v57, 0.0 }
 0x28a   :  { %v1920_v31 = vadd.f32 %v1919_v8, %v1918_v5  ;;  %v1891_v10 = vrot.slane %v4648_v1, 4  ;;  %v2275_v50 = vsel %vm92_vm0, %v2103_v0, 0.0  ;;  %v1356_v12 = vmax.f32 %v1354_v13, %v1355_v7 }
 0x28b   :  { %v1153_v26 = vrot.slane %v4656_v41, 4  ;;  %v1136_v36 = vmax.f32 %v4640_v18, %v1135_v46  ;;  %v2477_v58 = vadd.f32 %v2476_v20, %v2475_v39  ;;  %v2271_v3 = vrot.slane %v2270_v37, 2 }
 0x28c   :  { %v4670_v6 = vpop.eup %3156  ;;  %v1693_v28 = vrot.slane %v4658_v56, 4  ;;  %v1312_v23 = vmax.f32 %v1310_v19, %v1311_v35  ;;  %v2287_v9 = vrot.slane %v2286_v62, 1  ;;  %v2493_v34 = vrot.slane %v2492_v42, 4 }
 0x28d   :  { %v1703_v63 = vrot.slane %v1702_v33, 1  ;;  %v1137_v52 = vrot.slane %v1136_v36, 2  ;;  %v2506_v22 = vsel %vm92_vm0, %v2136_v11, 0.0  ;;  %v2276_v59 = vrot.slane %v2275_v50, 4  ;;  %v3289_v11 = vld [vmem:[%s5132_s0 + $0x178] sm:$0xff] }
 0x28e   :  { %v3159_v29 = vpop.eup %3158  ;;  %3164 = vrcp.f32 %v1920_v31  ;;  %v1892_v24 = vadd.f32 %v4648_v1, %v1891_v10  ;;  %v1735_v5 = vrot.slane %v4670_v6, 4  ;;  %v1440_v21 = vsub.f32 %v4599_v60, %v1356_v12  ;;  %v4697_v10 = vpop.xlane.xlu0 %872 }
 0x28f   :  { %v3161_v54 = vpop.eup %3160  ;;  %v1154_v44 = vmax.f32 %v4656_v41, %v1153_v26  ;;  %v1138_v61 = vmax.f32 %v1136_v36, %v1137_v52  ;;  %v4679_v17 = vsel %vm2671_vm6, %v2477_v58, %v2707_v55  ;;  %v2272_v13 = vadd.f32 %v2271_v3, %v2270_v37 }
 0x290   :  { %v1694_v39 = vadd.f32 %v4658_v56, %v1693_v28  ;;  %v1313_v49 = vrot.slane %v1312_v23, 1  ;;  %v2507_v19 = vrot.slane %v2506_v22, 4  ;;  %v2494_v47 = vadd.f32 %v2493_v34, %v2492_v42 }
 0x291   :  { %v2008_v14 = vmul.f32 %v3159_v29, %v4574_v25  ;;  %v1704_v30 = vadd.f32 %v1703_v63, %v1702_v33  ;;  %v4683_v4 = vadd.f32 %v2287_v9, %v2286_v62  ;;  %v2058_v43 = vmul.f32 %v3161_v54, %v4577_v32  ;;  %v3287_v62 = vld [vmem:[%s5132_s0 + $0xc8] sm:$0xff]  ;;  %v3288_v33 = vld [vmem:[%s5132_s0 + $0x190] sm:$0xff] }
 0x292   :  { %v1893_v60 = vrot.slane %v1892_v24, 2  ;;  %v1139_v57 = vrot.slane %v1138_v61, 1  ;;  %v2277_v16 = vadd.f32 %v2276_v59, %v2275_v50  ;;  %v1736_v55 = vadd.f32 %v4670_v6, %v1735_v5 }
 0x293   :  { %v3163_v8 = vpop.eup %3162  ;;  %v1563_v0 = vmul.f32 1.442695, %v1440_v21  ;;  %v1155_v40 = vrot.slane %v1154_v44, 2  ;;  %v2273_v7 = vrot.slane %v2272_v13, 1  ;;  %v1695_v20 = vrot.slane %v1694_v39, 2 }
 0x294   :  { %v2052_v46 = vmul.f32 %v3163_v8, %v4622_v2  ;;  %v1314_v37 = vmax.f32 %v1312_v23, %v1313_v49  ;;  %v2508_v35 = vadd.f32 %v2507_v19, %v2506_v22  ;;  %v2495_v25 = vrot.slane %v2494_v47, 2  ;;  %v4708_v49 = vpop.xlane.xlu1 %980  ;;  %v3290_v8 = vld [vmem:[%s5132_s0 + $0x1c8] sm:$0xff] }
 0x295   :  { %v2110_v32 = vmul.f32 %v3287_v62, %v2008_v14  ;;  %3166 = vrcp.f32 %v1704_v30  ;;  %v2135_v38 = vmul.f32 %v3288_v33, %v2058_v43  ;;  %v1894_v42 = vadd.f32 %v1893_v60, %v1892_v24 }
 0x296   :  { %v2132_v2 = vmul.f32 %v3289_v11, %v2052_v46  ;;  %v1140_v31 = vmax.f32 %v1138_v61, %v1139_v57  ;;  %v2278_v50 = vrot.slane %v2277_v16, 2  ;;  %v1737_v12 = vrot.slane %v1736_v55, 2  ;;  %v4717_v46 = vpop.xlane.xlu0 %968 }
 0x297   :  { %3168 = vpow2.f32 %v1563_v0  ;;  %v1156_v26 = vmax.f32 %v1154_v44, %v1155_v40  ;;  %v1696_v3 = vadd.f32 %v1695_v20, %v1694_v39  ;;  %v1433_v28 = vsub.f32 %v4629_v27, %v1314_v37 }
 0x298   :  { %v3165_v36 = vpop.eup %3164  ;;  %v2478_v58 = vsel %vm92_vm0, %v2132_v2, 0.0  ;;  %v1404_v23 = vsub.f32 %v4640_v18, %v1140_v31  ;;  %v2509_v9 = vrot.slane %v2508_v35, 2  ;;  %v2324_v34 = vsel %vm92_vm0, %v2110_v32, 0.0  ;;  %v4723_v11 = vpop.xlane.xlu1 %893 }
 0x299   :  { %v2479_v63 = vrot.slane %v2478_v58, 4  ;;  %v1129_v52 = vrot.slane %v4697_v10, 4  ;;  %v4704_v29 = vadd.f32 %v2495_v25, %v2494_v47  ;;  %v2499_v22 = vsel %vm92_vm0, %v2135_v38, 0.0 }
 0x29a   :  { %v1895_v59 = vrot.slane %v1894_v42, 1  ;;  %v1491_v24 = vmul.f32 1.442695, %v1404_v23  ;;  %v2072_v54 = vmul.f32 %v3165_v36, %v4596_v45  ;;  %v1738_v21 = vadd.f32 %v1737_v12, %v1736_v55 }
 0x29b   :  { %v2480_v5 = vadd.f32 %v2479_v63, %v2478_v58  ;;  %v1157_v44 = vrot.slane %v1156_v26, 1  ;;  %v2279_v27 = vadd.f32 %v2278_v50, %v2277_v16  ;;  %v2325_v61 = vrot.slane %v2324_v34, 4 }
 0x29c   :  { %v1697_v18 = vrot.slane %v1696_v3, 1  ;;  %v1549_v39 = vmul.f32 1.442695, %v1433_v28  ;;  %v2500_v19 = vrot.slane %v2499_v22, 4  ;;  %3170 = vpow2.f32 %v1491_v24 }
 0x29d   :  { %v2481_v14 = vrot.slane %v2480_v5, 2  ;;  %v1130_v47 = vmax.f32 %v4697_v10, %v1129_v52  ;;  %v2274_v30 = vadd.f32 %v2273_v7, %v2272_v13  ;;  %v4711_v43 = vadd.f32 %v2509_v9, %v2508_v35 }
 0x29e   :  { %v2497_v60 = vrot.slane %v4704_v29, 1  ;;  %v1896_v45 = vadd.f32 %v1895_v59, %v1894_v42  ;;  %v2142_v16 = vmul.f32 %v3290_v8, %v2072_v54  ;;  %v1739_v0 = vrot.slane %v1738_v21, 1 }
 0x29f   :  { %v3167_v57 = vpop.eup %3166  ;;  %v2482_v55 = vadd.f32 %v2481_v14, %v2480_v5  ;;  %v1158_v40 = vmax.f32 %v1156_v26, %v1157_v44  ;;  %v1698_v20 = vadd.f32 %v1697_v18, %v1696_v3  ;;  %3172 = vpow2.f32 %v1549_v39 }
 0x2a0   :  { %v1345_v13 = vrot.slane %v4708_v49, 4  ;;  %v1131_v7 = vrot.slane %v1130_v47, 2  ;;  %v2280_v35 = vrot.slane %v2279_v27, 1  ;;  %v2326_v25 = vadd.f32 %v2325_v61, %v2324_v34  ;;  %v3291_v34 = vld [vmem:[%s5132_s0 + $0xa8] sm:$0xff] }
 0x2a1   :  { %v4720_v37 = vpop.eup %3168  ;;  %v2501_v62 = vadd.f32 %v2500_v19, %v2499_v22  ;;  %v2483_v32 = vrot.slane %v2482_v55, 1  ;;  %v2000_v33 = vmul.f32 %v3167_v57, %v4613_v48  ;;  %3174 = vrcp.f32 %v1896_v45 }
 0x2a2   :  { %v1132_v38 = vmax.f32 %v1130_v47, %v1131_v7  ;;  %v1321_v2 = vrot.slane %v4717_v46, 4  ;;  %v2548_v42 = vsel %vm92_vm0, %v2142_v16, 0.0  ;;  %v1740_v50 = vadd.f32 %v1739_v0, %v1738_v21 }
 0x2a3   :  { %v2484_v31 = vadd.f32 %v2483_v32, %v2482_v55  ;;  %v1407_v12 = vsub.f32 %v4656_v41, %v1158_v40  ;;  %3176 = vrcp.f32 %v1698_v20  ;;  %v1927_v26 = vrot.slane %v4720_v37, 4 }
 0x2a4   :  { %v1346_v36 = vmax.f32 %v4708_v49, %v1345_v13  ;;  %v1133_v58 = vrot.slane %v1132_v38, 1  ;;  %v2281_v3 = vadd.f32 %v2280_v35, %v2279_v27  ;;  %v2327_v48 = vrot.slane %v2326_v25, 2  ;;  %v4746_v27 = vpop.xlane.xlu1 %989 }
 0x2a5   :  { %v2709_v28 = vsel %vm2673_vm7, %v2484_v31, %v4679_v17  ;;  %v1322_v23 = vmax.f32 %v4717_v46, %v1321_v2  ;;  %v2549_v9 = vrot.slane %v2548_v42, 4  ;;  %v2106_v63 = vmul.f32 %v3291_v34, %v2000_v33  ;;  %v4762_v33 = vpop.xlane.xlu0 %878 }
 0x2a6   :  { %2737 = vst.msk [vmem:[%s5135_s4 + $0x28] sm:$0xff] %vm92_vm0, %v2709_v28  ;;  %v1134_v41 = vmax.f32 %v1132_v38, %v1133_v58  ;;  %v1171_v52 = vrot.slane %v4723_v11, 4  ;;  %v4741_v22 = vpop.eup %3170  ;;  %v2502_v59 = vrot.slane %v2501_v62, 2  ;;  %3178 = vrcp.f32 %v1740_v50 }
 0x2a7   :  { %v1497_v17 = vmul.f32 1.442695, %v1407_v12  ;;  %v1323_v24 = vrot.slane %v1322_v23, 2  ;;  %v1928_v54 = vadd.f32 %v4720_v37, %v1927_v26  ;;  %v1711_v5 = vrot.slane %v4741_v22, 4 }
 0x2a8   :  { %v1347_v21 = vrot.slane %v1346_v36, 2  ;;  %v1403_v44 = vsub.f32 %v4697_v10, %v1134_v41  ;;  %v2682_v61 = vsel %vm2661_vm1, %v2274_v30, %v4654_v15  ;;  %v2511_v18 = vrot.slane %v4711_v43, 1  ;;  %v4764_v38 = vpop.xlane.xlu1 %890  ;;  %v3292_v41 = vld [vmem:[%s5132_s0 + $0x1a8] sm:$0xff] }
 0x2a9   :  { %v2498_v39 = vadd.f32 %v2497_v60, %v4704_v29  ;;  %v2328_v19 = vadd.f32 %v2327_v48, %v2326_v25  ;;  %v4752_v14 = vpop.eup %3172  ;;  %v2296_v47 = vsel %vm92_vm0, %v2106_v63, 0.0  ;;  %v1712_v45 = vadd.f32 %v4741_v22, %v1711_v5 }
 0x2aa   :  { %v1172_v57 = vmax.f32 %v4723_v11, %v1171_v52  ;;  %v1324_v8 = vmax.f32 %v1322_v23, %v1323_v24  ;;  %v2503_v10 = vadd.f32 %v2502_v59, %v2501_v62  ;;  %v2550_v16 = vadd.f32 %v2549_v9, %v2548_v42 }
 0x2ab   :  { %3180 = vpow2.f32 %v1497_v17  ;;  %v1489_v55 = vmul.f32 1.442695, %v1403_v44  ;;  %v3175_v0 = vpop.eup %3174  ;;  %v2683_v15 = vsel %vm2663_vm2, %v2281_v3, %v2682_v61  ;;  %v1929_v30 = vrot.slane %v1928_v54, 2  ;;  %v3293_v44 = vld [vmem:[%s5132_s0 + $0xa0] sm:$0xff] }
 0x2ac   :  { %v1713_v40 = vrot.slane %v1712_v45, 2  ;;  %v1348_v29 = vmax.f32 %v1346_v36, %v1347_v21  ;;  %v2329_v60 = vrot.slane %v2328_v19, 1  ;;  %v2297_v20 = vrot.slane %v2296_v47, 4  ;;  %v4796_v5 = vpop.xlane.xlu1 %986 }
 0x2ad   :  { %v1885_v13 = vrot.slane %v4752_v14, 4  ;;  %3182 = vpow2.f32 %v1489_v55  ;;  %v3177_v7 = vpop.eup %3176  ;;  %v4760_v35 = vadd.f32 %v2511_v18, %v4711_v43  ;;  %v1173_v62 = vrot.slane %v1172_v57, 2 }
 0x2ae   :  { %v1714_v25 = vadd.f32 %v1713_v40, %v1712_v45  ;;  %v1325_v32 = vrot.slane %v1324_v8, 1  ;;  %v4768_v2 = vsel %vm2661_vm1, %v2498_v39, %v4660_v53  ;;  %v2504_v42 = vrot.slane %v2503_v10, 1 }
 0x2af   :  { %v2551_v31 = vrot.slane %v2550_v16, 2  ;;  %v2064_v50 = vmul.f32 %v3175_v0, %v4648_v1  ;;  %v4773_v12 = vsel %vm2665_vm3, %v4683_v4, %v2683_v15  ;;  %v4775_v43 = vadd.f32 %v1929_v30, %v1928_v54  ;;  %v4794_v54 = vpop.xlane.xlu0 %974 }
 0x2b0   :  { %v1715_v26 = vrot.slane %v1714_v25, 1  ;;  %v1349_v36 = vrot.slane %v1348_v29, 1  ;;  %v3179_v58 = vpop.eup %3178  ;;  %v4777_v3 = vadd.f32 %v2329_v60, %v2328_v19  ;;  %v2298_v48 = vadd.f32 %v2297_v20, %v2296_v47 }
 0x2b1   :  { %v1998_v28 = vmul.f32 %v3177_v7, %v4658_v56  ;;  %v4781_v53 = vadd.f32 %v4752_v14, %v1885_v13  ;;  %v1174_v9 = vmax.f32 %v1172_v57, %v1173_v62  ;;  %v1326_v1 = vmax.f32 %v1324_v8, %v1325_v32 }
 0x2b2   :  { %v1716_v23 = vadd.f32 %v1715_v26, %v1714_v25  ;;  %v1363_v34 = vrot.slane %v4746_v27, 4  ;;  %v4784_v4 = vadd.f32 %v2504_v42, %v2503_v10  ;;  %v4786_v63 = vadd.f32 %v2551_v31, %v2550_v16 }
 0x2b3   :  { %v2138_v52 = vmul.f32 %v3292_v41, %v2064_v50  ;;  %v1141_v59 = vrot.slane %v4762_v33, 4  ;;  %v2012_v56 = vmul.f32 %v3179_v58, %v4670_v6  ;;  %v1931_v17 = vrot.slane %v4775_v43, 1 }
 0x2b4   :  { %3184 = vrcp.f32 %v1716_v23  ;;  %v1350_v24 = vmax.f32 %v1348_v29, %v1349_v36  ;;  %v2105_v61 = vmul.f32 %v3293_v44, %v1998_v28  ;;  %v1887_v18 = vrot.slane %v4781_v53, 2 }
 0x2b5   :  { %v4798_v21 = vpop.eup %3180  ;;  %v1142_v39 = vmax.f32 %v4762_v33, %v1141_v59  ;;  %v1165_v6 = vrot.slane %v4764_v38, 4  ;;  %v2299_v19 = vrot.slane %v2298_v48, 2  ;;  %v1175_v47 = vrot.slane %v1174_v9, 1 }
 0x2b6   :  { %v1435_v45 = vsub.f32 %v4717_v46, %v1326_v1  ;;  %v1364_v57 = vmax.f32 %v4746_v27, %v1363_v34  ;;  %v1333_v55 = vrot.slane %v4794_v54, 4  ;;  %v1357_v0 = vrot.slane %v4796_v5, 4 }
 0x2b7   :  { %v4808_v8 = vpop.eup %3182  ;;  %v1143_v10 = vrot.slane %v1142_v39, 2  ;;  %v1166_v16 = vmax.f32 %v4764_v38, %v1165_v6  ;;  %v4814_v15 = vsel %vm92_vm0, %v2138_v52, 0.0  ;;  %v1729_v30 = vrot.slane %v4798_v21, 4 }
 0x2b8   :  { %v1439_v40 = vsub.f32 %v4708_v49, %v1350_v24  ;;  %v1705_v46 = vrot.slane %v4808_v8, 4  ;;  %v2289_v29 = vsel %vm92_vm0, %v2105_v61, 0.0  ;;  %v1334_v13 = vmax.f32 %v4794_v54, %v1333_v55  ;;  %v3294_v49 = vld [vmem:[%s5132_s0 + $0xd8] sm:$0xff] }
 0x2b9   :  { %v1144_v60 = vmax.f32 %v1142_v39, %v1143_v10  ;;  %v1167_v20 = vrot.slane %v1166_v16, 2  ;;  %v1176_v25 = vmax.f32 %v1174_v9, %v1175_v47  ;;  %v1553_v62 = vmul.f32 1.442695, %v1435_v45 }
 0x2ba   :  { %v1706_v7 = vadd.f32 %v4808_v8, %v1705_v46  ;;  %v1365_v32 = vrot.slane %v1364_v57, 2  ;;  %v1335_v50 = vrot.slane %v1334_v13, 2  ;;  %v1358_v26 = vmax.f32 %v4796_v5, %v1357_v0  ;;  %v3295_v46 = vld [vmem:[%s5132_s0 + $0xb8] sm:$0xff] }
 0x2bb   :  { %v1145_v42 = vrot.slane %v1144_v60, 1  ;;  %v1168_v31 = vmax.f32 %v1166_v16, %v1167_v20  ;;  %v4823_v36 = vadd.f32 %v2299_v19, %v2298_v48  ;;  %v2112_v58 = vmul.f32 %v3294_v49, %v2012_v56 }
 0x2bc   :  { %v1561_v28 = vmul.f32 1.442695, %v1439_v40  ;;  %v1707_v23 = vrot.slane %v1706_v7, 2  ;;  %v2290_v1 = vrot.slane %v2289_v29, 4  ;;  %v1730_v34 = vadd.f32 %v4798_v21, %v1729_v30 }
 0x2bd   :  { %v1146_v9 = vmax.f32 %v1144_v60, %v1145_v42  ;;  %v1169_v41 = vrot.slane %v1168_v31, 1  ;;  %v1410_v24 = vsub.f32 %v4723_v11, %v1176_v25  ;;  %v1366_v44 = vmax.f32 %v1364_v57, %v1365_v32 }
 0x2be   :  { %v3185_v52 = vpop.eup %3184  ;;  %v1708_v59 = vadd.f32 %v1707_v23, %v1706_v7  ;;  %v1336_v61 = vmax.f32 %v1334_v13, %v1335_v50  ;;  %3186 = vpow2.f32 %v1553_v62  ;;  %v1359_v6 = vrot.slane %v1358_v26, 2 }
 0x2bf   :  { %v1405_v48 = vsub.f32 %v4762_v33, %v1146_v9  ;;  %v1170_v39 = vmax.f32 %v1168_v31, %v1169_v41  ;;  %v1888_v56 = vadd.f32 %v1887_v18, %v4781_v53  ;;  %v2004_v19 = vmul.f32 %v3185_v52, %v4741_v22 }
 0x2c0   :  { %3188 = vpow2.f32 %v1561_v28  ;;  %v1709_v47 = vrot.slane %v1708_v59, 1  ;;  %v2291_v45 = vadd.f32 %v2290_v1, %v2289_v29  ;;  %v1731_v10 = vrot.slane %v1730_v34, 2  ;;  %v4863_v28 = vpop.xlane.xlu1 %899 }
 0x2c1   :  { %v1493_v16 = vmul.f32 1.442695, %v1405_v48  ;;  %v1337_v55 = vrot.slane %v1336_v61, 1  ;;  %v1503_v30 = vmul.f32 1.442695, %v1410_v24  ;;  %v1367_v11 = vrot.slane %v1366_v44, 1 }
 0x2c2   :  { %v1710_v0 = vadd.f32 %v1709_v47, %v1708_v59  ;;  %v1409_v57 = vsub.f32 %v4764_v38, %v1170_v39  ;;  %v2711_v33 = vsel %vm2663_vm2, %v4784_v4, %v4768_v2  ;;  %v1932_v53 = vadd.f32 %v1931_v17, %v4775_v43  ;;  %v4844_v38 = vpop.xlane.xlu0 %923 }
 0x2c3   :  { %3190 = vpow2.f32 %v1493_v16  ;;  %v1360_v22 = vmax.f32 %v1358_v26, %v1359_v6  ;;  %v2521_v18 = vrot.slane %v4814_v15, 4  ;;  %v1889_v40 = vrot.slane %v1888_v56, 1 }
 0x2c4   :  { %v2108_v29 = vmul.f32 %v3295_v46, %v2004_v19  ;;  %3192 = vrcp.f32 %v1710_v0  ;;  %v2301_v60 = vrot.slane %v4823_v36, 1  ;;  %v4848_v2 = vsel %vm92_vm0, %v2112_v58, 0.0 }
 0x2c5   :  { %v1501_v4 = vmul.f32 1.442695, %v1409_v57  ;;  %v1338_v43 = vmax.f32 %v1336_v61, %v1337_v55  ;;  %v2292_v17 = vrot.slane %v2291_v45, 2  ;;  %v1732_v20 = vadd.f32 %v1731_v10, %v1730_v34 }
 0x2c6   :  { %3194 = vpow2.f32 %v1503_v30  ;;  %v1368_v13 = vmax.f32 %v1366_v44, %v1367_v11  ;;  %v4852_v7 = vsel %vm2665_vm3, %v4760_v35, %v2711_v33  ;;  %v1361_v62 = vrot.slane %v1360_v22, 1  ;;  %v4871_v9 = vpop.xlane.xlu0 %971 }
 0x2c7   :  { %3196 = vpow2.f32 %v1501_v4  ;;  %v1437_v25 = vsub.f32 %v4794_v54, %v1338_v43  ;;  %v4856_v32 = vadd.f32 %v2521_v18, %v4814_v15  ;;  %v1890_v42 = vadd.f32 %v1889_v40, %v1888_v56  ;;  %v3296_v40 = vld [vmem:[%s5132_s0 + $0xb0] sm:$0xff] }
 0x2c8   :  { %3198 = vrcp.f32 %v1932_v53  ;;  %v2310_v31 = vsel %vm92_vm0, %v2108_v29, 0.0  ;;  %v4859_v50 = vpop.eup %3186  ;;  %v2339_v26 = vrot.slane %v4848_v2, 4  ;;  %v1362_v58 = vmax.f32 %v1360_v22, %v1361_v62  ;;  %v4901_v62 = vpop.xlane.xlu1 %896 }
 0x2c9   :  { %v1557_v49 = vmul.f32 1.442695, %v1437_v25  ;;  %v1231_v35 = vrot.slane %v4844_v38, 4  ;;  %v4868_v54 = vadd.f32 %v2301_v60, %v4823_v36  ;;  %v2293_v15 = vadd.f32 %v2292_v17, %v2291_v45 }
 0x2ca   :  { %v4865_v23 = vpop.eup %3188  ;;  %v1733_v1 = vrot.slane %v1732_v20, 1  ;;  %v1442_v34 = vsub.f32 %v4746_v27, %v1368_v13  ;;  %v2311_v41 = vrot.slane %v2310_v31, 4  ;;  %v1441_v52 = vsub.f32 %v4796_v5, %v1362_v58 }
 0x2cb   :  { %3200 = vpow2.f32 %v1557_v49  ;;  %v1232_v59 = vmax.f32 %v4844_v38, %v1231_v35  ;;  %v2523_v24 = vrot.slane %v4856_v32, 2  ;;  %v1897_v44 = vrot.slane %v4859_v50, 4 }
 0x2cc   :  { %3202 = vrcp.f32 %v1890_v42  ;;  %v1183_v36 = vrot.slane %v4863_v28, 4  ;;  %v1921_v48 = vrot.slane %v4865_v23, 4  ;;  %v1565_v27 = vmul.f32 1.442695, %v1441_v52 }
 0x2cd   :  { %v4878_v61 = vpop.eup %3190  ;;  %v1233_v39 = vrot.slane %v1232_v59, 2  ;;  %v1327_v6 = vrot.slane %v4871_v9, 4  ;;  %v1734_v19 = vadd.f32 %v1733_v1, %v1732_v20  ;;  %v1567_v5 = vmul.f32 1.442695, %v1442_v34 }
 0x2ce   :  { %v3193_v56 = vpop.eup %3192  ;;  %v1717_v47 = vrot.slane %v4878_v61, 4  ;;  %v1184_v45 = vmax.f32 %v4863_v28, %v1183_v36  ;;  %v2294_v10 = vrot.slane %v2293_v15, 1  ;;  %v2312_v16 = vadd.f32 %v2311_v41, %v2310_v31 }
 0x2cf   :  { %v2002_v55 = vmul.f32 %v3193_v56, %v4808_v8  ;;  %v1234_v0 = vmax.f32 %v1232_v59, %v1233_v39  ;;  %v1898_v11 = vadd.f32 %v4859_v50, %v1897_v44  ;;  %v1328_v53 = vmax.f32 %v4871_v9, %v1327_v6 }
 0x2d0   :  { %v4885_v30 = vpop.eup %3194  ;;  %v1718_v57 = vadd.f32 %v4878_v61, %v1717_v47  ;;  %v1185_v33 = vrot.slane %v1184_v45, 2  ;;  %v1922_v18 = vadd.f32 %v4865_v23, %v1921_v48  ;;  %3204 = vpow2.f32 %v1565_v27 }
 0x2d1   :  { %v4890_v22 = vpop.eup %3196  ;;  %v2107_v46 = vmul.f32 %v3296_v40, %v2002_v55  ;;  %v1235_v8 = vrot.slane %v1234_v0, 1  ;;  %3206 = vpow2.f32 %v1567_v5  ;;  %v2313_v17 = vrot.slane %v2312_v16, 2 }
 0x2d2   :  { %v4896_v29 = vpop.eup %3198  ;;  %v1719_v60 = vrot.slane %v1718_v57, 2  ;;  %v1741_v4 = vrot.slane %v4890_v22, 4  ;;  %v1186_v43 = vmax.f32 %v1184_v45, %v1185_v33  ;;  %v1747_v13 = vrot.slane %v4885_v30, 4 }
 0x2d3   :  { %v2303_v20 = vsel %vm92_vm0, %v2107_v46, 0.0  ;;  %v1236_v25 = vmax.f32 %v1234_v0, %v1235_v8  ;;  %v1899_v31 = vrot.slane %v1898_v11, 2  ;;  %v1329_v58 = vrot.slane %v1328_v53, 2 }
 0x2d4   :  { %v2304_v42 = vrot.slane %v2303_v20, 4  ;;  %v1187_v49 = vrot.slane %v1186_v43, 1  ;;  %v2295_v1 = vadd.f32 %v2294_v10, %v2293_v15  ;;  %3208 = vrcp.f32 %v1734_v19 }
 0x2d5   :  { %v4903_v35 = vpop.eup %3200  ;;  %v1742_v34 = vadd.f32 %v4890_v22, %v1741_v4  ;;  %v1420_v41 = vsub.f32 %v4844_v38, %v1236_v25  ;;  %v1720_v44 = vadd.f32 %v1719_v60, %v1718_v57  ;;  %v1177_v48 = vrot.slane %v4901_v62, 4 }
 0x2d6   :  { %v3203_v52 = vpop.eup %3202  ;;  %v2305_v59 = vadd.f32 %v2304_v42, %v2303_v20  ;;  %v1909_v36 = vrot.slane %v4903_v35, 4  ;;  %v2314_v27 = vadd.f32 %v2313_v17, %v2312_v16  ;;  %v1923_v39 = vrot.slane %v1922_v18, 2  ;;  %v4926_v42 = vpop.xlane.xlu1 %992 }
 0x2d7   :  { %v1523_v6 = vmul.f32 1.442695, %v1420_v41  ;;  %v1188_v56 = vmax.f32 %v1186_v43, %v1187_v49  ;;  %v1748_v47 = vadd.f32 %v4885_v30, %v1747_v13  ;;  %v1900_v15 = vadd.f32 %v1899_v31, %v1898_v11 }
 0x2d8   :  { %v2306_v5 = vrot.slane %v2305_v59, 2  ;;  %v1330_v19 = vmax.f32 %v1328_v53, %v1329_v58  ;;  %v1743_v45 = vrot.slane %v1742_v34, 2  ;;  %v1910_v10 = vadd.f32 %v4903_v35, %v1909_v36 }
 0x2d9   :  { %3210 = vpow2.f32 %v1523_v6  ;;  %v1412_v38 = vsub.f32 %v4863_v28, %v1188_v56  ;;  %v4915_v55 = vadd.f32 %v2339_v26, %v4848_v2  ;;  %v1721_v0 = vrot.slane %v1720_v44, 1 }
 0x2da   :  { %v2307_v16 = vadd.f32 %v2306_v5, %v2305_v59  ;;  %v1178_v57 = vmax.f32 %v4901_v62, %v1177_v48  ;;  %v4918_v33 = vpop.eup %3204  ;;  %v2062_v11 = vmul.f32 %v3203_v52, %v4752_v14  ;;  %v2315_v53 = vrot.slane %v2314_v27, 1 }
 0x2db   :  { %v1924_v40 = vadd.f32 %v1923_v39, %v1922_v18  ;;  %v1507_v46 = vmul.f32 1.442695, %v1412_v38  ;;  %v4921_v8 = vpop.eup %3206  ;;  %v2685_v28 = vsel %vm2667_vm4, %v2295_v1, %v4773_v12  ;;  %v1749_v4 = vrot.slane %v1748_v47, 2 }
 0x2dc   :  { %v2308_v60 = vrot.slane %v2307_v16, 1  ;;  %v1901_v2 = vrot.slane %v1900_v15, 1  ;;  %v1744_v26 = vadd.f32 %v1743_v45, %v1742_v34  ;;  %v1911_v43 = vrot.slane %v1910_v10, 2  ;;  %v4951_v45 = vpop.xlane.xlu1 %995 }
 0x2dd   :  { %3212 = vpow2.f32 %v1507_v46  ;;  %v1331_v17 = vrot.slane %v1330_v19, 1  ;;  %v1722_v13 = vadd.f32 %v1721_v0, %v1720_v44  ;;  %v1933_v25 = vrot.slane %v4918_v33, 4  ;;  %v3298_v46 = vld [vmem:[%s5132_s0 + $0xd0] sm:$0xff] }
 0x2de   :  { %v2309_v20 = vadd.f32 %v2308_v60, %v2307_v16  ;;  %v1179_v14 = vrot.slane %v1178_v57, 2  ;;  %v3209_v18 = vpop.eup %3208  ;;  %v2316_v31 = vadd.f32 %v2315_v53, %v2314_v27  ;;  %v1925_v49 = vrot.slane %v1924_v40, 1 }
 0x2df   :  { %v2686_v12 = vsel %vm2669_vm5, %v4868_v54, %v2685_v28  ;;  %v1332_v58 = vmax.f32 %v1330_v19, %v1331_v17  ;;  %v1750_v34 = vadd.f32 %v1749_v4, %v1748_v47  ;;  %v1902_v41 = vadd.f32 %v1901_v2, %v1900_v15 }
 0x2e0   :  { %v2687_v1 = vsel %vm2671_vm6, %v2309_v20, %v2686_v12  ;;  %v1939_v52 = vrot.slane %v4921_v8, 4  ;;  %v1745_v44 = vrot.slane %v1744_v26, 1  ;;  %v1912_v36 = vadd.f32 %v1911_v43, %v1910_v10 }
 0x2e1   :  { %v2688_v59 = vsel %vm2673_vm7, %v2316_v31, %v2687_v1  ;;  %v1436_v48 = vsub.f32 %v4871_v9, %v1332_v58  ;;  %v4937_v27 = vadd.f32 %v2523_v24, %v4856_v32  ;;  %3214 = vrcp.f32 %v1722_v13  ;;  %v3297_v9 = vld [vmem:[%s5132_s0 + $0x1a0] sm:$0xff] }
 0x2e2   :  { %2734 = vst.msk [vmem:[%s5135_s4 + $0x10] sm:$0xff] %vm92_vm0, %v2688_v59  ;;  %v1934_v54 = vadd.f32 %v4918_v33, %v1933_v25  ;;  %v1180_v39 = vmax.f32 %v1178_v57, %v1179_v14  ;;  %v2137_v56 = vmul.f32 %v3297_v9, %v2062_v11  ;;  %v2010_v5 = vmul.f32 %v3209_v18, %v4798_v21 }
 0x2e3   :  { %v4944_v6 = vpop.eup %3210  ;;  %v1926_v32 = vadd.f32 %v1925_v49, %v1924_v40  ;;  %v1555_v24 = vmul.f32 1.442695, %v1436_v48  ;;  %v1751_v47 = vrot.slane %v1750_v34, 1  ;;  %3216 = vrcp.f32 %v1902_v41 }
 0x2e4   :  { %v1807_v15 = vrot.slane %v4944_v6, 4  ;;  %v1181_v19 = vrot.slane %v1180_v39, 1  ;;  %v1940_v10 = vadd.f32 %v4921_v8, %v1939_v52  ;;  %v1746_v38 = vadd.f32 %v1745_v44, %v1744_v26 }
 0x2e5   :  { %v1913_v16 = vrot.slane %v1912_v36, 1  ;;  %3218 = vpow2.f32 %v1555_v24  ;;  %v1935_v0 = vrot.slane %v1934_v54, 2  ;;  %v1369_v21 = vrot.slane %v4926_v42, 4 }
 0x2e6   :  { %v1808_v57 = vadd.f32 %v4944_v6, %v1807_v15  ;;  %v1182_v11 = vmax.f32 %v1180_v39, %v1181_v19  ;;  %v2513_v40 = vsel %vm92_vm0, %v2137_v56, 0.0  ;;  %v2111_v28 = vmul.f32 %v3298_v46, %v2010_v5 }
 0x2e7   :  { %v4956_v53 = vpop.eup %3212  ;;  %3220 = vrcp.f32 %v1926_v32  ;;  %v1375_v60 = vrot.slane %v4951_v45, 4  ;;  %v1752_v4 = vadd.f32 %v1751_v47, %v1750_v34  ;;  %v1941_v17 = vrot.slane %v1940_v10, 2 }
 0x2e8   :  { %v1809_v2 = vrot.slane %v1808_v57, 2  ;;  %v1759_v26 = vrot.slane %v4956_v53, 4  ;;  %v1411_v43 = vsub.f32 %v4901_v62, %v1182_v11  ;;  %3222 = vrcp.f32 %v1746_v38 }
 0x2e9   :  { %v1370_v20 = vmax.f32 %v4926_v42, %v1369_v21  ;;  %v1376_v13 = vmax.f32 %v4951_v45, %v1375_v60  ;;  %v1914_v25 = vadd.f32 %v1913_v16, %v1912_v36  ;;  %v1936_v14 = vadd.f32 %v1935_v0, %v1934_v54 }
 0x2ea   :  { %v1810_v18 = vadd.f32 %v1809_v2, %v1808_v57  ;;  %v1760_v31 = vadd.f32 %v4956_v53, %v1759_v26  ;;  %v2076_v49 = vmul.f32 %v4896_v29, %v4720_v37  ;;  %v1505_v12 = vmul.f32 1.442695, %v1411_v43 }
 0x2eb   :  { %v1371_v58 = vrot.slane %v1370_v20, 2  ;;  %v1377_v1 = vrot.slane %v1376_v13, 2  ;;  %v3215_v34 = vpop.eup %3214  ;;  %v2514_v41 = vrot.slane %v2513_v40, 4  ;;  %3224 = vrcp.f32 %v1752_v4 }
 0x2ec   :  { %v1811_v62 = vrot.slane %v1810_v18, 1  ;;  %v1761_v52 = vrot.slane %v1760_v31, 2  ;;  %v2331_v59 = vsel %vm92_vm0, %v2111_v28, 0.0  ;;  %3226 = vpow2.f32 %v1505_v12  ;;  %v3300_v28 = vld [vmem:[%s5132_s0 + $0xc0] sm:$0xff] }
 0x2ed   :  { %v1372_v44 = vmax.f32 %v1370_v20, %v1371_v58  ;;  %v1378_v36 = vmax.f32 %v1376_v13, %v1377_v1  ;;  %v3217_v48 = vpop.eup %3216  ;;  %v1942_v54 = vadd.f32 %v1941_v17, %v1940_v10  ;;  %3228 = vrcp.f32 %v1914_v25  ;;  %v3301_v25 = vld [vmem:[%s5132_s0 + $0x1b0] sm:$0xff] }
 0x2ee   :  { %v1937_v39 = vrot.slane %v1936_v14, 1  ;;  %v1812_v9 = vadd.f32 %v1811_v62, %v1810_v18  ;;  %v2006_v37 = vmul.f32 %v3215_v34, %v4878_v61  ;;  %v1762_v29 = vadd.f32 %v1761_v52, %v1760_v31  ;;  %v3299_v61 = vld [vmem:[%s5132_s0 + $0x1d8] sm:$0xff] }
 0x2ef   :  { %v4971_v56 = vpop.eup %3218  ;;  %v1373_v5 = vrot.slane %v1372_v44, 1  ;;  %v1379_v32 = vrot.slane %v1378_v36, 1  ;;  %v2515_v24 = vadd.f32 %v2514_v41, %v2513_v40  ;;  %v2332_v47 = vrot.slane %v2331_v59, 4 }
 0x2f0   :  { %3230 = vrcp.f32 %v1812_v9  ;;  %v1903_v15 = vrot.slane %v4971_v56, 4  ;;  %v2066_v38 = vmul.f32 %v3217_v48, %v4859_v50  ;;  %v1763_v16 = vrot.slane %v1762_v29, 1 }
 0x2f1   :  { %v3221_v19 = vpop.eup %3220  ;;  %v1374_v10 = vmax.f32 %v1372_v44, %v1373_v5  ;;  %v1380_v0 = vmax.f32 %v1378_v36, %v1379_v32  ;;  %v2341_v57 = vrot.slane %v4915_v55, 2  ;;  %v2144_v11 = vmul.f32 %v3299_v61, %v2076_v49  ;;  %v3302_v36 = vld [vmem:[%s5132_s0 + $0x1d0] sm:$0xff]  ;;  %v3303_v5 = vld [vmem:[%s5132_s0 + $0xe0] sm:$0xff] }
 0x2f2   :  { %v1943_v21 = vrot.slane %v1942_v54, 1  ;;  %v1904_v40 = vadd.f32 %v4971_v56, %v1903_v15  ;;  %v3223_v46 = vpop.eup %3222  ;;  %v2109_v60 = vmul.f32 %v3300_v28, %v2006_v37  ;;  %v1938_v50 = vadd.f32 %v1937_v39, %v1936_v14 }
 0x2f3   :  { %v1764_v4 = vadd.f32 %v1763_v16, %v1762_v29  ;;  %v1443_v2 = vsub.f32 %v4926_v42, %v1374_v10  ;;  %v2516_v26 = vrot.slane %v2515_v24, 2  ;;  %v2333_v43 = vadd.f32 %v2332_v47, %v2331_v59 }
 0x2f4   :  { %v1905_v17 = vrot.slane %v1904_v40, 2  ;;  %v1444_v20 = vsub.f32 %v4951_v45, %v1380_v0  ;;  %v2074_v13 = vmul.f32 %v3221_v19, %v4865_v23  ;;  %v2139_v18 = vmul.f32 %v3301_v25, %v2066_v38  ;;  %v3304_v0 = vld [vmem:[%s5132_s0 + $0x138] sm:$0xff] }
 0x2f5   :  { %3232 = vrcp.f32 %v1764_v4  ;;  %v1569_v31 = vmul.f32 1.442695, %v1443_v2  ;;  %v3225_v49 = vpop.eup %3224  ;;  %v2525_v14 = vrot.slane %v4937_v27, 1  ;;  %v1944_v12 = vadd.f32 %v1943_v21, %v1942_v54  ;;  %v3305_v21 = vld [vmem:[%s5132_s0 + $0xe8] sm:$0xff] }
 0x2f6   :  { %v1906_v58 = vadd.f32 %v1905_v17, %v1904_v40  ;;  %v1571_v42 = vmul.f32 1.442695, %v1444_v20  ;;  %v4991_v1 = vpop.eup %3226  ;;  %v2562_v34 = vsel %vm92_vm0, %v2144_v11, 0.0  ;;  %v2317_v45 = vsel %vm92_vm0, %v2109_v60, 0.0 }
 0x2f7   :  { %v2014_v23 = vmul.f32 %v3223_v46, %v4890_v22  ;;  %3234 = vrcp.f32 %v1938_v50  ;;  %v3229_v41 = vpop.eup %3228  ;;  %v2517_v62 = vadd.f32 %v2516_v26, %v2515_v24  ;;  %v1753_v59 = vrot.slane %v4991_v1, 4  ;;  %v3306_v46 = vld [vmem:[%s5132_s0 + $0x1c0] sm:$0xff] }
 0x2f8   :  { %v1907_v52 = vrot.slane %v1906_v58, 1  ;;  %3236 = vpow2.f32 %v1569_v31  ;;  %v2334_v44 = vrot.slane %v2333_v43, 2  ;;  %v2143_v48 = vmul.f32 %v3302_v36, %v2074_v13 }
 0x2f9   :  { %v2527_v54 = vsel %vm92_vm0, %v2139_v18, 0.0  ;;  %3238 = vpow2.f32 %v1571_v42  ;;  %v2318_v9 = vrot.slane %v2317_v45, 4  ;;  %v1754_v37 = vadd.f32 %v4991_v1, %v1753_v59 }
 0x2fa   :  { %v3231_v39 = vpop.eup %3230  ;;  %3240 = vrcp.f32 %v1944_v12  ;;  %v1908_v22 = vadd.f32 %v1907_v52, %v1906_v58  ;;  %v2016_v29 = vmul.f32 %v3225_v49, %v4885_v30  ;;  %v2113_v32 = vmul.f32 %v3303_v5, %v2014_v23  ;;  %v3307_v52 = vld [vmem:[%s5132_s0 + $0xf8] sm:$0xff] }
 0x2fb   :  { %v2070_v24 = vmul.f32 %v3229_v41, %v4903_v35  ;;  %v2036_v47 = vmul.f32 %v3231_v39, %v4944_v6  ;;  %v5009_v15 = vadd.f32 %v2341_v57, %v4915_v55  ;;  %v2528_v19 = vrot.slane %v2527_v54, 4 }
 0x2fc   :  { %3242 = vrcp.f32 %v1908_v22  ;;  %v1755_v38 = vrot.slane %v1754_v37, 2  ;;  %v5012_v16 = vadd.f32 %v2525_v14, %v4937_v27  ;;  %v2563_v10 = vrot.slane %v2562_v34, 4 }
 0x2fd   :  { %v2518_v30 = vrot.slane %v2517_v62, 1  ;;  %v2124_v61 = vmul.f32 %v3304_v0, %v2036_v47  ;;  %v5017_v11 = vadd.f32 %v2334_v44, %v2333_v43  ;;  %v2555_v35 = vsel %vm92_vm0, %v2143_v48, 0.0 }
 0x2fe   :  { %v2319_v6 = vadd.f32 %v2318_v9, %v2317_v45  ;;  %v1756_v55 = vadd.f32 %v1755_v38, %v1754_v37  ;;  %v2114_v27 = vmul.f32 %v3305_v21, %v2016_v29  ;;  %v2345_v40 = vsel %vm92_vm0, %v2113_v32, 0.0 }
 0x2ff   :  { %v3233_v57 = vpop.eup %3232  ;;  %v2141_v28 = vmul.f32 %v3306_v46, %v2070_v24  ;;  %v2422_v60 = vsel %vm92_vm0, %v2124_v61, 0.0  ;;  %v2529_v50 = vadd.f32 %v2528_v19, %v2527_v54  ;;  %v2343_v17 = vrot.slane %v5009_v15, 1  ;;  %v3309_v61 = vld [vmem:[%s5132_s0 + $0x1b8] sm:$0xff] }
 0x300   :  { %v2423_v4 = vrot.slane %v2422_v60, 4  ;;  %v2020_v2 = vmul.f32 %v3233_v57, %v4956_v53  ;;  %v1757_v26 = vrot.slane %v1756_v55, 1  ;;  %v5030_v20 = vadd.f32 %v2563_v10, %v2562_v34 }
 0x301   :  { %v3235_v43 = vpop.eup %3234  ;;  %v5032_v13 = vadd.f32 %v2518_v30, %v2517_v62  ;;  %v2556_v25 = vrot.slane %v2555_v35, 4  ;;  %v2320_v31 = vrot.slane %v2319_v6, 2  ;;  %v2346_v49 = vrot.slane %v2345_v40, 4  ;;  %v3308_v30 = vld [vmem:[%s5132_s0 + $0x1e0] sm:$0xff] }
 0x302   :  { %v5034_v18 = vpop.eup %3236  ;;  %v2424_v14 = vadd.f32 %v2423_v4, %v2422_v60  ;;  %v1758_v12 = vadd.f32 %v1757_v26, %v1756_v55  ;;  %v2336_v42 = vrot.slane %v5017_v11, 1  ;;  %v2352_v53 = vsel %vm92_vm0, %v2114_v27, 0.0 }
 0x303   :  { %v5036_v58 = vpop.eup %3238  ;;  %v2541_v45 = vsel %vm92_vm0, %v2141_v28, 0.0  ;;  %v1945_v34 = vrot.slane %v5034_v18, 4  ;;  %v2530_v41 = vrot.slane %v2529_v50, 2  ;;  %v2116_v59 = vmul.f32 %v3307_v52, %v2020_v2 }
 0x304   :  { %v3241_v23 = vpop.eup %3240  ;;  %v2425_v62 = vrot.slane %v2424_v14, 2  ;;  %3244 = vrcp.f32 %v1758_v12  ;;  %v5045_v44 = vadd.f32 %v2556_v25, %v2555_v35  ;;  %v2078_v36 = vmul.f32 %v3235_v43, %v4918_v33 }
 0x305   :  { %v1946_v48 = vadd.f32 %v5034_v18, %v1945_v34  ;;  %v1951_v54 = vrot.slane %v5036_v58, 4  ;;  %v2321_v9 = vadd.f32 %v2320_v31, %v2319_v6  ;;  %v2347_v22 = vadd.f32 %v2346_v49, %v2345_v40 }
 0x306   :  { %v3243_v39 = vpop.eup %3242  ;;  %v2542_v37 = vrot.slane %v2541_v45, 4  ;;  %v2426_v29 = vadd.f32 %v2425_v62, %v2424_v14  ;;  %v2353_v5 = vrot.slane %v2352_v53, 4  ;;  %v2531_v19 = vadd.f32 %v2530_v41, %v2529_v50  ;;  %v3310_v50 = vld [vmem:[%s5132_s0 + $0x1e8] sm:$0xff] }
 0x307   :  { %v2068_v32 = vmul.f32 %v3243_v39, %v4971_v56  ;;  %v1947_v24 = vrot.slane %v1946_v48, 2  ;;  %v1952_v47 = vadd.f32 %v5036_v58, %v1951_v54  ;;  %v2080_v38 = vmul.f32 %v3241_v23, %v4921_v8  ;;  %v3311_v39 = vld [vmem:[%s5132_s0 + $0xf0] sm:$0xff] }
 0x308   :  { %v2427_v10 = vrot.slane %v2426_v29, 1  ;;  %v2366_v33 = vsel %vm92_vm0, %v2116_v59, 0.0  ;;  %v2145_v0 = vmul.f32 %v3308_v30, %v2078_v36  ;;  %v2322_v55 = vrot.slane %v2321_v9, 1 }
 0x309   :  { %v2140_v35 = vmul.f32 %v3309_v61, %v2068_v32  ;;  %v1948_v56 = vadd.f32 %v1947_v24, %v1946_v48  ;;  %v1953_v6 = vrot.slane %v1952_v47, 2  ;;  %v2348_v57 = vrot.slane %v2347_v22, 2 }
 0x30a   :  { %v2543_v21 = vadd.f32 %v2542_v37, %v2541_v45  ;;  %v2428_v27 = vadd.f32 %v2427_v10, %v2426_v29  ;;  %v2367_v8 = vrot.slane %v2366_v33, 4  ;;  %v2354_v60 = vadd.f32 %v2353_v5, %v2352_v53 }
 0x30b   :  { %v2534_v40 = vsel %vm92_vm0, %v2140_v35, 0.0  ;;  %v1949_v46 = vrot.slane %v1948_v56, 1  ;;  %v1954_v28 = vadd.f32 %v1953_v6, %v1952_v47  ;;  %v2146_v4 = vmul.f32 %v3310_v50, %v2080_v38 }
 0x30c   :  { %v2702_v2 = vsel %vm2673_vm7, %v2428_v27, %v4617_v51  ;;  %v2535_v26 = vrot.slane %v2534_v40, 4  ;;  %v2532_v43 = vrot.slane %v2531_v19, 1  ;;  %v2569_v25 = vsel %vm92_vm0, %v2145_v0, 0.0 }
 0x30d   :  { %2736 = vst.msk [vmem:[%s5135_s4 + $0x20] sm:$0xff] %vm92_vm0, %v2702_v2  ;;  %v1950_v31 = vadd.f32 %v1949_v46, %v1948_v56  ;;  %v1955_v49 = vrot.slane %v1954_v28, 1  ;;  %v2323_v12 = vadd.f32 %v2322_v55, %v2321_v9  ;;  %v2349_v53 = vadd.f32 %v2348_v57, %v2347_v22 }
 0x30e   :  { %v3245_v14 = vpop.eup %3244  ;;  %v2544_v45 = vrot.slane %v2543_v21, 2  ;;  %v2536_v34 = vadd.f32 %v2535_v26, %v2534_v40  ;;  %v2368_v23 = vadd.f32 %v2367_v8, %v2366_v33  ;;  %v2713_v62 = vsel %vm2667_vm4, %v5032_v13, %v4852_v7 }
 0x30f   :  { %v2018_v41 = vmul.f32 %v3245_v14, %v4991_v1  ;;  %3246 = vrcp.f32 %v1950_v31  ;;  %v1956_v51 = vadd.f32 %v1955_v49, %v1954_v28  ;;  %v2337_v52 = vadd.f32 %v2336_v42, %v5017_v11  ;;  %v3312_v31 = vld [vmem:[%s5132_s0 + $0x1f0] sm:$0xff] }
 0x310   :  { %v2570_v59 = vrot.slane %v2569_v25, 4  ;;  %v2537_v36 = vrot.slane %v2536_v34, 2  ;;  %v2558_v48 = vrot.slane %v5045_v44, 2  ;;  %v2355_v54 = vrot.slane %v2354_v60, 2 }
 0x311   :  { %v2115_v9 = vmul.f32 %v3311_v39, %v2018_v41  ;;  %3248 = vrcp.f32 %v1956_v51  ;;  %v2533_v1 = vadd.f32 %v2532_v43, %v2531_v19  ;;  %v2576_v22 = vsel %vm92_vm0, %v2146_v4, 0.0 }
 0x312   :  { %v2689_v37 = vsel %vm2661_vm1, %v4777_v3, %v2323_v12  ;;  %v2538_v7 = vadd.f32 %v2537_v36, %v2536_v34  ;;  %v2350_v13 = vrot.slane %v2349_v53, 1  ;;  %v2545_v11 = vadd.f32 %v2544_v45, %v2543_v21 }
 0x313   :  { %v2369_v42 = vrot.slane %v2368_v23, 2  ;;  %v2359_v29 = vsel %vm92_vm0, %v2115_v9, 0.0  ;;  %v2344_v5 = vadd.f32 %v2343_v17, %v5009_v15  ;;  %v2571_v32 = vadd.f32 %v2570_v59, %v2569_v25 }
 0x314   :  { %v2539_v24 = vrot.slane %v2538_v7, 1  ;;  %v2360_v47 = vrot.slane %v2359_v29, 4  ;;  %v2565_v19 = vrot.slane %v5030_v20, 2  ;;  %v2356_v38 = vadd.f32 %v2355_v54, %v2354_v60 }
 0x315   :  { %v2577_v10 = vrot.slane %v2576_v22, 4  ;;  %v2690_v33 = vsel %vm2663_vm2, %v2337_v52, %v2689_v37  ;;  %v2559_v3 = vadd.f32 %v2558_v48, %v5045_v44  ;;  %v2714_v30 = vsel %vm2669_vm5, %v5012_v16, %v2713_v62 }
 0x316   :  { %v2540_v0 = vadd.f32 %v2539_v24, %v2538_v7  ;;  %v2361_v61 = vadd.f32 %v2360_v47, %v2359_v29  ;;  %v2715_v35 = vsel %vm2671_vm6, %v2533_v1, %v2714_v30  ;;  %v2351_v56 = vadd.f32 %v2350_v13, %v2349_v53 }
 0x317   :  { %v2546_v15 = vrot.slane %v2545_v11, 1  ;;  %v2370_v17 = vadd.f32 %v2369_v42, %v2368_v23  ;;  %v2691_v6 = vsel %vm2665_vm3, %v2344_v5, %v2690_v33  ;;  %v2572_v55 = vrot.slane %v2571_v32, 2  ;;  %v3313_v23 = vld [vmem:[%s5132_s0 + $0x1f8] sm:$0xff] }
 0x318   :  { %v2716_v57 = vsel %vm2673_vm7, %v2540_v0, %v2715_v35  ;;  %v2362_v21 = vrot.slane %v2361_v61, 2  ;;  %v2553_v8 = vrot.slane %v4786_v63, 1  ;;  %v2357_v44 = vrot.slane %v2356_v38, 1 }
 0x319   :  { %v3247_v27 = vpop.eup %3246  ;;  %v2578_v40 = vadd.f32 %v2577_v10, %v2576_v22  ;;  %2738 = vst.msk [vmem:[%s5135_s4 + $0x30] sm:$0xff] %vm92_vm0, %v2716_v57  ;;  %v2566_v16 = vadd.f32 %v2565_v19, %v5030_v20  ;;  %v2560_v50 = vrot.slane %v2559_v3, 1  ;;  %v2692_v4 = vsel %vm2667_vm4, %v2351_v56, %v2691_v6 }
 0x31a   :  { %v2363_v46 = vadd.f32 %v2362_v21, %v2361_v61  ;;  %v2082_v28 = vmul.f32 %v3247_v27, %v5034_v18  ;;  %v2547_v2 = vadd.f32 %v2546_v15, %v2545_v11  ;;  %v2371_v26 = vrot.slane %v2370_v17, 1 }
 0x31b   :  { %v3249_v60 = vpop.eup %3248  ;;  %v2573_v43 = vadd.f32 %v2572_v55, %v2571_v32  ;;  %v2554_v20 = vadd.f32 %v2553_v8, %v4786_v63  ;;  %v2358_v12 = vadd.f32 %v2357_v44, %v2356_v38  ;;  %v2579_v53 = vrot.slane %v2578_v40, 2 }
 0x31c   :  { %v2364_v25 = vrot.slane %v2363_v46, 1  ;;  %v2147_v49 = vmul.f32 %v3312_v31, %v2082_v28  ;;  %v2084_v14 = vmul.f32 %v3249_v60, %v5036_v58  ;;  %v2567_v18 = vrot.slane %v2566_v16, 1 }
 0x31d   :  { %v2717_v51 = vsel %vm2661_vm1, %v2554_v20, %v2547_v2  ;;  %v2372_v62 = vadd.f32 %v2371_v26, %v2370_v17  ;;  %v2693_v52 = vsel %vm2669_vm5, %v2358_v12, %v2692_v4  ;;  %v2561_v58 = vadd.f32 %v2560_v50, %v2559_v3 }
 0x31e   :  { %v2365_v45 = vadd.f32 %v2364_v25, %v2363_v46  ;;  %v2583_v34 = vsel %vm92_vm0, %v2147_v49, 0.0  ;;  %v2148_v41 = vmul.f32 %v3313_v23, %v2084_v14  ;;  %v2574_v36 = vrot.slane %v2573_v43, 1 }
 0x31f   :  { %v2584_v59 = vrot.slane %v2583_v34, 4  ;;  %v2580_v54 = vadd.f32 %v2579_v53, %v2578_v40  ;;  %v2718_v22 = vsel %vm2663_vm2, %v2561_v58, %v2717_v51  ;;  %v2568_v37 = vadd.f32 %v2567_v18, %v2566_v16 }
 0x320   :  { %v2694_v63 = vsel %vm2671_vm6, %v2365_v45, %v2693_v52  ;;  %v2590_v48 = vsel %vm92_vm0, %v2148_v41, 0.0  ;;  %v2575_v11 = vadd.f32 %v2574_v36, %v2573_v43 }
 0x321   :  { %v2695_v39 = vsel %vm2673_vm7, %v2372_v62, %v2694_v63  ;;  %v2585_v9 = vadd.f32 %v2584_v59, %v2583_v34  ;;  %v2591_v1 = vrot.slane %v2590_v48, 4  ;;  %v2581_v42 = vrot.slane %v2580_v54, 1 }
 0x322   :  { %2735 = vst.msk [vmem:[%s5135_s4 + $0x18] sm:$0xff] %vm92_vm0, %v2695_v39  ;;  %v2719_v29 = vsel %vm2665_vm3, %v2568_v37, %v2718_v22 }
 0x323   :  { %v2586_v7 = vrot.slane %v2585_v9, 2  ;;  %v2592_v13 = vadd.f32 %v2591_v1, %v2590_v48  ;;  %v2720_v19 = vsel %vm2667_vm4, %v2575_v11, %v2719_v29  ;;  %v2582_v38 = vadd.f32 %v2581_v42, %v2580_v54 }
 0x325   :  { %v2587_v5 = vadd.f32 %v2586_v7, %v2585_v9  ;;  %v2593_v32 = vrot.slane %v2592_v13, 2  ;;  %v2721_v3 = vsel %vm2669_vm5, %v2582_v38, %v2720_v19 }
 0x327   :  { %v2588_v24 = vrot.slane %v2587_v5, 1  ;;  %v2594_v47 = vadd.f32 %v2593_v32, %v2592_v13 }
 0x329   :  { %v2589_v10 = vadd.f32 %v2588_v24, %v2587_v5  ;;  %v2595_v33 = vrot.slane %v2594_v47, 1 }
 0x32b   :  { %v2596_v30 = vadd.f32 %v2595_v33, %v2594_v47  ;;  %v2722_v0 = vsel %vm2671_vm6, %v2589_v10, %v2721_v3 }
 0x32d   :  { %v2723_v61 = vsel %vm2673_vm7, %v2596_v30, %v2722_v0 }
 0x32e   :  { %2739 = vst.msk [vmem:[%s5135_s4 + $0x38] sm:$0xff] %vm92_vm0, %v2723_v61 }

</bundles_post_ra>
